<compile_context>
chip_gen: v7x
topology: tpu7x:2x2x1
jax: 0.10.0
libtpu: 0.0.40
codegen_flags: <defaults>
</compile_context>

<pallas_src>
import math
import functools

import jax
import jax.numpy as jnp
from jax.experimental import pallas as pl
from jax.experimental.pallas import tpu as pltpu


ALPHA_MIN = 1.0 / 255.0   # gsplat's minimum alpha contribution
T_STOP = 1e-4             # gsplat's transmittance early-stop threshold


# ----------------------------- preprocess kernel -----------------------------

def _preprocess_kernel(lat_ref, out_ref, *, focal, cx, cy):
    lat = lat_ref[...]  # (14, N) f32, rows: x y z sx sy sz qw qx qy qz r g b op
    x, y, z = lat[0:1], lat[1:2], lat[2:3]
    sx, sy, sz = lat[3:4], lat[4:5], lat[5:6]
    qw, qx, qy, qz = lat[6:7], lat[7:8], lat[8:9], lat[9:10]  # wxyz (gsplat convention)
    cr, cg, cb = lat[10:11], lat[11:12], lat[12:13]
    op = lat[13:14]

    # F.normalize(quats, dim=-1)
    inv_n = jax.lax.rsqrt(qw * qw + qx * qx + qy * qy + qz * qz + 1e-12)
    qw, qx, qy, qz = qw * inv_n, qx * inv_n, qy * inv_n, qz * inv_n

    # sigmoid(2 * opacity)
    opac = jax.nn.sigmoid(2.0 * op)

    # rotation matrix from quaternion
    r00 = 1.0 - 2.0 * (qy * qy + qz * qz)
    r01 = 2.0 * (qx * qy - qw * qz)
    r02 = 2.0 * (qx * qz + qw * qy)
    r10 = 2.0 * (qx * qy + qw * qz)
    r11 = 1.0 - 2.0 * (qx * qx + qz * qz)
    r12 = 2.0 * (qy * qz - qw * qx)
    r20 = 2.0 * (qx * qz - qw * qy)
    r21 = 2.0 * (qy * qz + qw * qx)
    r22 = 1.0 - 2.0 * (qx * qx + qy * qy)

    sx2, sy2, sz2 = sx * sx, sy * sy, sz * sz
    # 3D covariance Sigma = R diag(s^2) R^T (world_to_camera is identity)
    s00 = r00 * r00 * sx2 + r01 * r01 * sy2 + r02 * r02 * sz2
    s02 = r00 * r20 * sx2 + r01 * r21 * sy2 + r02 * r22 * sz2
    s01 = r00 * r10 * sx2 + r01 * r11 * sy2 + r02 * r12 * sz2
    s11 = r10 * r10 * sx2 + r11 * r11 * sy2 + r12 * r12 * sz2
    s12 = r10 * r20 * sx2 + r11 * r21 * sy2 + r12 * r22 * sz2
    s22 = r20 * r20 * sx2 + r21 * r21 * sy2 + r22 * r22 * sz2

    near = 0.01
    z_ok = z > near
    z_safe = jnp.where(z_ok, z, 1.0)

    # perspective Jacobian rows: (j0, 0, j2) and (0, j1, j3)
    j0 = focal / z_safe
    j1 = focal / z_safe
    j2 = -focal * x / (z_safe * z_safe)
    j3 = -focal * y / (z_safe * z_safe)

    # 2D covariance (with the +0.3 low-pass, classic mode — no aa compensation)
    c00 = j0 * j0 * s00 + 2.0 * j0 * j2 * s02 + j2 * j2 * s22 + 0.3
    c01 = j0 * j1 * s01 + j0 * j3 * s02 + j2 * j1 * s12 + j2 * j3 * s22
    c11 = j1 * j1 * s11 + 2.0 * j1 * j3 * s12 + j3 * j3 * s22 + 0.3

    det = c00 * c11 - c01 * c01
    det_ok = det > 1e-12
    inv_det = 1.0 / jnp.where(det_ok, det, 1.0)
    # conic = inverse 2D covariance; fold the 0.5 of the exponent into the diag
    half_a = 0.5 * c11 * inv_det
    conic_b = -c01 * inv_det
    half_c = 0.5 * c00 * inv_det

    mx = focal * x / z_safe + cx
    my = focal * y / z_safe + cy

    valid = (z_ok & det_ok).astype(jnp.float32)
    depth = z

    # conservative y-extent: alpha >= 1/255 requires sigma <= ln(255) => |dy| <= 3.33*sqrt(cov_yy)
    radius_y = 3.34 * jnp.sqrt(jnp.maximum(c11, 0.0)) + 1.0

    out_ref[...] = jnp.concatenate(
        [mx, my, half_a, conic_b, half_c, opac, cr, cg, cb, valid, depth, radius_y],
        axis=0,
    )


# ------------------------------- render kernel --------------------------------

def _render_kernel(nchunks_ref, idx_ref, table_ref, bg_ref, out_ref,
                   acc_r, acc_g, acc_b, tvis, *, n_idx, chunk):
    # nchunks_ref: (T,) i32 SMEM          — gaussian-chunk count per row tile
    # idx_ref:     (T*n_idx,) i32 SMEM    — per-tile depth-ordered gaussian ids
    # table_ref:   (9, N+1) f32 SMEM      — mx my 0.5a b 0.5c op r g b (+zero dummy col)
    # bg_ref:      (3,) f32 SMEM
    # out block:   (3, TH, W) VMEM; scratch: four (TH, W) f32 buffers.
    tile = pl.program_id(0)
    th, w = acc_r.shape

    row = jax.lax.broadcasted_iota(jnp.int32, (th, w), 0)
    col = jax.lax.broadcasted_iota(jnp.int32, (th, w), 1)
    py = row.astype(jnp.float32) + ((tile * th).astype(jnp.float32) + 0.5)
    px = col.astype(jnp.float32) + 0.5

    acc_r[...] = jnp.zeros_like(acc_r)
    acc_g[...] = jnp.zeros_like(acc_g)
    acc_b[...] = jnp.zeros_like(acc_b)
    tvis[...] = jnp.ones_like(tvis)

    nck = nchunks_ref[tile]
    base0 = tile * n_idx

    def chunk_body(c, carry):
        tv0 = tvis[...]

        # transmittance early-out: skip the chunk once every pixel is saturated
        @pl.when(jnp.max(tv0) >= T_STOP)
        def _():
            ar = acc_r[...]
            ag = acc_g[...]
            ab = acc_b[...]
            tv = tv0
            base = base0 + c * chunk
            # unrolled chunk: state stays in vregs, scalar loads for gaussian
            # j+1 hide under the vector work of gaussian j.
            for j in range(chunk):
                gi = idx_ref[base + j]
                mx = table_ref[0, gi]
                my = table_ref[1, gi]
                ha = table_ref[2, gi]   # 0.5 * conic_a
                hb = table_ref[3, gi]   # conic_b
                hc = table_ref[4, gi]   # 0.5 * conic_c
                op = table_ref[5, gi]
                col_r = table_ref[6, gi]
                col_g = table_ref[7, gi]
                col_b = table_ref[8, gi]

                dx = px - mx
                dy = py - my
                sigma = (ha * dx + hb * dy) * dx + hc * dy * dy
                a_raw = jnp.minimum(op * jnp.exp(-sigma), 0.999)
                alpha = jnp.where((sigma >= 0.0) & (a_raw >= ALPHA_MIN), a_raw, 0.0)

                wgt = tv * alpha
                ar = ar + wgt * col_r
                ag = ag + wgt * col_g
                ab = ab + wgt * col_b
                tv = tv * (1.0 - alpha)

            acc_r[...] = ar
            acc_g[...] = ag
            acc_b[...] = ab
            tvis[...] = tv

        return carry

    jax.lax.fori_loop(0, nck, chunk_body, 0)

    t_out = tvis[...]
    out_ref[0, :, :] = acc_r[...] + t_out * bg_ref[0]
    out_ref[1, :, :] = acc_g[...] + t_out * bg_ref[1]
    out_ref[2, :, :] = acc_b[...] + t_out * bg_ref[2]


# --------------------------------- wrapper ------------------------------------

def render_gaussians(latent, background, *, height, width, row_tile=32, chunk=8):
    """latent: (N, 14) f32, background: (3,) f32 -> image (H, W, 3) f32."""
    n = latent.shape[0]
    fov_x = math.pi / 2.0
    focal = 0.5 * float(width) / math.tan(0.5 * fov_x)
    cx, cy = width / 2.0, height / 2.0

    assert height % row_tile == 0 and width % 128 == 0
    num_tiles = height // row_tile

    latent_t = jnp.asarray(latent, jnp.float32).T  # (14, N) param-major

    table = pl.pallas_call(
        functools.partial(_preprocess_kernel, focal=focal, cx=cx, cy=cy),
        out_shape=jax.ShapeDtypeStruct((12, n), jnp.float32),
        in_specs=[pl.BlockSpec(memory_space=pltpu.MemorySpace.VMEM)],
        out_specs=pl.BlockSpec(memory_space=pltpu.MemorySpace.VMEM),
    )(latent_t)

    # ---- glue: global front-to-back depth sort ----
    valid = table[9] > 0.0
    depth = table[10]
    order = jnp.argsort(jnp.where(valid, depth, jnp.inf))
    table_s = table[:, order]  # (12, N), front-to-back, invalid last

    # ---- glue: per-row-tile culling (depth order preserved within each tile) ----
    my = table_s[1]
    ry = table_s[11]
    val_s = table_s[9] > 0.0
    lo = (jnp.arange(num_tiles, dtype=jnp.float32) * float(row_tile))[:, None]
    hi = lo + float(row_tile)
    overlap = (my[None, :] + ry[None, :] >= lo) & (my[None, :] - ry[None, :] <= hi) & val_s[None, :]
    counts = jnp.sum(overlap, axis=1).astype(jnp.int32)                 # (T,)
    nchunks = (counts + (chunk - 1)) // chunk                            # (T,)

    n_idx = ((n + chunk - 1) // chunk) * chunk
    pos = jnp.argsort(jnp.where(overlap, 0, 1).astype(jnp.int32), axis=1, stable=True)
    if n_idx > n:
        pos = jnp.pad(pos, ((0, 0), (0, n_idx - n)), constant_values=n)
    keep = jnp.arange(n_idx, dtype=jnp.int32)[None, :] < counts[:, None]
    idx_flat = jnp.where(keep, pos, n).astype(jnp.int32).reshape(-1)     # (T*n_idx,)

    # render table rows [mx my 0.5a b 0.5c op r g b] + a zero dummy column (id = n)
    render_table = jnp.pad(table_s[:9], ((0, 0), (0, 1)))

    img_chw = pl.pallas_call(
        functools.partial(_render_kernel, n_idx=n_idx, chunk=chunk),
        out_shape=jax.ShapeDtypeStruct((3, height, width), jnp.float32),
        grid_spec=pltpu.PrefetchScalarGridSpec(
            num_scalar_prefetch=2,
            grid=(num_tiles,),
            in_specs=[
                pl.BlockSpec(memory_space=pltpu.MemorySpace.SMEM),  # gaussian table
                pl.BlockSpec(memory_space=pltpu.MemorySpace.SMEM),  # background
            ],
            out_specs=pl.BlockSpec((3, row_tile, width), lambda i, *_: (0, i, 0)),
            scratch_shapes=[pltpu.VMEM((row_tile, width), jnp.float32)] * 4,
        ),
        compiler_params=pltpu.CompilerParams(dimension_semantics=("parallel",)),
    )(nchunks, idx_flat, render_table, jnp.asarray(background, jnp.float32).reshape(-1))

    # kernel output stays channel-major (lane-dense W); transpose only here to
    # match PyTorch's renders[0] (H, W, 3) layout.
    return jnp.transpose(img_chw, (1, 2, 0))


# ------------------------------------ main -------------------------------------

if __name__ == "__main__":
    # small config consistent with Gaussians3DConfig
    HEIGHT, WIDTH, N = 64, 256, 128
    POSITION_RANGE, SCALE_MAX = 1.4, 0.05

    key = jax.random.PRNGKey(0)
    k1, k2, k3, k4, k5 = jax.random.split(key, 5)

    # _init_gaussians, deterministic in-script
    means = POSITION_RANGE * (jax.random.uniform(k1, (N, 3), jnp.float32) - 0.5)
    scales = SCALE_MAX * jax.random.uniform(k2, (N, 3), jnp.float32)
    u = jax.random.uniform(k3, (N, 1), jnp.float32)
    v = jax.random.uniform(k4, (N, 1), jnp.float32)
    w = jax.random.uniform(k5, (N, 1), jnp.float32)
    quats = jnp.concatenate(
        [
            jnp.sqrt(1.0 - u) * jnp.sin(2.0 * math.pi * v),
            jnp.sqrt(1.0 - u) * jnp.cos(2.0 * math.pi * v),
            jnp.sqrt(u) * jnp.sin(2.0 * math.pi * w),
            jnp.sqrt(u) * jnp.cos(2.0 * math.pi * w),
        ],
        axis=-1,
    )
    rgbs = jnp.ones((N, 3), jnp.float32) * 0.5
    opacities = jnp.zeros((N, 1), jnp.float32)
    latent = jnp.concatenate([means, scales, quats, rgbs, opacities], axis=-1)  # (N, 14)
    background = jnp.zeros((3,), jnp.float32)  # nn.Parameter([0, 0, 0])

    render = jax.jit(functools.partial(render_gaussians, height=HEIGHT, width=WIDTH,
                                       row_tile=32, chunk=8))
    img = render(latent, background)
    img = jax.block_until_ready(img)
    assert img.shape == (HEIGHT, WIDTH, 3) and img.dtype == jnp.float32
    assert bool(jnp.all(jnp.isfinite(img)))
    print("KERNEL_OK")
</pallas_src>

<mosaic_0001>
module attributes {stable_mosaic.version = 11 : i64} {
  func.func @_preprocess_kernel(%arg0: memref<14x128xf32, #tpu.memory_space<vmem>>, %arg1: memref<12x128xf32, #tpu.memory_space<vmem>>) attributes {dimension_semantics = [], scalar_prefetch = 0 : i64, scratch_operands = 0 : i64, tpu.core_type = #tpu.core_type<tc>} {
    %c0 = arith.constant 0 : index
    %c0_0 = arith.constant 0 : index
    %0 = vector.load %arg0[%c0, %c0_0] : memref<14x128xf32, #tpu.memory_space<vmem>>, vector<14x128xf32>
    %1 = vector.extract_strided_slice %0 {offsets = [0, 0], sizes = [1, 128], strides = [1, 1]} : vector<14x128xf32> to vector<1x128xf32>
    %2 = vector.extract_strided_slice %0 {offsets = [1, 0], sizes = [1, 128], strides = [1, 1]} : vector<14x128xf32> to vector<1x128xf32>
    %3 = vector.extract_strided_slice %0 {offsets = [2, 0], sizes = [1, 128], strides = [1, 1]} : vector<14x128xf32> to vector<1x128xf32>
    %4 = vector.extract_strided_slice %0 {offsets = [3, 0], sizes = [1, 128], strides = [1, 1]} : vector<14x128xf32> to vector<1x128xf32>
    %5 = vector.extract_strided_slice %0 {offsets = [4, 0], sizes = [1, 128], strides = [1, 1]} : vector<14x128xf32> to vector<1x128xf32>
    %6 = vector.extract_strided_slice %0 {offsets = [5, 0], sizes = [1, 128], strides = [1, 1]} : vector<14x128xf32> to vector<1x128xf32>
    %7 = vector.extract_strided_slice %0 {offsets = [6, 0], sizes = [1, 128], strides = [1, 1]} : vector<14x128xf32> to vector<1x128xf32>
    %8 = vector.extract_strided_slice %0 {offsets = [7, 0], sizes = [1, 128], strides = [1, 1]} : vector<14x128xf32> to vector<1x128xf32>
    %9 = vector.extract_strided_slice %0 {offsets = [8, 0], sizes = [1, 128], strides = [1, 1]} : vector<14x128xf32> to vector<1x128xf32>
    %10 = vector.extract_strided_slice %0 {offsets = [9, 0], sizes = [1, 128], strides = [1, 1]} : vector<14x128xf32> to vector<1x128xf32>
    %11 = vector.extract_strided_slice %0 {offsets = [10, 0], sizes = [1, 128], strides = [1, 1]} : vector<14x128xf32> to vector<1x128xf32>
    %12 = vector.extract_strided_slice %0 {offsets = [11, 0], sizes = [1, 128], strides = [1, 1]} : vector<14x128xf32> to vector<1x128xf32>
    %13 = vector.extract_strided_slice %0 {offsets = [12, 0], sizes = [1, 128], strides = [1, 1]} : vector<14x128xf32> to vector<1x128xf32>
    %14 = vector.extract_strided_slice %0 {offsets = [13, 0], sizes = [1, 128], strides = [1, 1]} : vector<14x128xf32> to vector<1x128xf32>
    %15 = arith.mulf %7, %7 : vector<1x128xf32>
    %16 = arith.mulf %8, %8 : vector<1x128xf32>
    %17 = arith.addf %15, %16 : vector<1x128xf32>
    %18 = arith.mulf %9, %9 : vector<1x128xf32>
    %19 = arith.addf %17, %18 : vector<1x128xf32>
    %20 = arith.mulf %10, %10 : vector<1x128xf32>
    %21 = arith.addf %19, %20 : vector<1x128xf32>
    %cst = arith.constant 9.99999996E-13 : f32
    %22 = vector.broadcast %cst : f32 to vector<1x128xf32>
    %23 = arith.addf %21, %22 : vector<1x128xf32>
    %24 = math.rsqrt %23 : vector<1x128xf32>
    %25 = arith.mulf %7, %24 : vector<1x128xf32>
    %26 = arith.mulf %8, %24 : vector<1x128xf32>
    %27 = arith.mulf %9, %24 : vector<1x128xf32>
    %28 = arith.mulf %10, %24 : vector<1x128xf32>
    %cst_1 = arith.constant 2.000000e+00 : f32
    %29 = vector.broadcast %cst_1 : f32 to vector<1x128xf32>
    %30 = arith.mulf %29, %14 : vector<1x128xf32>
    %31 = arith.negf %30 : vector<1x128xf32>
    %32 = math.exp %31 : vector<1x128xf32>
    %cst_2 = arith.constant 1.000000e+00 : f32
    %33 = vector.broadcast %cst_2 : f32 to vector<1x128xf32>
    %34 = arith.addf %33, %32 : vector<1x128xf32>
    %35 = arith.divf %33, %34 : vector<1x128xf32>
    %36 = arith.mulf %27, %27 : vector<1x128xf32>
    %37 = arith.mulf %28, %28 : vector<1x128xf32>
    %38 = arith.addf %36, %37 : vector<1x128xf32>
    %cst_3 = arith.constant 2.000000e+00 : f32
    %39 = vector.broadcast %cst_3 : f32 to vector<1x128xf32>
    %40 = arith.mulf %39, %38 : vector<1x128xf32>
    %cst_4 = arith.constant 1.000000e+00 : f32
    %41 = vector.broadcast %cst_4 : f32 to vector<1x128xf32>
    %42 = arith.subf %41, %40 : vector<1x128xf32>
    %43 = arith.mulf %26, %27 : vector<1x128xf32>
    %44 = arith.mulf %25, %28 : vector<1x128xf32>
    %45 = arith.subf %43, %44 : vector<1x128xf32>
    %cst_5 = arith.constant 2.000000e+00 : f32
    %46 = vector.broadcast %cst_5 : f32 to vector<1x128xf32>
    %47 = arith.mulf %46, %45 : vector<1x128xf32>
    %48 = arith.mulf %26, %28 : vector<1x128xf32>
    %49 = arith.mulf %25, %27 : vector<1x128xf32>
    %50 = arith.addf %48, %49 : vector<1x128xf32>
    %cst_6 = arith.constant 2.000000e+00 : f32
    %51 = vector.broadcast %cst_6 : f32 to vector<1x128xf32>
    %52 = arith.mulf %51, %50 : vector<1x128xf32>
    %53 = arith.mulf %26, %27 : vector<1x128xf32>
    %54 = arith.mulf %25, %28 : vector<1x128xf32>
    %55 = arith.addf %53, %54 : vector<1x128xf32>
    %cst_7 = arith.constant 2.000000e+00 : f32
    %56 = vector.broadcast %cst_7 : f32 to vector<1x128xf32>
    %57 = arith.mulf %56, %55 : vector<1x128xf32>
    %58 = arith.mulf %26, %26 : vector<1x128xf32>
    %59 = arith.mulf %28, %28 : vector<1x128xf32>
    %60 = arith.addf %58, %59 : vector<1x128xf32>
    %cst_8 = arith.constant 2.000000e+00 : f32
    %61 = vector.broadcast %cst_8 : f32 to vector<1x128xf32>
    %62 = arith.mulf %61, %60 : vector<1x128xf32>
    %cst_9 = arith.constant 1.000000e+00 : f32
    %63 = vector.broadcast %cst_9 : f32 to vector<1x128xf32>
    %64 = arith.subf %63, %62 : vector<1x128xf32>
    %65 = arith.mulf %27, %28 : vector<1x128xf32>
    %66 = arith.mulf %25, %26 : vector<1x128xf32>
    %67 = arith.subf %65, %66 : vector<1x128xf32>
    %cst_10 = arith.constant 2.000000e+00 : f32
    %68 = vector.broadcast %cst_10 : f32 to vector<1x128xf32>
    %69 = arith.mulf %68, %67 : vector<1x128xf32>
    %70 = arith.mulf %26, %28 : vector<1x128xf32>
    %71 = arith.mulf %25, %27 : vector<1x128xf32>
    %72 = arith.subf %70, %71 : vector<1x128xf32>
    %cst_11 = arith.constant 2.000000e+00 : f32
    %73 = vector.broadcast %cst_11 : f32 to vector<1x128xf32>
    %74 = arith.mulf %73, %72 : vector<1x128xf32>
    %75 = arith.mulf %27, %28 : vector<1x128xf32>
    %76 = arith.mulf %25, %26 : vector<1x128xf32>
    %77 = arith.addf %75, %76 : vector<1x128xf32>
    %cst_12 = arith.constant 2.000000e+00 : f32
    %78 = vector.broadcast %cst_12 : f32 to vector<1x128xf32>
    %79 = arith.mulf %78, %77 : vector<1x128xf32>
    %80 = arith.mulf %26, %26 : vector<1x128xf32>
    %81 = arith.mulf %27, %27 : vector<1x128xf32>
    %82 = arith.addf %80, %81 : vector<1x128xf32>
    %cst_13 = arith.constant 2.000000e+00 : f32
    %83 = vector.broadcast %cst_13 : f32 to vector<1x128xf32>
    %84 = arith.mulf %83, %82 : vector<1x128xf32>
    %cst_14 = arith.constant 1.000000e+00 : f32
    %85 = vector.broadcast %cst_14 : f32 to vector<1x128xf32>
    %86 = arith.subf %85, %84 : vector<1x128xf32>
    %87 = arith.mulf %4, %4 : vector<1x128xf32>
    %88 = arith.mulf %5, %5 : vector<1x128xf32>
    %89 = arith.mulf %6, %6 : vector<1x128xf32>
    %90 = arith.mulf %42, %42 : vector<1x128xf32>
    %91 = arith.mulf %90, %87 : vector<1x128xf32>
    %92 = arith.mulf %47, %47 : vector<1x128xf32>
    %93 = arith.mulf %92, %88 : vector<1x128xf32>
    %94 = arith.addf %91, %93 : vector<1x128xf32>
    %95 = arith.mulf %52, %52 : vector<1x128xf32>
    %96 = arith.mulf %95, %89 : vector<1x128xf32>
    %97 = arith.addf %94, %96 : vector<1x128xf32>
    %98 = arith.mulf %42, %74 : vector<1x128xf32>
    %99 = arith.mulf %98, %87 : vector<1x128xf32>
    %100 = arith.mulf %47, %79 : vector<1x128xf32>
    %101 = arith.mulf %100, %88 : vector<1x128xf32>
    %102 = arith.addf %99, %101 : vector<1x128xf32>
    %103 = arith.mulf %52, %86 : vector<1x128xf32>
    %104 = arith.mulf %103, %89 : vector<1x128xf32>
    %105 = arith.addf %102, %104 : vector<1x128xf32>
    %106 = arith.mulf %42, %57 : vector<1x128xf32>
    %107 = arith.mulf %106, %87 : vector<1x128xf32>
    %108 = arith.mulf %47, %64 : vector<1x128xf32>
    %109 = arith.mulf %108, %88 : vector<1x128xf32>
    %110 = arith.addf %107, %109 : vector<1x128xf32>
    %111 = arith.mulf %52, %69 : vector<1x128xf32>
    %112 = arith.mulf %111, %89 : vector<1x128xf32>
    %113 = arith.addf %110, %112 : vector<1x128xf32>
    %114 = arith.mulf %57, %57 : vector<1x128xf32>
    %115 = arith.mulf %114, %87 : vector<1x128xf32>
    %116 = arith.mulf %64, %64 : vector<1x128xf32>
    %117 = arith.mulf %116, %88 : vector<1x128xf32>
    %118 = arith.addf %115, %117 : vector<1x128xf32>
    %119 = arith.mulf %69, %69 : vector<1x128xf32>
    %120 = arith.mulf %119, %89 : vector<1x128xf32>
    %121 = arith.addf %118, %120 : vector<1x128xf32>
    %122 = arith.mulf %57, %74 : vector<1x128xf32>
    %123 = arith.mulf %122, %87 : vector<1x128xf32>
    %124 = arith.mulf %64, %79 : vector<1x128xf32>
    %125 = arith.mulf %124, %88 : vector<1x128xf32>
    %126 = arith.addf %123, %125 : vector<1x128xf32>
    %127 = arith.mulf %69, %86 : vector<1x128xf32>
    %128 = arith.mulf %127, %89 : vector<1x128xf32>
    %129 = arith.addf %126, %128 : vector<1x128xf32>
    %130 = arith.mulf %74, %74 : vector<1x128xf32>
    %131 = arith.mulf %130, %87 : vector<1x128xf32>
    %132 = arith.mulf %79, %79 : vector<1x128xf32>
    %133 = arith.mulf %132, %88 : vector<1x128xf32>
    %134 = arith.addf %131, %133 : vector<1x128xf32>
    %135 = arith.mulf %86, %86 : vector<1x128xf32>
    %136 = arith.mulf %135, %89 : vector<1x128xf32>
    %137 = arith.addf %134, %136 : vector<1x128xf32>
    %cst_15 = arith.constant 0.00999999977 : f32
    %138 = vector.broadcast %cst_15 : f32 to vector<1x128xf32>
    %139 = arith.cmpf ogt, %3, %138 : vector<1x128xf32>
    %cst_16 = arith.constant 1.000000e+00 : f32
    %140 = vector.broadcast %cst_16 : f32 to vector<1x128xf32>
    %141 = arith.select %139, %3, %140 : vector<1x128xi1>, vector<1x128xf32>
    %cst_17 = arith.constant 1.280000e+02 : f32
    %142 = vector.broadcast %cst_17 : f32 to vector<1x128xf32>
    %143 = arith.divf %142, %141 : vector<1x128xf32>
    %cst_18 = arith.constant 1.280000e+02 : f32
    %144 = vector.broadcast %cst_18 : f32 to vector<1x128xf32>
    %145 = arith.divf %144, %141 : vector<1x128xf32>
    %cst_19 = arith.constant -1.280000e+02 : f32
    %146 = vector.broadcast %cst_19 : f32 to vector<1x128xf32>
    %147 = arith.mulf %146, %1 : vector<1x128xf32>
    %148 = arith.mulf %141, %141 : vector<1x128xf32>
    %149 = arith.divf %147, %148 : vector<1x128xf32>
    %cst_20 = arith.constant -1.280000e+02 : f32
    %150 = vector.broadcast %cst_20 : f32 to vector<1x128xf32>
    %151 = arith.mulf %150, %2 : vector<1x128xf32>
    %152 = arith.mulf %141, %141 : vector<1x128xf32>
    %153 = arith.divf %151, %152 : vector<1x128xf32>
    %154 = arith.mulf %143, %143 : vector<1x128xf32>
    %155 = arith.mulf %154, %97 : vector<1x128xf32>
    %cst_21 = arith.constant 2.000000e+00 : f32
    %156 = vector.broadcast %cst_21 : f32 to vector<1x128xf32>
    %157 = arith.mulf %156, %143 : vector<1x128xf32>
    %158 = arith.mulf %157, %149 : vector<1x128xf32>
    %159 = arith.mulf %158, %105 : vector<1x128xf32>
    %160 = arith.addf %155, %159 : vector<1x128xf32>
    %161 = arith.mulf %149, %149 : vector<1x128xf32>
    %162 = arith.mulf %161, %137 : vector<1x128xf32>
    %163 = arith.addf %160, %162 : vector<1x128xf32>
    %cst_22 = arith.constant 3.000000e-01 : f32
    %164 = vector.broadcast %cst_22 : f32 to vector<1x128xf32>
    %165 = arith.addf %163, %164 : vector<1x128xf32>
    %166 = arith.mulf %143, %145 : vector<1x128xf32>
    %167 = arith.mulf %166, %113 : vector<1x128xf32>
    %168 = arith.mulf %143, %153 : vector<1x128xf32>
    %169 = arith.mulf %168, %105 : vector<1x128xf32>
    %170 = arith.addf %167, %169 : vector<1x128xf32>
    %171 = arith.mulf %149, %145 : vector<1x128xf32>
    %172 = arith.mulf %171, %129 : vector<1x128xf32>
    %173 = arith.addf %170, %172 : vector<1x128xf32>
    %174 = arith.mulf %149, %153 : vector<1x128xf32>
    %175 = arith.mulf %174, %137 : vector<1x128xf32>
    %176 = arith.addf %173, %175 : vector<1x128xf32>
    %177 = arith.mulf %145, %145 : vector<1x128xf32>
    %178 = arith.mulf %177, %121 : vector<1x128xf32>
    %cst_23 = arith.constant 2.000000e+00 : f32
    %179 = vector.broadcast %cst_23 : f32 to vector<1x128xf32>
    %180 = arith.mulf %179, %145 : vector<1x128xf32>
    %181 = arith.mulf %180, %153 : vector<1x128xf32>
    %182 = arith.mulf %181, %129 : vector<1x128xf32>
    %183 = arith.addf %178, %182 : vector<1x128xf32>
    %184 = arith.mulf %153, %153 : vector<1x128xf32>
    %185 = arith.mulf %184, %137 : vector<1x128xf32>
    %186 = arith.addf %183, %185 : vector<1x128xf32>
    %cst_24 = arith.constant 3.000000e-01 : f32
    %187 = vector.broadcast %cst_24 : f32 to vector<1x128xf32>
    %188 = arith.addf %186, %187 : vector<1x128xf32>
    %189 = arith.mulf %165, %188 : vector<1x128xf32>
    %190 = arith.mulf %176, %176 : vector<1x128xf32>
    %191 = arith.subf %189, %190 : vector<1x128xf32>
    %cst_25 = arith.constant 9.99999996E-13 : f32
    %192 = vector.broadcast %cst_25 : f32 to vector<1x128xf32>
    %193 = arith.cmpf ogt, %191, %192 : vector<1x128xf32>
    %cst_26 = arith.constant 1.000000e+00 : f32
    %194 = vector.broadcast %cst_26 : f32 to vector<1x128xf32>
    %195 = arith.select %193, %191, %194 : vector<1x128xi1>, vector<1x128xf32>
    %cst_27 = arith.constant 1.000000e+00 : f32
    %196 = vector.broadcast %cst_27 : f32 to vector<1x128xf32>
    %197 = arith.divf %196, %195 : vector<1x128xf32>
    %cst_28 = arith.constant 5.000000e-01 : f32
    %198 = vector.broadcast %cst_28 : f32 to vector<1x128xf32>
    %199 = arith.mulf %198, %188 : vector<1x128xf32>
    %200 = arith.mulf %199, %197 : vector<1x128xf32>
    %cst_29 = arith.constant 0.000000e+00 : f32
    %201 = vector.broadcast %cst_29 : f32 to vector<1x128xf32>
    %202 = arith.subf %201, %176 : vector<1x128xf32>
    %203 = arith.mulf %202, %197 : vector<1x128xf32>
    %cst_30 = arith.constant 5.000000e-01 : f32
    %204 = vector.broadcast %cst_30 : f32 to vector<1x128xf32>
    %205 = arith.mulf %204, %165 : vector<1x128xf32>
    %206 = arith.mulf %205, %197 : vector<1x128xf32>
    %cst_31 = arith.constant 1.280000e+02 : f32
    %207 = vector.broadcast %cst_31 : f32 to vector<1x128xf32>
    %208 = arith.mulf %207, %1 : vector<1x128xf32>
    %209 = arith.divf %208, %141 : vector<1x128xf32>
    %cst_32 = arith.constant 1.280000e+02 : f32
    %210 = vector.broadcast %cst_32 : f32 to vector<1x128xf32>
    %211 = arith.addf %209, %210 : vector<1x128xf32>
    %cst_33 = arith.constant 1.280000e+02 : f32
    %212 = vector.broadcast %cst_33 : f32 to vector<1x128xf32>
    %213 = arith.mulf %212, %2 : vector<1x128xf32>
    %214 = arith.divf %213, %141 : vector<1x128xf32>
    %cst_34 = arith.constant 3.200000e+01 : f32
    %215 = vector.broadcast %cst_34 : f32 to vector<1x128xf32>
    %216 = arith.addf %214, %215 : vector<1x128xf32>
    %217 = arith.andi %139, %193 : vector<1x128xi1>
    %218 = arith.extui %217 : vector<1x128xi1> to vector<1x128xi32>
    %219 = arith.sitofp %218 : vector<1x128xi32> to vector<1x128xf32>
    %cst_35 = arith.constant 0.000000e+00 : f32
    %220 = vector.broadcast %cst_35 : f32 to vector<1x128xf32>
    %221 = arith.maximumf %188, %220 : vector<1x128xf32>
    %222 = math.sqrt %221 : vector<1x128xf32>
    %cst_36 = arith.constant 3.340000e+00 : f32
    %223 = vector.broadcast %cst_36 : f32 to vector<1x128xf32>
    %224 = arith.mulf %223, %222 : vector<1x128xf32>
    %cst_37 = arith.constant 1.000000e+00 : f32
    %225 = vector.broadcast %cst_37 : f32 to vector<1x128xf32>
    %226 = arith.addf %224, %225 : vector<1x128xf32>
    %227 = tpu.concatenate %211, %216, %200, %203, %206, %35, %11, %12, %13, %219, %3, %226 in 0 : vector<1x128xf32>, vector<1x128xf32>, vector<1x128xf32>, vector<1x128xf32>, vector<1x128xf32>, vector<1x128xf32>, vector<1x128xf32>, vector<1x128xf32>, vector<1x128xf32>, vector<1x128xf32>, vector<1x128xf32>, vector<1x128xf32> -> vector<12x128xf32>
    %c0_38 = arith.constant 0 : index
    %c0_39 = arith.constant 0 : index
    %228 = vector.load %arg1[%c0_38, %c0_39] : memref<12x128xf32, #tpu.memory_space<vmem>>, vector<12x128xf32>
    tpu.vector_store %arg1[%c0_38, %c0_39], %227 {strides = array<i32>} : memref<12x128xf32, #tpu.memory_space<vmem>>, vector<12x128xf32>,
    return
  }
}

module attributes {stable_mosaic.version = 11 : i64} {
  func.func @_render_kernel(%arg0: i32, %arg1: memref<2xi32, #tpu.memory_space<smem>>, %arg2: memref<256xi32, #tpu.memory_space<smem>>, %arg3: memref<9x129xf32, #tpu.memory_space<smem>>, %arg4: memref<3xf32, #tpu.memory_space<smem>>, %arg5: memref<3x32x256xf32, #tpu.memory_space<vmem>>, %arg6: memref<32x256xf32, #tpu.memory_space<vmem>>, %arg7: memref<32x256xf32, #tpu.memory_space<vmem>>, %arg8: memref<32x256xf32, #tpu.memory_space<vmem>>, %arg9: memref<32x256xf32, #tpu.memory_space<vmem>>) attributes {dimension_semantics = [#tpu.dimension_semantics<parallel>], iteration_bounds = array<i64: 2>, scalar_prefetch = 2 : i64, scratch_operands = 4 : i64, tpu.core_type = #tpu.core_type<tc>, window_params = [{transform_indices = @transform_0, window_bounds = array<i64: 9, 129>}, {transform_indices = @transform_1, window_bounds = array<i64: 3>}, {transform_indices = @transform_2, window_bounds = array<i64: 3, 32, 256>}]} {
    %0 = tpu.iota {dimensions = array<i32: 0>} : vector<32x256xi32>
    %1 = tpu.iota {dimensions = array<i32: 1>} : vector<32x256xi32>
    %2 = arith.sitofp %0 : vector<32x256xi32> to vector<32x256xf32>
    %c32_i32 = arith.constant 32 : i32
    %3 = arith.muli %arg0, %c32_i32 : i32
    %4 = arith.sitofp %3 : i32 to f32
    %cst = arith.constant 5.000000e-01 : f32
    %5 = arith.addf %4, %cst : f32
    %6 = vector.broadcast %5 : f32 to vector<32x256xf32>
    %7 = arith.addf %2, %6 : vector<32x256xf32>
    %8 = arith.sitofp %1 : vector<32x256xi32> to vector<32x256xf32>
    %cst_0 = arith.constant 5.000000e-01 : f32
    %9 = vector.broadcast %cst_0 : f32 to vector<32x256xf32>
    %10 = arith.addf %8, %9 : vector<32x256xf32>
    %cst_1 = arith.constant 0.000000e+00 : f32
    %11 = vector.broadcast %cst_1 : f32 to vector<32x256xf32>
    %c0 = arith.constant 0 : index
    %c0_2 = arith.constant 0 : index
    %12 = vector.load %arg6[%c0, %c0_2] : memref<32x256xf32, #tpu.memory_space<vmem>>, vector<32x256xf32>
    tpu.vector_store %arg6[%c0, %c0_2], %11 {strides = array<i32>} : memref<32x256xf32, #tpu.memory_space<vmem>>, vector<32x256xf32>,
    %cst_3 = arith.constant 0.000000e+00 : f32
    %13 = vector.broadcast %cst_3 : f32 to vector<32x256xf32>
    %c0_4 = arith.constant 0 : index
    %c0_5 = arith.constant 0 : index
    %14 = vector.load %arg7[%c0_4, %c0_5] : memref<32x256xf32, #tpu.memory_space<vmem>>, vector<32x256xf32>
    tpu.vector_store %arg7[%c0_4, %c0_5], %13 {strides = array<i32>} : memref<32x256xf32, #tpu.memory_space<vmem>>, vector<32x256xf32>,
    %cst_6 = arith.constant 0.000000e+00 : f32
    %15 = vector.broadcast %cst_6 : f32 to vector<32x256xf32>
    %c0_7 = arith.constant 0 : index
    %c0_8 = arith.constant 0 : index
    %16 = vector.load %arg8[%c0_7, %c0_8] : memref<32x256xf32, #tpu.memory_space<vmem>>, vector<32x256xf32>
    tpu.vector_store %arg8[%c0_7, %c0_8], %15 {strides = array<i32>} : memref<32x256xf32, #tpu.memory_space<vmem>>, vector<32x256xf32>,
    %cst_9 = arith.constant 1.000000e+00 : f32
    %17 = vector.broadcast %cst_9 : f32 to vector<32x256xf32>
    %c0_10 = arith.constant 0 : index
    %c0_11 = arith.constant 0 : index
    %18 = vector.load %arg9[%c0_10, %c0_11] : memref<32x256xf32, #tpu.memory_space<vmem>>, vector<32x256xf32>
    tpu.vector_store %arg9[%c0_10, %c0_11], %17 {strides = array<i32>} : memref<32x256xf32, #tpu.memory_space<vmem>>, vector<32x256xf32>,
    %19 = arith.index_cast %arg0 : i32 to index
    %20 = memref.load %arg1[%19] : memref<2xi32, #tpu.memory_space<smem>>
    %c128_i32 = arith.constant 128 : i32
    %21 = arith.muli %arg0, %c128_i32 : i32
    %c0_i32 = arith.constant 0 : i32
    %c0_i32_12 = arith.constant 0 : i32
    %22 = arith.subi %20, %c0_i32_12 : i32
    %23 = arith.addi %c0_i32_12, %22 : i32
    %c1_i32 = arith.constant 1 : i32
    scf.for %arg10 = %c0_i32_12 to %23 step %c1_i32  : i32 {
      %c0_31 = arith.constant 0 : index
      %c0_32 = arith.constant 0 : index
      %49 = vector.load %arg9[%c0_31, %c0_32] : memref<32x256xf32, #tpu.memory_space<vmem>>, vector<32x256xf32>
      %50 = vector.shape_cast %49 : vector<32x256xf32> to vector<1x32x256xf32>
      %cst_33 = arith.constant dense<0xFF800000> : vector<1xf32>
      %51 = vector.multi_reduction <maximumf>, %50, %cst_33 [1, 2] : vector<1x32x256xf32> to vector<1xf32>
      %52 = vector.shape_cast %51 : vector<1xf32> to vector<1x1x1xf32>
      %53 = vector.extract %52[0, 0, 0] : f32 from vector<1x1x1xf32>
      %cst_34 = arith.constant 9.99999974E-5 : f32
      %54 = arith.cmpf oge, %53, %cst_34 : f32
      %55 = arith.extui %54 : i1 to i32
      %c0_i32_35 = arith.constant 0 : i32
      %56 = arith.cmpi ne, %55, %c0_i32_35 : i32
      scf.if %56 {
        %c0_36 = arith.constant 0 : index
        %c0_37 = arith.constant 0 : index
        %57 = vector.load %arg6[%c0_36, %c0_37] : memref<32x256xf32, #tpu.memory_space<vmem>>, vector<32x256xf32>
        %c0_38 = arith.constant 0 : index
        %c0_39 = arith.constant 0 : index
        %58 = vector.load %arg7[%c0_38, %c0_39] : memref<32x256xf32, #tpu.memory_space<vmem>>, vector<32x256xf32>
        %c0_40 = arith.constant 0 : index
        %c0_41 = arith.constant 0 : index
        %59 = vector.load %arg8[%c0_40, %c0_41] : memref<32x256xf32, #tpu.memory_space<vmem>>, vector<32x256xf32>
        %c8_i32 = arith.constant 8 : i32
        %60 = arith.muli %arg10, %c8_i32 : i32
        %61 = arith.addi %21, %60 : i32
        %c0_i32_42 = arith.constant 0 : i32
        %62 = arith.addi %61, %c0_i32_42 : i32
        %63 = arith.index_cast %62 : i32 to index
        %64 = memref.load %arg2[%63] : memref<256xi32, #tpu.memory_space<smem>>
        %c0_43 = arith.constant 0 : index
        %65 = arith.index_cast %64 : i32 to index
        %66 = memref.load %arg3[%c0_43, %65] : memref<9x129xf32, #tpu.memory_space<smem>>
        %c1_44 = arith.constant 1 : index
        %67 = arith.index_cast %64 : i32 to index
        %68 = memref.load %arg3[%c1_44, %67] : memref<9x129xf32, #tpu.memory_space<smem>>
        %c2_45 = arith.constant 2 : index
        %69 = arith.index_cast %64 : i32 to index
        %70 = memref.load %arg3[%c2_45, %69] : memref<9x129xf32, #tpu.memory_space<smem>>
        %c3 = arith.constant 3 : index
        %71 = arith.index_cast %64 : i32 to index
        %72 = memref.load %arg3[%c3, %71] : memref<9x129xf32, #tpu.memory_space<smem>>
        %c4 = arith.constant 4 : index
        %73 = arith.index_cast %64 : i32 to index
        %74 = memref.load %arg3[%c4, %73] : memref<9x129xf32, #tpu.memory_space<smem>>
        %c5 = arith.constant 5 : index
        %75 = arith.index_cast %64 : i32 to index
        %76 = memref.load %arg3[%c5, %75] : memref<9x129xf32, #tpu.memory_space<smem>>
        %c6 = arith.constant 6 : index
        %77 = arith.index_cast %64 : i32 to index
        %78 = memref.load %arg3[%c6, %77] : memref<9x129xf32, #tpu.memory_space<smem>>
        %c7 = arith.constant 7 : index
        %79 = arith.index_cast %64 : i32 to index
        %80 = memref.load %arg3[%c7, %79] : memref<9x129xf32, #tpu.memory_space<smem>>
        %c8 = arith.constant 8 : index
        %81 = arith.index_cast %64 : i32 to index
        %82 = memref.load %arg3[%c8, %81] : memref<9x129xf32, #tpu.memory_space<smem>>
        %83 = vector.broadcast %66 : f32 to vector<32x256xf32>
        %84 = arith.subf %10, %83 : vector<32x256xf32>
        %85 = vector.broadcast %68 : f32 to vector<32x256xf32>
        %86 = arith.subf %7, %85 : vector<32x256xf32>
        %87 = vector.broadcast %70 : f32 to vector<32x256xf32>
        %88 = arith.mulf %87, %84 : vector<32x256xf32>
        %89 = vector.broadcast %72 : f32 to vector<32x256xf32>
        %90 = arith.mulf %89, %86 : vector<32x256xf32>
        %91 = arith.addf %88, %90 : vector<32x256xf32>
        %92 = arith.mulf %91, %84 : vector<32x256xf32>
        %93 = vector.broadcast %74 : f32 to vector<32x256xf32>
        %94 = arith.mulf %93, %86 : vector<32x256xf32>
        %95 = arith.mulf %94, %86 : vector<32x256xf32>
        %96 = arith.addf %92, %95 : vector<32x256xf32>
        %cst_46 = arith.constant 0.000000e+00 : f32
        %97 = vector.broadcast %cst_46 : f32 to vector<32x256xf32>
        %98 = arith.subf %97, %96 : vector<32x256xf32>
        %99 = math.exp %98 : vector<32x256xf32>
        %100 = vector.broadcast %76 : f32 to vector<32x256xf32>
        %101 = arith.mulf %100, %99 : vector<32x256xf32>
        %cst_47 = arith.constant 9.990000e-01 : f32
        %102 = vector.broadcast %cst_47 : f32 to vector<32x256xf32>
        %103 = arith.minimumf %101, %102 : vector<32x256xf32>
        %cst_48 = arith.constant 0.000000e+00 : f32
        %104 = vector.broadcast %cst_48 : f32 to vector<32x256xf32>
        %105 = arith.cmpf oge, %96, %104 : vector<32x256xf32>
        %cst_49 = arith.constant 0.00392156886 : f32
        %106 = vector.broadcast %cst_49 : f32 to vector<32x256xf32>
        %107 = arith.cmpf oge, %103, %106 : vector<32x256xf32>
        %108 = arith.andi %105, %107 : vector<32x256xi1>
        %cst_50 = arith.constant 0.000000e+00 : f32
        %109 = vector.broadcast %cst_50 : f32 to vector<32x256xf32>
        %110 = arith.select %108, %103, %109 : vector<32x256xi1>, vector<32x256xf32>
        %111 = arith.mulf %49, %110 : vector<32x256xf32>
        %112 = vector.broadcast %78 : f32 to vector<32x256xf32>
        %113 = arith.mulf %111, %112 : vector<32x256xf32>
        %114 = arith.addf %57, %113 : vector<32x256xf32>
        %115 = vector.broadcast %80 : f32 to vector<32x256xf32>
        %116 = arith.mulf %111, %115 : vector<32x256xf32>
        %117 = arith.addf %58, %116 : vector<32x256xf32>
        %118 = vector.broadcast %82 : f32 to vector<32x256xf32>
        %119 = arith.mulf %111, %118 : vector<32x256xf32>
        %120 = arith.addf %59, %119 : vector<32x256xf32>
        %cst_51 = arith.constant 1.000000e+00 : f32
        %121 = vector.broadcast %cst_51 : f32 to vector<32x256xf32>
        %122 = arith.subf %121, %110 : vector<32x256xf32>
        %123 = arith.mulf %49, %122 : vector<32x256xf32>
        %c1_i32_52 = arith.constant 1 : i32
        %124 = arith.addi %61, %c1_i32_52 : i32
        %125 = arith.index_cast %124 : i32 to index
        %126 = memref.load %arg2[%125] : memref<256xi32, #tpu.memory_space<smem>>
        %c0_53 = arith.constant 0 : index
        %127 = arith.index_cast %126 : i32 to index
        %128 = memref.load %arg3[%c0_53, %127] : memref<9x129xf32, #tpu.memory_space<smem>>
        %c1_54 = arith.constant 1 : index
        %129 = arith.index_cast %126 : i32 to index
        %130 = memref.load %arg3[%c1_54, %129] : memref<9x129xf32, #tpu.memory_space<smem>>
        %c2_55 = arith.constant 2 : index
        %131 = arith.index_cast %126 : i32 to index
        %132 = memref.load %arg3[%c2_55, %131] : memref<9x129xf32, #tpu.memory_space<smem>>
        %c3_56 = arith.constant 3 : index
        %133 = arith.index_cast %126 : i32 to index
        %134 = memref.load %arg3[%c3_56, %133] : memref<9x129xf32, #tpu.memory_space<smem>>
        %c4_57 = arith.constant 4 : index
        %135 = arith.index_cast %126 : i32 to index
        %136 = memref.load %arg3[%c4_57, %135] : memref<9x129xf32, #tpu.memory_space<smem>>
        %c5_58 = arith.constant 5 : index
        %137 = arith.index_cast %126 : i32 to index
        %138 = memref.load %arg3[%c5_58, %137] : memref<9x129xf32, #tpu.memory_space<smem>>
        %c6_59 = arith.constant 6 : index
        %139 = arith.index_cast %126 : i32 to index
        %140 = memref.load %arg3[%c6_59, %139] : memref<9x129xf32, #tpu.memory_space<smem>>
        %c7_60 = arith.constant 7 : index
        %141 = arith.index_cast %126 : i32 to index
        %142 = memref.load %arg3[%c7_60, %141] : memref<9x129xf32, #tpu.memory_space<smem>>
        %c8_61 = arith.constant 8 : index
        %143 = arith.index_cast %126 : i32 to index
        %144 = memref.load %arg3[%c8_61, %143] : memref<9x129xf32, #tpu.memory_space<smem>>
        %145 = vector.broadcast %128 : f32 to vector<32x256xf32>
        %146 = arith.subf %10, %145 : vector<32x256xf32>
        %147 = vector.broadcast %130 : f32 to vector<32x256xf32>
        %148 = arith.subf %7, %147 : vector<32x256xf32>
        %149 = vector.broadcast %132 : f32 to vector<32x256xf32>
        %150 = arith.mulf %149, %146 : vector<32x256xf32>
        %151 = vector.broadcast %134 : f32 to vector<32x256xf32>
        %152 = arith.mulf %151, %148 : vector<32x256xf32>
        %153 = arith.addf %150, %152 : vector<32x256xf32>
        %154 = arith.mulf %153, %146 : vector<32x256xf32>
        %155 = vector.broadcast %136 : f32 to vector<32x256xf32>
        %156 = arith.mulf %155, %148 : vector<32x256xf32>
        %157 = arith.mulf %156, %148 : vector<32x256xf32>
        %158 = arith.addf %154, %157 : vector<32x256xf32>
        %cst_62 = arith.constant 0.000000e+00 : f32
        %159 = vector.broadcast %cst_62 : f32 to vector<32x256xf32>
        %160 = arith.subf %159, %158 : vector<32x256xf32>
        %161 = math.exp %160 : vector<32x256xf32>
        %162 = vector.broadcast %138 : f32 to vector<32x256xf32>
        %163 = arith.mulf %162, %161 : vector<32x256xf32>
        %cst_63 = arith.constant 9.990000e-01 : f32
        %164 = vector.broadcast %cst_63 : f32 to vector<32x256xf32>
        %165 = arith.minimumf %163, %164 : vector<32x256xf32>
        %cst_64 = arith.constant 0.000000e+00 : f32
        %166 = vector.broadcast %cst_64 : f32 to vector<32x256xf32>
        %167 = arith.cmpf oge, %158, %166 : vector<32x256xf32>
        %cst_65 = arith.constant 0.00392156886 : f32
        %168 = vector.broadcast %cst_65 : f32 to vector<32x256xf32>
        %169 = arith.cmpf oge, %165, %168 : vector<32x256xf32>
        %170 = arith.andi %167, %169 : vector<32x256xi1>
        %cst_66 = arith.constant 0.000000e+00 : f32
        %171 = vector.broadcast %cst_66 : f32 to vector<32x256xf32>
        %172 = arith.select %170, %165, %171 : vector<32x256xi1>, vector<32x256xf32>
        %173 = arith.mulf %123, %172 : vector<32x256xf32>
        %174 = vector.broadcast %140 : f32 to vector<32x256xf32>
        %175 = arith.mulf %173, %174 : vector<32x256xf32>
        %176 = arith.addf %114, %175 : vector<32x256xf32>
        %177 = vector.broadcast %142 : f32 to vector<32x256xf32>
        %178 = arith.mulf %173, %177 : vector<32x256xf32>
        %179 = arith.addf %117, %178 : vector<32x256xf32>
        %180 = vector.broadcast %144 : f32 to vector<32x256xf32>
        %181 = arith.mulf %173, %180 : vector<32x256xf32>
        %182 = arith.addf %120, %181 : vector<32x256xf32>
        %cst_67 = arith.constant 1.000000e+00 : f32
        %183 = vector.broadcast %cst_67 : f32 to vector<32x256xf32>
        %184 = arith.subf %183, %172 : vector<32x256xf32>
        %185 = arith.mulf %123, %184 : vector<32x256xf32>
        %c2_i32 = arith.constant 2 : i32
        %186 = arith.addi %61, %c2_i32 : i32
        %187 = arith.index_cast %186 : i32 to index
        %188 = memref.load %arg2[%187] : memref<256xi32, #tpu.memory_space<smem>>
        %c0_68 = arith.constant 0 : index
        %189 = arith.index_cast %188 : i32 to index
        %190 = memref.load %arg3[%c0_68, %189] : memref<9x129xf32, #tpu.memory_space<smem>>
        %c1_69 = arith.constant 1 : index
        %191 = arith.index_cast %188 : i32 to index
        %192 = memref.load %arg3[%c1_69, %191] : memref<9x129xf32, #tpu.memory_space<smem>>
        %c2_70 = arith.constant 2 : index
        %193 = arith.index_cast %188 : i32 to index
        %194 = memref.load %arg3[%c2_70, %193] : memref<9x129xf32, #tpu.memory_space<smem>>
        %c3_71 = arith.constant 3 : index
        %195 = arith.index_cast %188 : i32 to index
        %196 = memref.load %arg3[%c3_71, %195] : memref<9x129xf32, #tpu.memory_space<smem>>
        %c4_72 = arith.constant 4 : index
        %197 = arith.index_cast %188 : i32 to index
        %198 = memref.load %arg3[%c4_72, %197] : memref<9x129xf32, #tpu.memory_space<smem>>
        %c5_73 = arith.constant 5 : index
        %199 = arith.index_cast %188 : i32 to index
        %200 = memref.load %arg3[%c5_73, %199] : memref<9x129xf32, #tpu.memory_space<smem>>
        %c6_74 = arith.constant 6 : index
        %201 = arith.index_cast %188 : i32 to index
        %202 = memref.load %arg3[%c6_74, %201] : memref<9x129xf32, #tpu.memory_space<smem>>
        %c7_75 = arith.constant 7 : index
        %203 = arith.index_cast %188 : i32 to index
        %204 = memref.load %arg3[%c7_75, %203] : memref<9x129xf32, #tpu.memory_space<smem>>
        %c8_76 = arith.constant 8 : index
        %205 = arith.index_cast %188 : i32 to index
        %206 = memref.load %arg3[%c8_76, %205] : memref<9x129xf32, #tpu.memory_space<smem>>
        %207 = vector.broadcast %190 : f32 to vector<32x256xf32>
        %208 = arith.subf %10, %207 : vector<32x256xf32>
        %209 = vector.broadcast %192 : f32 to vector<32x256xf32>
        %210 = arith.subf %7, %209 : vector<32x256xf32>
        %211 = vector.broadcast %194 : f32 to vector<32x256xf32>
        %212 = arith.mulf %211, %208 : vector<32x256xf32>
        %213 = vector.broadcast %196 : f32 to vector<32x256xf32>
        %214 = arith.mulf %213, %210 : vector<32x256xf32>
        %215 = arith.addf %212, %214 : vector<32x256xf32>
        %216 = arith.mulf %215, %208 : vector<32x256xf32>
        %217 = vector.broadcast %198 : f32 to vector<32x256xf32>
        %218 = arith.mulf %217, %210 : vector<32x256xf32>
        %219 = arith.mulf %218, %210 : vector<32x256xf32>
        %220 = arith.addf %216, %219 : vector<32x256xf32>
        %cst_77 = arith.constant 0.000000e+00 : f32
        %221 = vector.broadcast %cst_77 : f32 to vector<32x256xf32>
        %222 = arith.subf %221, %220 : vector<32x256xf32>
        %223 = math.exp %222 : vector<32x256xf32>
        %224 = vector.broadcast %200 : f32 to vector<32x256xf32>
        %225 = arith.mulf %224, %223 : vector<32x256xf32>
        %cst_78 = arith.constant 9.990000e-01 : f32
        %226 = vector.broadcast %cst_78 : f32 to vector<32x256xf32>
        %227 = arith.minimumf %225, %226 : vector<32x256xf32>
        %cst_79 = arith.constant 0.000000e+00 : f32
        %228 = vector.broadcast %cst_79 : f32 to vector<32x256xf32>
        %229 = arith.cmpf oge, %220, %228 : vector<32x256xf32>
        %cst_80 = arith.constant 0.00392156886 : f32
        %230 = vector.broadcast %cst_80 : f32 to vector<32x256xf32>
        %231 = arith.cmpf oge, %227, %230 : vector<32x256xf32>
        %232 = arith.andi %229, %231 : vector<32x256xi1>
        %cst_81 = arith.constant 0.000000e+00 : f32
        %233 = vector.broadcast %cst_81 : f32 to vector<32x256xf32>
        %234 = arith.select %232, %227, %233 : vector<32x256xi1>, vector<32x256xf32>
        %235 = arith.mulf %185, %234 : vector<32x256xf32>
        %236 = vector.broadcast %202 : f32 to vector<32x256xf32>
        %237 = arith.mulf %235, %236 : vector<32x256xf32>
        %238 = arith.addf %176, %237 : vector<32x256xf32>
        %239 = vector.broadcast %204 : f32 to vector<32x256xf32>
        %240 = arith.mulf %235, %239 : vector<32x256xf32>
        %241 = arith.addf %179, %240 : vector<32x256xf32>
        %242 = vector.broadcast %206 : f32 to vector<32x256xf32>
        %243 = arith.mulf %235, %242 : vector<32x256xf32>
        %244 = arith.addf %182, %243 : vector<32x256xf32>
        %cst_82 = arith.constant 1.000000e+00 : f32
        %245 = vector.broadcast %cst_82 : f32 to vector<32x256xf32>
        %246 = arith.subf %245, %234 : vector<32x256xf32>
        %247 = arith.mulf %185, %246 : vector<32x256xf32>
        %c3_i32 = arith.constant 3 : i32
        %248 = arith.addi %61, %c3_i32 : i32
        %249 = arith.index_cast %248 : i32 to index
        %250 = memref.load %arg2[%249] : memref<256xi32, #tpu.memory_space<smem>>
        %c0_83 = arith.constant 0 : index
        %251 = arith.index_cast %250 : i32 to index
        %252 = memref.load %arg3[%c0_83, %251] : memref<9x129xf32, #tpu.memory_space<smem>>
        %c1_84 = arith.constant 1 : index
        %253 = arith.index_cast %250 : i32 to index
        %254 = memref.load %arg3[%c1_84, %253] : memref<9x129xf32, #tpu.memory_space<smem>>
        %c2_85 = arith.constant 2 : index
        %255 = arith.index_cast %250 : i32 to index
        %256 = memref.load %arg3[%c2_85, %255] : memref<9x129xf32, #tpu.memory_space<smem>>
        %c3_86 = arith.constant 3 : index
        %257 = arith.index_cast %250 : i32 to index
        %258 = memref.load %arg3[%c3_86, %257] : memref<9x129xf32, #tpu.memory_space<smem>>
        %c4_87 = arith.constant 4 : index
        %259 = arith.index_cast %250 : i32 to index
        %260 = memref.load %arg3[%c4_87, %259] : memref<9x129xf32, #tpu.memory_space<smem>>
        %c5_88 = arith.constant 5 : index
        %261 = arith.index_cast %250 : i32 to index
        %262 = memref.load %arg3[%c5_88, %261] : memref<9x129xf32, #tpu.memory_space<smem>>
        %c6_89 = arith.constant 6 : index
        %263 = arith.index_cast %250 : i32 to index
        %264 = memref.load %arg3[%c6_89, %263] : memref<9x129xf32, #tpu.memory_space<smem>>
        %c7_90 = arith.constant 7 : index
        %265 = arith.index_cast %250 : i32 to index
        %266 = memref.load %arg3[%c7_90, %265] : memref<9x129xf32, #tpu.memory_space<smem>>
        %c8_91 = arith.constant 8 : index
        %267 = arith.index_cast %250 : i32 to index
        %268 = memref.load %arg3[%c8_91, %267] : memref<9x129xf32, #tpu.memory_space<smem>>
        %269 = vector.broadcast %252 : f32 to vector<32x256xf32>
        %270 = arith.subf %10, %269 : vector<32x256xf32>
        %271 = vector.broadcast %254 : f32 to vector<32x256xf32>
        %272 = arith.subf %7, %271 : vector<32x256xf32>
        %273 = vector.broadcast %256 : f32 to vector<32x256xf32>
        %274 = arith.mulf %273, %270 : vector<32x256xf32>
        %275 = vector.broadcast %258 : f32 to vector<32x256xf32>
        %276 = arith.mulf %275, %272 : vector<32x256xf32>
        %277 = arith.addf %274, %276 : vector<32x256xf32>
        %278 = arith.mulf %277, %270 : vector<32x256xf32>
        %279 = vector.broadcast %260 : f32 to vector<32x256xf32>
        %280 = arith.mulf %279, %272 : vector<32x256xf32>
        %281 = arith.mulf %280, %272 : vector<32x256xf32>
        %282 = arith.addf %278, %281 : vector<32x256xf32>
        %cst_92 = arith.constant 0.000000e+00 : f32
        %283 = vector.broadcast %cst_92 : f32 to vector<32x256xf32>
        %284 = arith.subf %283, %282 : vector<32x256xf32>
        %285 = math.exp %284 : vector<32x256xf32>
        %286 = vector.broadcast %262 : f32 to vector<32x256xf32>
        %287 = arith.mulf %286, %285 : vector<32x256xf32>
        %cst_93 = arith.constant 9.990000e-01 : f32
        %288 = vector.broadcast %cst_93 : f32 to vector<32x256xf32>
        %289 = arith.minimumf %287, %288 : vector<32x256xf32>
        %cst_94 = arith.constant 0.000000e+00 : f32
        %290 = vector.broadcast %cst_94 : f32 to vector<32x256xf32>
        %291 = arith.cmpf oge, %282, %290 : vector<32x256xf32>
        %cst_95 = arith.constant 0.00392156886 : f32
        %292 = vector.broadcast %cst_95 : f32 to vector<32x256xf32>
        %293 = arith.cmpf oge, %289, %292 : vector<32x256xf32>
        %294 = arith.andi %291, %293 : vector<32x256xi1>
        %cst_96 = arith.constant 0.000000e+00 : f32
        %295 = vector.broadcast %cst_96 : f32 to vector<32x256xf32>
        %296 = arith.select %294, %289, %295 : vector<32x256xi1>, vector<32x256xf32>
        %297 = arith.mulf %247, %296 : vector<32x256xf32>
        %298 = vector.broadcast %264 : f32 to vector<32x256xf32>
        %299 = arith.mulf %297, %298 : vector<32x256xf32>
        %300 = arith.addf %238, %299 : vector<32x256xf32>
        %301 = vector.broadcast %266 : f32 to vector<32x256xf32>
        %302 = arith.mulf %297, %301 : vector<32x256xf32>
        %303 = arith.addf %241, %302 : vector<32x256xf32>
        %304 = vector.broadcast %268 : f32 to vector<32x256xf32>
        %305 = arith.mulf %297, %304 : vector<32x256xf32>
        %306 = arith.addf %244, %305 : vector<32x256xf32>
        %cst_97 = arith.constant 1.000000e+00 : f32
        %307 = vector.broadcast %cst_97 : f32 to vector<32x256xf32>
        %308 = arith.subf %307, %296 : vector<32x256xf32>
        %309 = arith.mulf %247, %308 : vector<32x256xf32>
        %c4_i32 = arith.constant 4 : i32
        %310 = arith.addi %61, %c4_i32 : i32
        %311 = arith.index_cast %310 : i32 to index
        %312 = memref.load %arg2[%311] : memref<256xi32, #tpu.memory_space<smem>>
        %c0_98 = arith.constant 0 : index
        %313 = arith.index_cast %312 : i32 to index
        %314 = memref.load %arg3[%c0_98, %313] : memref<9x129xf32, #tpu.memory_space<smem>>
        %c1_99 = arith.constant 1 : index
        %315 = arith.index_cast %312 : i32 to index
        %316 = memref.load %arg3[%c1_99, %315] : memref<9x129xf32, #tpu.memory_space<smem>>
        %c2_100 = arith.constant 2 : index
        %317 = arith.index_cast %312 : i32 to index
        %318 = memref.load %arg3[%c2_100, %317] : memref<9x129xf32, #tpu.memory_space<smem>>
        %c3_101 = arith.constant 3 : index
        %319 = arith.index_cast %312 : i32 to index
        %320 = memref.load %arg3[%c3_101, %319] : memref<9x129xf32, #tpu.memory_space<smem>>
        %c4_102 = arith.constant 4 : index
        %321 = arith.index_cast %312 : i32 to index
        %322 = memref.load %arg3[%c4_102, %321] : memref<9x129xf32, #tpu.memory_space<smem>>
        %c5_103 = arith.constant 5 : index
        %323 = arith.index_cast %312 : i32 to index
        %324 = memref.load %arg3[%c5_103, %323] : memref<9x129xf32, #tpu.memory_space<smem>>
        %c6_104 = arith.constant 6 : index
        %325 = arith.index_cast %312 : i32 to index
        %326 = memref.load %arg3[%c6_104, %325] : memref<9x129xf32, #tpu.memory_space<smem>>
        %c7_105 = arith.constant 7 : index
        %327 = arith.index_cast %312 : i32 to index
        %328 = memref.load %arg3[%c7_105, %327] : memref<9x129xf32, #tpu.memory_space<smem>>
        %c8_106 = arith.constant 8 : index
        %329 = arith.index_cast %312 : i32 to index
        %330 = memref.load %arg3[%c8_106, %329] : memref<9x129xf32, #tpu.memory_space<smem>>
        %331 = vector.broadcast %314 : f32 to vector<32x256xf32>
        %332 = arith.subf %10, %331 : vector<32x256xf32>
        %333 = vector.broadcast %316 : f32 to vector<32x256xf32>
        %334 = arith.subf %7, %333 : vector<32x256xf32>
        %335 = vector.broadcast %318 : f32 to vector<32x256xf32>
        %336 = arith.mulf %335, %332 : vector<32x256xf32>
        %337 = vector.broadcast %320 : f32 to vector<32x256xf32>
        %338 = arith.mulf %337, %334 : vector<32x256xf32>
        %339 = arith.addf %336, %338 : vector<32x256xf32>
        %340 = arith.mulf %339, %332 : vector<32x256xf32>
        %341 = vector.broadcast %322 : f32 to vector<32x256xf32>
        %342 = arith.mulf %341, %334 : vector<32x256xf32>
        %343 = arith.mulf %342, %334 : vector<32x256xf32>
        %344 = arith.addf %340, %343 : vector<32x256xf32>
        %cst_107 = arith.constant 0.000000e+00 : f32
        %345 = vector.broadcast %cst_107 : f32 to vector<32x256xf32>
        %346 = arith.subf %345, %344 : vector<32x256xf32>
        %347 = math.exp %346 : vector<32x256xf32>
        %348 = vector.broadcast %324 : f32 to vector<32x256xf32>
        %349 = arith.mulf %348, %347 : vector<32x256xf32>
        %cst_108 = arith.constant 9.990000e-01 : f32
        %350 = vector.broadcast %cst_108 : f32 to vector<32x256xf32>
        %351 = arith.minimumf %349, %350 : vector<32x256xf32>
        %cst_109 = arith.constant 0.000000e+00 : f32
        %352 = vector.broadcast %cst_109 : f32 to vector<32x256xf32>
        %353 = arith.cmpf oge, %344, %352 : vector<32x256xf32>
        %cst_110 = arith.constant 0.00392156886 : f32
        %354 = vector.broadcast %cst_110 : f32 to vector<32x256xf32>
        %355 = arith.cmpf oge, %351, %354 : vector<32x256xf32>
        %356 = arith.andi %353, %355 : vector<32x256xi1>
        %cst_111 = arith.constant 0.000000e+00 : f32
        %357 = vector.broadcast %cst_111 : f32 to vector<32x256xf32>
        %358 = arith.select %356, %351, %357 : vector<32x256xi1>, vector<32x256xf32>
        %359 = arith.mulf %309, %358 : vector<32x256xf32>
        %360 = vector.broadcast %326 : f32 to vector<32x256xf32>
        %361 = arith.mulf %359, %360 : vector<32x256xf32>
        %362 = arith.addf %300, %361 : vector<32x256xf32>
        %363 = vector.broadcast %328 : f32 to vector<32x256xf32>
        %364 = arith.mulf %359, %363 : vector<32x256xf32>
        %365 = arith.addf %303, %364 : vector<32x256xf32>
        %366 = vector.broadcast %330 : f32 to vector<32x256xf32>
        %367 = arith.mulf %359, %366 : vector<32x256xf32>
        %368 = arith.addf %306, %367 : vector<32x256xf32>
        %cst_112 = arith.constant 1.000000e+00 : f32
        %369 = vector.broadcast %cst_112 : f32 to vector<32x256xf32>
        %370 = arith.subf %369, %358 : vector<32x256xf32>
        %371 = arith.mulf %309, %370 : vector<32x256xf32>
        %c5_i32 = arith.constant 5 : i32
        %372 = arith.addi %61, %c5_i32 : i32
        %373 = arith.index_cast %372 : i32 to index
        %374 = memref.load %arg2[%373] : memref<256xi32, #tpu.memory_space<smem>>
        %c0_113 = arith.constant 0 : index
        %375 = arith.index_cast %374 : i32 to index
        %376 = memref.load %arg3[%c0_113, %375] : memref<9x129xf32, #tpu.memory_space<smem>>
        %c1_114 = arith.constant 1 : index
        %377 = arith.index_cast %374 : i32 to index
        %378 = memref.load %arg3[%c1_114, %377] : memref<9x129xf32, #tpu.memory_space<smem>>
        %c2_115 = arith.constant 2 : index
        %379 = arith.index_cast %374 : i32 to index
        %380 = memref.load %arg3[%c2_115, %379] : memref<9x129xf32, #tpu.memory_space<smem>>
        %c3_116 = arith.constant 3 : index
        %381 = arith.index_cast %374 : i32 to index
        %382 = memref.load %arg3[%c3_116, %381] : memref<9x129xf32, #tpu.memory_space<smem>>
        %c4_117 = arith.constant 4 : index
        %383 = arith.index_cast %374 : i32 to index
        %384 = memref.load %arg3[%c4_117, %383] : memref<9x129xf32, #tpu.memory_space<smem>>
        %c5_118 = arith.constant 5 : index
        %385 = arith.index_cast %374 : i32 to index
        %386 = memref.load %arg3[%c5_118, %385] : memref<9x129xf32, #tpu.memory_space<smem>>
        %c6_119 = arith.constant 6 : index
        %387 = arith.index_cast %374 : i32 to index
        %388 = memref.load %arg3[%c6_119, %387] : memref<9x129xf32, #tpu.memory_space<smem>>
        %c7_120 = arith.constant 7 : index
        %389 = arith.index_cast %374 : i32 to index
        %390 = memref.load %arg3[%c7_120, %389] : memref<9x129xf32, #tpu.memory_space<smem>>
        %c8_121 = arith.constant 8 : index
        %391 = arith.index_cast %374 : i32 to index
        %392 = memref.load %arg3[%c8_121, %391] : memref<9x129xf32, #tpu.memory_space<smem>>
        %393 = vector.broadcast %376 : f32 to vector<32x256xf32>
        %394 = arith.subf %10, %393 : vector<32x256xf32>
        %395 = vector.broadcast %378 : f32 to vector<32x256xf32>
        %396 = arith.subf %7, %395 : vector<32x256xf32>
        %397 = vector.broadcast %380 : f32 to vector<32x256xf32>
        %398 = arith.mulf %397, %394 : vector<32x256xf32>
        %399 = vector.broadcast %382 : f32 to vector<32x256xf32>
        %400 = arith.mulf %399, %396 : vector<32x256xf32>
        %401 = arith.addf %398, %400 : vector<32x256xf32>
        %402 = arith.mulf %401, %394 : vector<32x256xf32>
        %403 = vector.broadcast %384 : f32 to vector<32x256xf32>
        %404 = arith.mulf %403, %396 : vector<32x256xf32>
        %405 = arith.mulf %404, %396 : vector<32x256xf32>
        %406 = arith.addf %402, %405 : vector<32x256xf32>
        %cst_122 = arith.constant 0.000000e+00 : f32
        %407 = vector.broadcast %cst_122 : f32 to vector<32x256xf32>
        %408 = arith.subf %407, %406 : vector<32x256xf32>
        %409 = math.exp %408 : vector<32x256xf32>
        %410 = vector.broadcast %386 : f32 to vector<32x256xf32>
        %411 = arith.mulf %410, %409 : vector<32x256xf32>
        %cst_123 = arith.constant 9.990000e-01 : f32
        %412 = vector.broadcast %cst_123 : f32 to vector<32x256xf32>
        %413 = arith.minimumf %411, %412 : vector<32x256xf32>
        %cst_124 = arith.constant 0.000000e+00 : f32
        %414 = vector.broadcast %cst_124 : f32 to vector<32x256xf32>
        %415 = arith.cmpf oge, %406, %414 : vector<32x256xf32>
        %cst_125 = arith.constant 0.00392156886 : f32
        %416 = vector.broadcast %cst_125 : f32 to vector<32x256xf32>
        %417 = arith.cmpf oge, %413, %416 : vector<32x256xf32>
        %418 = arith.andi %415, %417 : vector<32x256xi1>
        %cst_126 = arith.constant 0.000000e+00 : f32
        %419 = vector.broadcast %cst_126 : f32 to vector<32x256xf32>
        %420 = arith.select %418, %413, %419 : vector<32x256xi1>, vector<32x256xf32>
        %421 = arith.mulf %371, %420 : vector<32x256xf32>
        %422 = vector.broadcast %388 : f32 to vector<32x256xf32>
        %423 = arith.mulf %421, %422 : vector<32x256xf32>
        %424 = arith.addf %362, %423 : vector<32x256xf32>
        %425 = vector.broadcast %390 : f32 to vector<32x256xf32>
        %426 = arith.mulf %421, %425 : vector<32x256xf32>
        %427 = arith.addf %365, %426 : vector<32x256xf32>
        %428 = vector.broadcast %392 : f32 to vector<32x256xf32>
        %429 = arith.mulf %421, %428 : vector<32x256xf32>
        %430 = arith.addf %368, %429 : vector<32x256xf32>
        %cst_127 = arith.constant 1.000000e+00 : f32
        %431 = vector.broadcast %cst_127 : f32 to vector<32x256xf32>
        %432 = arith.subf %431, %420 : vector<32x256xf32>
        %433 = arith.mulf %371, %432 : vector<32x256xf32>
        %c6_i32 = arith.constant 6 : i32
        %434 = arith.addi %61, %c6_i32 : i32
        %435 = arith.index_cast %434 : i32 to index
        %436 = memref.load %arg2[%435] : memref<256xi32, #tpu.memory_space<smem>>
        %c0_128 = arith.constant 0 : index
        %437 = arith.index_cast %436 : i32 to index
        %438 = memref.load %arg3[%c0_128, %437] : memref<9x129xf32, #tpu.memory_space<smem>>
        %c1_129 = arith.constant 1 : index
        %439 = arith.index_cast %436 : i32 to index
        %440 = memref.load %arg3[%c1_129, %439] : memref<9x129xf32, #tpu.memory_space<smem>>
        %c2_130 = arith.constant 2 : index
        %441 = arith.index_cast %436 : i32 to index
        %442 = memref.load %arg3[%c2_130, %441] : memref<9x129xf32, #tpu.memory_space<smem>>
        %c3_131 = arith.constant 3 : index
        %443 = arith.index_cast %436 : i32 to index
        %444 = memref.load %arg3[%c3_131, %443] : memref<9x129xf32, #tpu.memory_space<smem>>
        %c4_132 = arith.constant 4 : index
        %445 = arith.index_cast %436 : i32 to index
        %446 = memref.load %arg3[%c4_132, %445] : memref<9x129xf32, #tpu.memory_space<smem>>
        %c5_133 = arith.constant 5 : index
        %447 = arith.index_cast %436 : i32 to index
        %448 = memref.load %arg3[%c5_133, %447] : memref<9x129xf32, #tpu.memory_space<smem>>
        %c6_134 = arith.constant 6 : index
        %449 = arith.index_cast %436 : i32 to index
        %450 = memref.load %arg3[%c6_134, %449] : memref<9x129xf32, #tpu.memory_space<smem>>
        %c7_135 = arith.constant 7 : index
        %451 = arith.index_cast %436 : i32 to index
        %452 = memref.load %arg3[%c7_135, %451] : memref<9x129xf32, #tpu.memory_space<smem>>
        %c8_136 = arith.constant 8 : index
        %453 = arith.index_cast %436 : i32 to index
        %454 = memref.load %arg3[%c8_136, %453] : memref<9x129xf32, #tpu.memory_space<smem>>
        %455 = vector.broadcast %438 : f32 to vector<32x256xf32>
        %456 = arith.subf %10, %455 : vector<32x256xf32>
        %457 = vector.broadcast %440 : f32 to vector<32x256xf32>
        %458 = arith.subf %7, %457 : vector<32x256xf32>
        %459 = vector.broadcast %442 : f32 to vector<32x256xf32>
        %460 = arith.mulf %459, %456 : vector<32x256xf32>
        %461 = vector.broadcast %444 : f32 to vector<32x256xf32>
        %462 = arith.mulf %461, %458 : vector<32x256xf32>
        %463 = arith.addf %460, %462 : vector<32x256xf32>
        %464 = arith.mulf %463, %456 : vector<32x256xf32>
        %465 = vector.broadcast %446 : f32 to vector<32x256xf32>
        %466 = arith.mulf %465, %458 : vector<32x256xf32>
        %467 = arith.mulf %466, %458 : vector<32x256xf32>
        %468 = arith.addf %464, %467 : vector<32x256xf32>
        %cst_137 = arith.constant 0.000000e+00 : f32
        %469 = vector.broadcast %cst_137 : f32 to vector<32x256xf32>
        %470 = arith.subf %469, %468 : vector<32x256xf32>
        %471 = math.exp %470 : vector<32x256xf32>
        %472 = vector.broadcast %448 : f32 to vector<32x256xf32>
        %473 = arith.mulf %472, %471 : vector<32x256xf32>
        %cst_138 = arith.constant 9.990000e-01 : f32
        %474 = vector.broadcast %cst_138 : f32 to vector<32x256xf32>
        %475 = arith.minimumf %473, %474 : vector<32x256xf32>
        %cst_139 = arith.constant 0.000000e+00 : f32
        %476 = vector.broadcast %cst_139 : f32 to vector<32x256xf32>
        %477 = arith.cmpf oge, %468, %476 : vector<32x256xf32>
        %cst_140 = arith.constant 0.00392156886 : f32
        %478 = vector.broadcast %cst_140 : f32 to vector<32x256xf32>
        %479 = arith.cmpf oge, %475, %478 : vector<32x256xf32>
        %480 = arith.andi %477, %479 : vector<32x256xi1>
        %cst_141 = arith.constant 0.000000e+00 : f32
        %481 = vector.broadcast %cst_141 : f32 to vector<32x256xf32>
        %482 = arith.select %480, %475, %481 : vector<32x256xi1>, vector<32x256xf32>
        %483 = arith.mulf %433, %482 : vector<32x256xf32>
        %484 = vector.broadcast %450 : f32 to vector<32x256xf32>
        %485 = arith.mulf %483, %484 : vector<32x256xf32>
        %486 = arith.addf %424, %485 : vector<32x256xf32>
        %487 = vector.broadcast %452 : f32 to vector<32x256xf32>
        %488 = arith.mulf %483, %487 : vector<32x256xf32>
        %489 = arith.addf %427, %488 : vector<32x256xf32>
        %490 = vector.broadcast %454 : f32 to vector<32x256xf32>
        %491 = arith.mulf %483, %490 : vector<32x256xf32>
        %492 = arith.addf %430, %491 : vector<32x256xf32>
        %cst_142 = arith.constant 1.000000e+00 : f32
        %493 = vector.broadcast %cst_142 : f32 to vector<32x256xf32>
        %494 = arith.subf %493, %482 : vector<32x256xf32>
        %495 = arith.mulf %433, %494 : vector<32x256xf32>
        %c7_i32 = arith.constant 7 : i32
        %496 = arith.addi %61, %c7_i32 : i32
        %497 = arith.index_cast %496 : i32 to index
        %498 = memref.load %arg2[%497] : memref<256xi32, #tpu.memory_space<smem>>
        %c0_143 = arith.constant 0 : index
        %499 = arith.index_cast %498 : i32 to index
        %500 = memref.load %arg3[%c0_143, %499] : memref<9x129xf32, #tpu.memory_space<smem>>
        %c1_144 = arith.constant 1 : index
        %501 = arith.index_cast %498 : i32 to index
        %502 = memref.load %arg3[%c1_144, %501] : memref<9x129xf32, #tpu.memory_space<smem>>
        %c2_145 = arith.constant 2 : index
        %503 = arith.index_cast %498 : i32 to index
        %504 = memref.load %arg3[%c2_145, %503] : memref<9x129xf32, #tpu.memory_space<smem>>
        %c3_146 = arith.constant 3 : index
        %505 = arith.index_cast %498 : i32 to index
        %506 = memref.load %arg3[%c3_146, %505] : memref<9x129xf32, #tpu.memory_space<smem>>
        %c4_147 = arith.constant 4 : index
        %507 = arith.index_cast %498 : i32 to index
        %508 = memref.load %arg3[%c4_147, %507] : memref<9x129xf32, #tpu.memory_space<smem>>
        %c5_148 = arith.constant 5 : index
        %509 = arith.index_cast %498 : i32 to index
        %510 = memref.load %arg3[%c5_148, %509] : memref<9x129xf32, #tpu.memory_space<smem>>
        %c6_149 = arith.constant 6 : index
        %511 = arith.index_cast %498 : i32 to index
        %512 = memref.load %arg3[%c6_149, %511] : memref<9x129xf32, #tpu.memory_space<smem>>
        %c7_150 = arith.constant 7 : index
        %513 = arith.index_cast %498 : i32 to index
        %514 = memref.load %arg3[%c7_150, %513] : memref<9x129xf32, #tpu.memory_space<smem>>
        %c8_151 = arith.constant 8 : index
        %515 = arith.index_cast %498 : i32 to index
        %516 = memref.load %arg3[%c8_151, %515] : memref<9x129xf32, #tpu.memory_space<smem>>
        %517 = vector.broadcast %500 : f32 to vector<32x256xf32>
        %518 = arith.subf %10, %517 : vector<32x256xf32>
        %519 = vector.broadcast %502 : f32 to vector<32x256xf32>
        %520 = arith.subf %7, %519 : vector<32x256xf32>
        %521 = vector.broadcast %504 : f32 to vector<32x256xf32>
        %522 = arith.mulf %521, %518 : vector<32x256xf32>
        %523 = vector.broadcast %506 : f32 to vector<32x256xf32>
        %524 = arith.mulf %523, %520 : vector<32x256xf32>
        %525 = arith.addf %522, %524 : vector<32x256xf32>
        %526 = arith.mulf %525, %518 : vector<32x256xf32>
        %527 = vector.broadcast %508 : f32 to vector<32x256xf32>
        %528 = arith.mulf %527, %520 : vector<32x256xf32>
        %529 = arith.mulf %528, %520 : vector<32x256xf32>
        %530 = arith.addf %526, %529 : vector<32x256xf32>
        %cst_152 = arith.constant 0.000000e+00 : f32
        %531 = vector.broadcast %cst_152 : f32 to vector<32x256xf32>
        %532 = arith.subf %531, %530 : vector<32x256xf32>
        %533 = math.exp %532 : vector<32x256xf32>
        %534 = vector.broadcast %510 : f32 to vector<32x256xf32>
        %535 = arith.mulf %534, %533 : vector<32x256xf32>
        %cst_153 = arith.constant 9.990000e-01 : f32
        %536 = vector.broadcast %cst_153 : f32 to vector<32x256xf32>
        %537 = arith.minimumf %535, %536 : vector<32x256xf32>
        %cst_154 = arith.constant 0.000000e+00 : f32
        %538 = vector.broadcast %cst_154 : f32 to vector<32x256xf32>
        %539 = arith.cmpf oge, %530, %538 : vector<32x256xf32>
        %cst_155 = arith.constant 0.00392156886 : f32
        %540 = vector.broadcast %cst_155 : f32 to vector<32x256xf32>
        %541 = arith.cmpf oge, %537, %540 : vector<32x256xf32>
        %542 = arith.andi %539, %541 : vector<32x256xi1>
        %cst_156 = arith.constant 0.000000e+00 : f32
        %543 = vector.broadcast %cst_156 : f32 to vector<32x256xf32>
        %544 = arith.select %542, %537, %543 : vector<32x256xi1>, vector<32x256xf32>
        %545 = arith.mulf %495, %544 : vector<32x256xf32>
        %546 = vector.broadcast %512 : f32 to vector<32x256xf32>
        %547 = arith.mulf %545, %546 : vector<32x256xf32>
        %548 = arith.addf %486, %547 : vector<32x256xf32>
        %549 = vector.broadcast %514 : f32 to vector<32x256xf32>
        %550 = arith.mulf %545, %549 : vector<32x256xf32>
        %551 = arith.addf %489, %550 : vector<32x256xf32>
        %552 = vector.broadcast %516 : f32 to vector<32x256xf32>
        %553 = arith.mulf %545, %552 : vector<32x256xf32>
        %554 = arith.addf %492, %553 : vector<32x256xf32>
        %cst_157 = arith.constant 1.000000e+00 : f32
        %555 = vector.broadcast %cst_157 : f32 to vector<32x256xf32>
        %556 = arith.subf %555, %544 : vector<32x256xf32>
        %557 = arith.mulf %495, %556 : vector<32x256xf32>
        %c0_158 = arith.constant 0 : index
        %c0_159 = arith.constant 0 : index
        %558 = vector.load %arg6[%c0_158, %c0_159] : memref<32x256xf32, #tpu.memory_space<vmem>>, vector<32x256xf32>
        tpu.vector_store %arg6[%c0_158, %c0_159], %548 {strides = array<i32>} : memref<32x256xf32, #tpu.memory_space<vmem>>, vector<32x256xf32>,
        %c0_160 = arith.constant 0 : index
        %c0_161 = arith.constant 0 : index
        %559 = vector.load %arg7[%c0_160, %c0_161] : memref<32x256xf32, #tpu.memory_space<vmem>>, vector<32x256xf32>
        tpu.vector_store %arg7[%c0_160, %c0_161], %551 {strides = array<i32>} : memref<32x256xf32, #tpu.memory_space<vmem>>, vector<32x256xf32>,
        %c0_162 = arith.constant 0 : index
        %c0_163 = arith.constant 0 : index
        %560 = vector.load %arg8[%c0_162, %c0_163] : memref<32x256xf32, #tpu.memory_space<vmem>>, vector<32x256xf32>
        tpu.vector_store %arg8[%c0_162, %c0_163], %554 {strides = array<i32>} : memref<32x256xf32, #tpu.memory_space<vmem>>, vector<32x256xf32>,
        %c0_164 = arith.constant 0 : index
        %c0_165 = arith.constant 0 : index
        %561 = vector.load %arg9[%c0_164, %c0_165] : memref<32x256xf32, #tpu.memory_space<vmem>>, vector<32x256xf32>
        tpu.vector_store %arg9[%c0_164, %c0_165], %557 {strides = array<i32>} : memref<32x256xf32, #tpu.memory_space<vmem>>, vector<32x256xf32>,
      } else {
      }
    }
    %c0_13 = arith.constant 0 : index
    %c0_14 = arith.constant 0 : index
    %24 = vector.load %arg9[%c0_13, %c0_14] : memref<32x256xf32, #tpu.memory_space<vmem>>, vector<32x256xf32>
    %c0_15 = arith.constant 0 : index
    %c0_16 = arith.constant 0 : index
    %25 = vector.load %arg6[%c0_15, %c0_16] : memref<32x256xf32, #tpu.memory_space<vmem>>, vector<32x256xf32>
    %c0_17 = arith.constant 0 : index
    %26 = memref.load %arg4[%c0_17] : memref<3xf32, #tpu.memory_space<smem>>
    %27 = vector.broadcast %26 : f32 to vector<32x256xf32>
    %28 = arith.mulf %24, %27 : vector<32x256xf32>
    %29 = arith.addf %25, %28 : vector<32x256xf32>
    %c0_18 = arith.constant 0 : index
    %c0_19 = arith.constant 0 : index
    %c0_20 = arith.constant 0 : index
    %30 = vector.load %arg5[%c0_18, %c0_19, %c0_20] : memref<3x32x256xf32, #tpu.memory_space<vmem>>, vector<1x32x256xf32>
    %31 = vector.shape_cast %30 : vector<1x32x256xf32> to vector<32x256xf32>
    %32 = vector.shape_cast %29 : vector<32x256xf32> to vector<1x32x256xf32>
    tpu.vector_store %arg5[%c0_18, %c0_19, %c0_20], %32 {strides = array<i32>} : memref<3x32x256xf32, #tpu.memory_space<vmem>>, vector<1x32x256xf32>,
    %c0_21 = arith.constant 0 : index
    %c0_22 = arith.constant 0 : index
    %33 = vector.load %arg7[%c0_21, %c0_22] : memref<32x256xf32, #tpu.memory_space<vmem>>, vector<32x256xf32>
    %c1 = arith.constant 1 : index
    %34 = memref.load %arg4[%c1] : memref<3xf32, #tpu.memory_space<smem>>
    %35 = vector.broadcast %34 : f32 to vector<32x256xf32>
    %36 = arith.mulf %24, %35 : vector<32x256xf32>
    %37 = arith.addf %33, %36 : vector<32x256xf32>
    %c1_23 = arith.constant 1 : index
    %c0_24 = arith.constant 0 : index
    %c0_25 = arith.constant 0 : index
    %38 = vector.load %arg5[%c1_23, %c0_24, %c0_25] : memref<3x32x256xf32, #tpu.memory_space<vmem>>, vector<1x32x256xf32>
    %39 = vector.shape_cast %38 : vector<1x32x256xf32> to vector<32x256xf32>
    %40 = vector.shape_cast %37 : vector<32x256xf32> to vector<1x32x256xf32>
    tpu.vector_store %arg5[%c1_23, %c0_24, %c0_25], %40 {strides = array<i32>} : memref<3x32x256xf32, #tpu.memory_space<vmem>>, vector<1x32x256xf32>,
    %c0_26 = arith.constant 0 : index
    %c0_27 = arith.constant 0 : index
    %41 = vector.load %arg8[%c0_26, %c0_27] : memref<32x256xf32, #tpu.memory_space<vmem>>, vector<32x256xf32>
    %c2 = arith.constant 2 : index
    %42 = memref.load %arg4[%c2] : memref<3xf32, #tpu.memory_space<smem>>
    %43 = vector.broadcast %42 : f32 to vector<32x256xf32>
    %44 = arith.mulf %24, %43 : vector<32x256xf32>
    %45 = arith.addf %41, %44 : vector<32x256xf32>
    %c2_28 = arith.constant 2 : index
    %c0_29 = arith.constant 0 : index
    %c0_30 = arith.constant 0 : index
    %46 = vector.load %arg5[%c2_28, %c0_29, %c0_30] : memref<3x32x256xf32, #tpu.memory_space<vmem>>, vector<1x32x256xf32>
    %47 = vector.shape_cast %46 : vector<1x32x256xf32> to vector<32x256xf32>
    %48 = vector.shape_cast %45 : vector<32x256xf32> to vector<1x32x256xf32>
    tpu.vector_store %arg5[%c2_28, %c0_29, %c0_30], %48 {strides = array<i32>} : memref<3x32x256xf32, #tpu.memory_space<vmem>>, vector<1x32x256xf32>,
    return
  }
  func.func @transform_0(%arg0: i32, %arg1: memref<2xi32, #tpu.memory_space<smem>>, %arg2: memref<256xi32, #tpu.memory_space<smem>>) -> (i32, i32) {
    %c0_i32 = arith.constant 0 : i32
    %c0_i32_0 = arith.constant 0 : i32
    %c0_i32_1 = arith.constant 0 : i32
    return %c0_i32, %c0_i32_0 : i32, i32
  }
  func.func @transform_1(%arg0: i32, %arg1: memref<2xi32, #tpu.memory_space<smem>>, %arg2: memref<256xi32, #tpu.memory_space<smem>>) -> i32 {
    %c0_i32 = arith.constant 0 : i32
    %c0_i32_0 = arith.constant 0 : i32
    return %c0_i32 : i32
  }
  func.func @transform_2(%arg0: i32, %arg1: memref<2xi32, #tpu.memory_space<smem>>, %arg2: memref<256xi32, #tpu.memory_space<smem>>) -> (i32, i32, i32) {
    %c0_i32 = arith.constant 0 : i32
    %c0_i32_0 = arith.constant 0 : i32
    %c0_i32_1 = arith.constant 0 : i32
    return %c0_i32, %arg0, %c0_i32_0 : i32, i32, i32
  }
}

</mosaic_0001>

<bundles_post_ra>
// kernel: render_gaussians.2
= control target key start
LH: loop header
LB: loop body
LE: loop exit
PB: predicated region body
PF: predicated region fallthrough
CT: control target
= control target key end

     0   :  { %vm344_vm3 = vcmask 1040384   ;;  %vm346_vm6 = vcmask 1041408   ;;  %vm348_vm7 = vcmask 1042432   ;;  %vm350_vm8 = vcmask 1043456   ;;  %s506_s0 = inlined_call_operand.vmem [shape: f32[14,128], index: 0, kind: input, shape index: {}]   ;;  %s507_s1 = inlined_call_operand.vmem [shape: f32[12,128], index: 1, kind: output, shape index: {}]  }
   0x1   :  { %v404_v0 = vld [vmem:[%s506_s0] sm:$0xff]  ;;  %v409_v1 = vld [vmem:[%s506_s0 + $0x8] sm:$0x3f]  ;;  %vm352_vm9 = vcmask 1044480   ;;  %vm354_vm10 = vcmask 1045504   ;;  %vm356_vm11 = vcmask 1046528  }
   0x2   :  { %v10_v2 = vmul.f32 %v404_v0, %v404_v0  ;;  %v15_v3 = vmul.f32 %v409_v1, %v409_v1  ;;  %vm203_vm0 = vcmp.gt.f32.partialorder %v404_v0, 0.01  ;;  %v207_v19 = vmul.f32 -128.0, %v404_v0 }
   0x3   :  { %v419_v4 = vsel %vm203_vm0, %v404_v0, 1.0  ;;  %v428_v24 = vmul.f32 -2.0, %v409_v1 }
   0x4   :  { %v12_v5 = vrot.slane %v10_v2, 1  ;;  %v17_v6 = vrot.slane %v15_v3, 2  ;;  %v20_v8 = vrot.slane %v15_v3, 3  ;;  %v208_v9 = vmul.f32 %v419_v4, %v419_v4 }
   0x5   :  { %370 = vrcp.f32 %v419_v4  ;;  %v430_v25 = vrot.slane %v10_v2, 3  ;;  %v432_v26 = vrot.slane %v10_v2, 5  ;;  %v434_v27 = vrot.slane %v10_v2, 6 }
   0x6   :  { %v14_v7 = vadd.f32 %v12_v5, %v10_v2  ;;  %v210_v11 = vrot.slane %v208_v9, 2  ;;  %v214_v13 = vrot.slane %v208_v9, 1  ;;  %v436_v28 = vrot.slane %v10_v2, 4 }
   0x8   :  { %v19_v10 = vadd.f32 %v17_v6, %v14_v7  ;;  %372 = vrcp.f32 %v210_v11 }
   0xa   :  { %v22_v12 = vadd.f32 %v20_v8, %v19_v10 }
   0xc   :  { %v23_v14 = vadd.f32 1e-12, %v22_v12 }
   0xe   :  { %374 = vrsqrt.f32 %v23_v14 }
   0xf   :  { %376 = vrcp.f32 %v214_v13  ;;  %v371_v15 = vpop.eup %370 }
  0x10   :  { %v424_v17 = vmul.f32 128.0, %v371_v15 }
  0x12   :  { %v373_v16 = vpop.eup %372  ;;  %v441_v31 = vmul.f32 2.0, %v424_v17  ;;  %v254_v32 = vrot.slane %v424_v17, 2 }
  0x13   :  { %v446_v35 = vmul.f32 %v373_v16, %v207_v19 }
  0x15   :  { %v225_v52 = vrot.slane %v446_v35, 6 }
  0x18   :  { %v375_v18 = vpop.eup %374 }
  0x19   :  { %v377_v20 = vpop.eup %376  ;;  %v27_v21 = vrot.slane %v375_v18, 7  ;;  %v30_v22 = vrot.slane %v375_v18, 6  ;;  %v33_v23 = vrot.slane %v375_v18, 5  ;;  %v25_v33 = vmul.f32 %v375_v18, %v404_v0 }
  0x1a   :  { %v448_v36 = vmul.f32 %v377_v20, %v207_v19 }
  0x1b   :  { %v32_v29 = vmul.f32 %v30_v22, %v409_v1  ;;  %v35_v30 = vmul.f32 %v33_v23, %v409_v1  ;;  %v29_v34 = vmul.f32 %v27_v21, %v404_v0 }
  0x1c   :  { %v248_v60 = vrot.slane %v448_v36, 7 }
  0x1d   :  { %v43_v37 = vmul.f32 %v32_v29, %v32_v29  ;;  %v44_v38 = vmul.f32 %v35_v30, %v35_v30  ;;  %v52_v39 = vrot.slane %v32_v29, 1  ;;  %v56_v40 = vrot.slane %v35_v30, 3 }
  0x1e   :  { %v64_v41 = vrot.slane %v35_v30, 2  ;;  %v67_v42 = vrot.slane %v32_v29, 2  ;;  %v77_v43 = vmul.f32 %v29_v34, %v29_v34  ;;  %v83_v44 = vrot.slane %v35_v30, 1 }
  0x1f   :  { %v46_v45 = vrot.slane %v44_v38, 1  ;;  %v54_v46 = vmul.f32 %v52_v39, %v29_v34  ;;  %v58_v47 = vmul.f32 %v56_v40, %v25_v33  ;;  %v78_v48 = vrot.slane %v44_v38, 2 }
  0x20   :  { %v66_v49 = vmul.f32 %v64_v41, %v29_v34  ;;  %v69_v50 = vmul.f32 %v67_v42, %v25_v33  ;;  %v87_v51 = vrot.slane %v29_v34, 1  ;;  %v100_v56 = vrot.slane %v43_v37, 1 }
  0x21   :  { %v48_v53 = vadd.f32 %v46_v45, %v43_v37  ;;  %v60_v54 = vrot.slane %v58_v47, 7  ;;  %v80_v55 = vadd.f32 %v78_v48, %v77_v43  ;;  %v85_v58 = vmul.f32 %v83_v44, %v32_v29 }
  0x22   :  { %v71_v57 = vrot.slane %v69_v50, 7  ;;  %v89_v59 = vmul.f32 %v87_v51, %v25_v33  ;;  %v102_v7 = vadd.f32 %v100_v56, %v77_v43 }
  0x23   :  { %v49_v61 = vmul.f32 2.0, %v48_v53  ;;  %v62_v62 = vsub.f32 %v54_v46, %v60_v54  ;;  %v75_v63 = vadd.f32 %v60_v54, %v54_v46  ;;  %v81_v2 = vmul.f32 2.0, %v80_v55 }
  0x24   :  { %v73_v3 = vadd.f32 %v71_v57, %v66_v49  ;;  %v91_v5 = vrot.slane %v89_v59, 6  ;;  %v95_v6 = vsub.f32 %v66_v49, %v71_v57  ;;  %v103_v16 = vmul.f32 2.0, %v102_v7 }
  0x25   :  { %v50_v8 = vsub.f32 1.0, %v49_v61  ;;  %v63_v9 = vmul.f32 2.0, %v62_v62  ;;  %v76_v10 = vmul.f32 2.0, %v75_v63  ;;  %v82_v11 = vsub.f32 1.0, %v81_v2 }
  0x26   :  { %v74_v12 = vmul.f32 2.0, %v73_v3  ;;  %v93_v13 = vsub.f32 %v85_v58, %v91_v5  ;;  %v96_v14 = vmul.f32 2.0, %v95_v6  ;;  %v97_v15 = vadd.f32 %v91_v5, %v85_v58 }
  0x27   :  { %v105_v18 = vmul.f32 %v50_v8, %v50_v8  ;;  %v109_v19 = vmul.f32 %v63_v9, %v63_v9  ;;  %v146_v20 = vrot.slane %v76_v10, 7  ;;  %v104_v30 = vsub.f32 1.0, %v103_v16 }
  0x28   :  { %v94_v21 = vmul.f32 2.0, %v93_v13  ;;  %v98_v22 = vmul.f32 2.0, %v97_v15  ;;  %v117_v23 = vmul.f32 %v74_v12, %v74_v12  ;;  %v126_v29 = vrot.slane %v96_v14, 7 }
  0x29   :  { %v108_v33 = vmul.f32 %v430_v25, %v105_v18  ;;  %v112_v34 = vmul.f32 %v432_v26, %v109_v19  ;;  %v148_v37 = vmul.f32 %v146_v20, %v50_v8  ;;  %v150_v41 = vmul.f32 %v82_v11, %v63_v9 }
  0x2a   :  { %v120_v38 = vmul.f32 %v434_v27, %v117_v23  ;;  %v128_v39 = vmul.f32 %v126_v29, %v50_v8  ;;  %v131_v40 = vrot.slane %v98_v22, 1  ;;  %v139_v43 = vmul.f32 %v104_v30, %v74_v12 }
  0x2b   :  { %v114_v42 = vrot.slane %v112_v34, 7  ;;  %v149_v44 = vmul.f32 %v148_v37, %v430_v25  ;;  %v157_v45 = vrot.slane %v94_v21, 1  ;;  %v151_v49 = vmul.f32 %v150_v41, %v432_v26 }
  0x2c   :  { %v122_v46 = vrot.slane %v120_v38, 7  ;;  %v129_v47 = vmul.f32 %v128_v39, %v430_v25  ;;  %v133_v48 = vmul.f32 %v131_v40, %v63_v9  ;;  %v140_v51 = vmul.f32 %v139_v43, %v434_v27 }
  0x2d   :  { %v116_v50 = vadd.f32 %v114_v42, %v108_v33  ;;  %v159_v53 = vmul.f32 %v157_v45, %v74_v12  ;;  %v165_v54 = vmul.f32 %v76_v10, %v76_v10  ;;  %v153_v56 = vrot.slane %v151_v49, 7 }
  0x2e   :  { %v134_v55 = vmul.f32 %v133_v48, %v432_v26  ;;  %v169_v57 = vmul.f32 %v82_v11, %v82_v11  ;;  %v172_v58 = vmul.f32 %v94_v21, %v94_v21  ;;  %v142_v61 = vrot.slane %v140_v51, 7 }
  0x2f   :  { %v124_v59 = vadd.f32 %v122_v46, %v116_v50  ;;  %v160_v62 = vmul.f32 %v159_v53, %v434_v27  ;;  %v168_v63 = vmul.f32 %v436_v28, %v165_v54  ;;  %v155_v2 = vadd.f32 %v153_v56, %v149_v44 }
  0x30   :  { %v136_v25 = vrot.slane %v134_v55, 7  ;;  %v170_v3 = vmul.f32 %v169_v57, %v432_v26  ;;  %v173_v5 = vmul.f32 %v172_v58, %v432_v26  ;;  %v178_v7 = vmul.f32 %v96_v14, %v76_v10 }
  0x31   :  { %v162_v6 = vrot.slane %v160_v62, 7  ;;  %v180_v8 = vmul.f32 %v131_v40, %v82_v11  ;;  %v184_v9 = vrot.slane %v104_v30, 7  ;;  %v192_v16 = vmul.f32 %v96_v14, %v96_v14 }
  0x32   :  { %v138_v12 = vadd.f32 %v136_v25, %v129_v47  ;;  %v171_v13 = vadd.f32 %v170_v3, %v168_v63  ;;  %v175_v15 = vrot.slane %v173_v5, 1  ;;  %v179_v19 = vmul.f32 %v178_v7, %v436_v28 }
  0x33   :  { %v164_v18 = vadd.f32 %v162_v6, %v155_v2  ;;  %v181_v20 = vmul.f32 %v180_v8, %v432_v26  ;;  %v186_v23 = vmul.f32 %v184_v9, %v94_v21  ;;  %v194_v34 = vmul.f32 %v98_v22, %v98_v22 }
  0x34   :  { %v144_v29 = vadd.f32 %v142_v61, %v138_v12  ;;  %v177_v33 = vadd.f32 %v175_v15, %v171_v13  ;;  %v218_v37 = vmul.f32 %v424_v17, %v424_v17  ;;  %v200_v11 = vmul.f32 %v104_v30, %v104_v30 }
  0x35   :  { %v182_v38 = vadd.f32 %v181_v20, %v179_v19  ;;  %v187_v10 = vmul.f32 %v186_v23, %v432_v26  ;;  %v250_v14 = vmul.f32 %v248_v60, %v424_v17  ;;  %v193_v39 = vmul.f32 %v192_v16, %v436_v28 }
  0x36   :  { %v195_v40 = vmul.f32 %v194_v34, %v436_v28  ;;  %v229_v41 = vrot.slane %v144_v29, 6  ;;  %v244_v21 = vrot.slane %v164_v18, 6  ;;  %v220_v43 = vrot.slane %v124_v59, 6 }
  0x37   :  { %v189_v42 = vrot.slane %v187_v10, 1  ;;  %v227_v22 = vmul.f32 %v225_v52, %v441_v31  ;;  %v256_v26 = vmul.f32 %v254_v32, %v446_v35  ;;  %v201_v44 = vmul.f32 %v200_v11, %v434_v27 }
  0x38   :  { %v197_v30 = vrot.slane %v195_v40, 1  ;;  %v265_v45 = vrot.slane %v448_v36, 1  ;;  %v274_v46 = vrot.slane %v177_v33, 5  ;;  %v246_v28 = vmul.f32 %v244_v21, %v218_v37 }
  0x39   :  { %v191_v47 = vadd.f32 %v189_v42, %v182_v38  ;;  %v251_v48 = vmul.f32 %v250_v14, %v229_v41  ;;  %v277_v49 = vmul.f32 %v248_v60, %v441_v31  ;;  %v38_v50 = vmul.f32 1.442695, %v428_v24 }
  0x3a   :  { %v199_v52 = vadd.f32 %v197_v30, %v193_v39  ;;  %v233_v17 = vmul.f32 %v446_v35, %v446_v35  ;;  %v222_v32 = vmul.f32 %v220_v43, %v218_v37  ;;  %v231_v51 = vmul.f32 %v229_v41, %v227_v22 }
  0x3b   :  { %v258_v53 = vrot.slane %v191_v47, 7  ;;  %v278_v27 = vrot.slane %v191_v47, 5  ;;  %v267_v55 = vmul.f32 %v265_v45, %v446_v35  ;;  %v276_v56 = vmul.f32 %v274_v46, %v218_v37 }
  0x3c   :  { %v202_v54 = vadd.f32 %v201_v44, %v199_v52  ;;  %v282_v57 = vmul.f32 %v448_v36, %v448_v36  ;;  %v252_v58 = vadd.f32 %v251_v48, %v246_v28  ;;  %v306_v24 = vrot.slane %v419_v4, 2 }
  0x3d   :  { %v260_v59 = vmul.f32 %v258_v53, %v256_v26  ;;  %v280_v31 = vmul.f32 %v278_v27, %v277_v49  ;;  %v311_v62 = vrot.slane %v419_v4, 1  ;;  %378 = vpow2.f32 %v38_v50 }
  0x3e   :  { %v235_v60 = vrot.slane %v202_v54, 7  ;;  %v283_v61 = vrot.slane %v202_v54, 6  ;;  %v232_v63 = vadd.f32 %v231_v51, %v222_v32  ;;  %380 = vrcp.f32 %v306_v24 }
  0x3f   :  { %v262_v25 = vrot.slane %v260_v59, 6  ;;  %v281_v5 = vadd.f32 %v280_v31, %v276_v56  ;;  %382 = vrcp.f32 %v311_v62  ;;  %v304_v33 = vmul.f32 128.0, %v404_v0 }
  0x40   :  { %v237_v2 = vmul.f32 %v235_v60, %v233_v17  ;;  %v268_v3 = vmul.f32 %v267_v55, %v235_v60  ;;  %v285_v35 = vmul.f32 %v283_v61, %v282_v57  ;;  %v390_v14 = vmov 0.0  }
  0x41   :  { %v264_v6 = vadd.f32 %v262_v25, %v252_v58  ;;  %v336_v21 = vrot.slane %v409_v1, 4 }
  0x42   :  { %v239_v7 = vrot.slane %v237_v2, 6  ;;  %v270_v36 = vrot.slane %v268_v3, 6  ;;  %v287_v8 = vrot.slane %v285_v35, 7 }
  0x44   :  { %v241_v9 = vadd.f32 %v239_v7, %v232_v63  ;;  %v272_v12 = vadd.f32 %v270_v36, %v264_v6  ;;  %v289_v13 = vadd.f32 %v287_v8, %v281_v5 }
  0x46   :  { %v242_v15 = vadd.f32 0.3, %v241_v9  ;;  %v290_v16 = vadd.f32 0.3, %v289_v13  ;;  %v292_v18 = vmul.f32 %v272_v12, %v272_v12  ;;  %v300_v43 = vsub.f32 0.0, %v272_v12 }
  0x47   :  { %v379_v20 = vpop.eup %378 }
  0x48   :  { %v291_v4 = vmul.f32 %v290_v16, %v242_v15  ;;  %v319_v19 = vmax.f32 %v290_v16, 0.0  ;;  %v381_v29 = vpop.eup %380  ;;  %v40_v38 = vadd.f32 1.0, %v379_v20  ;;  %v298_v30 = vmul.f32 0.5, %v290_v16 }
  0x49   :  { %v383_v34 = vpop.eup %382  ;;  %v309_v10 = vmul.f32 %v381_v29, %v304_v33  ;;  %v302_v44 = vmul.f32 0.5, %v242_v15 }
  0x4a   :  { %v293_v23 = vsub.f32 %v291_v4, %v292_v18  ;;  %384 = vrsqrt.f32 %v319_v19  ;;  %v314_v11 = vmul.f32 %v383_v34, %v304_v33  ;;  %vm322_vm4 = vcmp.eq.f32.partialorder %v319_v19, inf }
  0x4b   :  { %v310_v40 = vadd.f32 128.0, %v309_v10  ;;  %v325_v22 = vand.u32 2147483648, %v319_v19  ;;  %vm324_vm5 = vcmp.eq.f32.partialorder %v319_v19, 0.0 }
  0x4c   :  { %vm294_vm1 = vcmp.gt.f32.partialorder %v293_v23, 1e-12  ;;  %v315_v41 = vadd.f32 32.0, %v314_v11 }
  0x4d   :  { %v295_v37 = vsel %vm294_vm1, %v293_v23, 1.0  ;;  %vm316_vm2 = vmand %vm203_vm0, %vm294_vm1 }
  0x4e   :  { %386 = vrcp.f32 %v295_v37  ;;  %v368_v39 = vsel %vm316_vm2, 1.0, %v390_v14  ;;  %v345_v48 = vsel %vm344_vm3, %v310_v40, %v315_v41 }
  0x4f   :  { %388 = vrcp.f32 %v40_v38  ;;  %v339_v26 = vrot.slane %v368_v39, 1 }
  0x51   :  { %v358_v49 = vsel %vm344_vm3, %v336_v21, %v339_v26 }
  0x52   :  { %v359_v55 = vsel %vm346_vm6, %v358_v49, %v404_v0 }
  0x54   :  { %v385_v42 = vpop.eup %384 }
  0x55   :  { %v321_v45 = vmul.f32 %v385_v42, %v319_v19 }
  0x57   :  { %v323_v46 = vsel %vm322_vm4, %v319_v19, %v321_v45 }
  0x58   :  { %v387_v47 = vpop.eup %386  ;;  %v326_v28 = vsel %vm324_vm5, %v325_v22, %v323_v46 }
  0x59   :  { %v299_v50 = vmul.f32 %v387_v47, %v298_v30  ;;  %v301_v52 = vmul.f32 %v387_v47, %v300_v43  ;;  %v303_v17 = vmul.f32 %v387_v47, %v302_v44  ;;  %v327_v1 = vmul.f32 3.34, %v326_v28  ;;  %v389_v54 = vpop.eup %388 }
  0x5b   :  { %v328_v32 = vadd.f32 1.0, %v327_v1  ;;  %v330_v51 = vrot.slane %v301_v52, 7  ;;  %v333_v53 = vrot.slane %v303_v17, 6  ;;  %v347_v27 = vsel %vm346_vm6, %v345_v48, %v299_v50 }
  0x5d   :  { %v342_v56 = vrot.slane %v328_v32, 7  ;;  %v349_v57 = vsel %vm348_vm7, %v347_v27, %v330_v51 }
  0x5e   :  { %v351_v58 = vsel %vm350_vm8, %v349_v57, %v333_v53 }
  0x5f   :  { %v353_v59 = vsel %vm352_vm9, %v351_v58, %v389_v54  ;;  %v360_v31 = vsel %vm348_vm7, %v359_v55, %v342_v56 }
  0x60   :  { %v355_v24 = vsel %vm354_vm10, %v353_v59, %v336_v21  ;;  %362 = vst [vmem:[%s507_s1 + $0x8] sm:$0xf] %v360_v31 }
  0x61   :  { %v357_v60 = vsel %vm356_vm11, %v355_v24, %v336_v21 }
  0x62   :  { %361 = vst [vmem:[%s507_s1] sm:$0xff] %v357_v60 }

// kernel: render_gaussians.3
= control target key start
LH: loop header
LB: loop body
LE: loop exit
PB: predicated region body
PF: predicated region fallthrough
CT: control target
= control target key end

     0   :  { %s5473_s0 = inlined_call_operand.vmem [shape: s32[2], index: 0, kind: input, shape index: {}]   ;;  %s5474_s2 = inlined_call_operand.vmem [shape: f32[9,129], index: 2, kind: input, shape index: {}]   ;;  %s5475_s3 = inlined_call_operand.vmem [shape: f32[3], index: 3, kind: input, shape index: {}]   ;;  %s5476_s4 = inlined_call_operand.hbm [shape: f32[3,64,256], index: 4, kind: output, shape index: {}]   ;;  %s5477_s1 = inlined_call_operand.vmem [shape: s32[256], index: 1, kind: input, shape index: {}]  }
   0x1   :  { %5759 = sst [smem:[#allocation142_spill]] %s5474_s2  ;;  %s9_s17 = sshll.u32 %s5473_s0, 4  ;;  %s10_s17 = int_to_ptr.vmem [resolvable:$true] %s9_s17 }
   0x2   :  { %5760 = sst [smem:[#allocation143_spill]] %s5475_s3  ;;  %s13_s20 = sshll.u32 %s5477_s1, 4  ;;  %s14_s20 = int_to_ptr.vmem [resolvable:$true] %s13_s20 }
   0x3   :  { %5761 = sst [smem:[#allocation144_spill]] %s5476_s4  ;;  %s2680_s21 = scalar_lea.vmem %s10_s17, 16 }
   0x4   :  { %p2681_p0 = scmp.ne.s32.totalorder %s10_s17, %s2680_s21  ;;  %p2685_p1 = scmp.lt.s32.totalorder %s10_s17, %s10_s17 }
   0x5   :  { %p2686_p2 = scmp.lt.s32.totalorder %s2680_s21, %s2680_s21 }
   0x7   :  { %p2687_p3 = por %p2686_p2, %p2685_p1 }
   0x9   :  { %p2688_p4 = pnand %p2687_p3, %p2681_p0 }
   0xb   :  { %2691 = shalt.err (!%p2688_p4)  }
   0xc   :  { %s2788_s22 = smov [#allocation7]   ;;  %s2692_s23 = scalar_lea.vmem %s14_s20, 32 }
   0xd   :  { %12 = dma.vmem_to_smem %s10_s17, 16, %s2788_s22, [#allocation6] }
   0xe   :  { %p2693_p5 = scmp.ne.s32.totalorder %s14_s20, %s2692_s23  ;;  %p2697_p6 = scmp.lt.s32.totalorder %s14_s20, %s14_s20 }
   0xf   :  { %p2698_p7 = scmp.lt.s32.totalorder %s2692_s23, %s2692_s23 }
  0x11   :  { %p2699_p8 = por %p2698_p7, %p2697_p6 }
  0x13   :  { %p2700_p9 = pnand %p2699_p8, %p2693_p5 }
  0x15   :  { %2703 = shalt.err (!%p2700_p9)  }
  0x16   :  { %s2789_s0 = smov [#allocation8]  }
  0x17   :  { %16 = dma.vmem_to_smem %s14_s20, 32, %s2789_s0, [#allocation6] }
  0x18   :  { %2754 = dma.done.wait [#allocation6], 48 }
  0x19   :  { %2755 = vsyncadd [#allocation6], 4294967248 }
  0x1a   :  { %18 = sfence }
  0x1b   :  { %19 = vsyncpa [#allocation11], 0 }
  0x1c   :  { %20 = vsyncpa [#allocation13], 0 }
  0x1d   :  { %21 = vsyncpa [#allocation10], 0 }
  0x1e   :  { %23 = vsyncpa [#allocation10 + $0x1], 0  ;;  %s2834_s1 = smov 0   ;;  %s2836_s24 = smov 0  }
  0x1f   :  { %s2838_s25 = smov 0   ;;  %s2840_s26 = smov 0  }
  0x20 LB: > { %5762 = sst [smem:[#allocation21_spill]] %s2770_s1  ;;  %s2855_s27 = sadd.s32 4294967295, %s2782_s26   ;;  %s2782_s26 = sphi %s2840_s26, %s6220_s26   ;;  %s2778_s25 = sphi %s2838_s25, %s6223_s25   ;;  %s2774_s24 = sphi %s2836_s24, %s6222_s24   ;;  %s2770_s1 = sphi %s2834_s1, %s6221_s1  }
  0x21   : > { %5763 = sst [smem:[#allocation22_spill]] %s2774_s24  ;;  %s2394_s28 = sadd.s32 4294967294, %s2782_s26  }
  0x22   : > { %5764 = sst [smem:[#allocation23_spill]] %s2778_s25  ;;  %s2859_s29 = sadd.s32 1, %s2782_s26  }
  0x23   : > { %5765 = sst [smem:[#allocation24_spill]] %s2782_s26  ;;  %s78_s30 = sadd.s32 1, %s2778_s25 }
  0x24   : > { %5766 = sst [smem:[#allocation25_spill]] %s2855_s27  ;;  %s75_s5 = ssub.s32 %s2782_s26, %s2859_s29 }
  0x25   : > { %5767 = sst [smem:[#allocation26_spill]] %s2859_s29  ;;  %p88_p10 = scmp.ne.s32.totalorder %s2778_s25, %s2774_s24 }
  0x26   : > { %p76_p11 = scmp.eq.s32.totalorder %s75_s5, 0  ;;  %p89_p12 = scmp.eq.s32.totalorder %s2855_s27, 1 }
  0x27   : > { %p94_p13 = scmp.ne.s32.totalorder %s2774_s24, %s2770_s1  ;;  %p95_p0 = scmp.eq.s32.totalorder %s2394_s28, 1 }
  0x28   : > { %s2870_s6 = scalar_select %p76_p11, %s2778_s25, %s78_s30  }
  0x29   : > { %p2872_p1 = por %p89_p12, %p88_p10  ;;  %p2876_p2 = por %p95_p0, %p94_p13 }
  0x2a   : > { %5768 = sst [smem:[#allocation27_spill]] %s2870_s6  ;;  %p2395_p3 = scmp.ge.s32.totalorder %s2782_s26, 1 }
  0x2b   : > { %s5769_s7 = scalar_select %p2872_p1, 1, 0 }
  0x2c   : > { %s5771_s8 = scalar_select %p2876_p2, 1, 0 }
  0x2d   : > { %5770 = sst [smem:[#allocation28_spill]] %s5769_s7  ;;  %p102_p4 = scmp.lt.s32.totalorder %s2782_s26, 3 }
  0x2e   : > { %5772 = sst [smem:[#allocation29_spill]] %s5771_s8  ;;  %p5478_p5 = scmp.eq.s32.totalorder %s2855_s27, 0 }
  0x2f   : > { %p2883_p6 = pnand %p2395_p3, %p102_p4  ;;  %s5774_s2 = sld [smem:[#allocation142_spill]] }
  0x30   : > { %s5775_s3 = sld [smem:[#allocation143_spill]] }
  0x31   : > { %s5773_s9 = scalar_select %p2883_p6, 1, 0 }
  0x32   : > { %p2481_p7 = pneg %p2883_p6 }
  0x34   : > { %p2897_p8 = pnand %p5478_p5, %p2481_p7 }
  0x35   : > { %s114_s12 = sshll.u32 %s5774_s2, 4  ;;  %s115_s12 = int_to_ptr.vmem [resolvable:$true] %s114_s12 }
  0x36   : > { %s128_s15 = sshll.u32 %s5775_s3, 4  ;;  %s2704_s17 = scalar_lea.vmem %s115_s12, 512  ;;  %s129_s15 = int_to_ptr.vmem [resolvable:$true] %s128_s15 }
  0x37   : > { %p2705_p9 = scmp.ne.s32.totalorder %s115_s12, %s2704_s17  ;;  %p2706_p10 = pneg %p2897_p8 }
  0x38   : > { %p2712_p13 = scmp.lt.s32.totalorder %s115_s12, %s115_s12  ;;  %p2713_p0 = scmp.lt.s32.totalorder %s2704_s17, %s2704_s17 }
  0x39   : > { %p2707_p11 = pnand %p2706_p10, %p2705_p9 }
  0x3a   : > { %p2714_p3 = por %p2713_p0, %p2712_p13 }
  0x3b   : > { %p2708_p12 = pneg %p2707_p11 }
  0x3d   : > { %p2715_p4 = pnand %p2714_p3, %p2708_p12 }
  0x3f   : > { %2718 = shalt.err (!%p2715_p4)
}
  0x40   : > { %s2790_s18 = smov [#allocation9]   ;;  %s2791_s19 = smov 256  }
  0x41   : > { %s2792_s20 = smov 16   ;;  %s2719_s21 = scalar_lea.vmem %s129_s15, 16 }
  0x42   : > { %2484 = dma.vmem_to_smem (!%p2897_p8), %s115_s12, 512, %s2790_s18, [#allocation11], %s2791_s19, %s2791_s19, %s2792_s20  }
  0x43   : > { %p2720_p7 = scmp.ne.s32.totalorder %s129_s15, %s2719_s21  ;;  %p2727_p9 = scmp.lt.s32.totalorder %s129_s15, %s129_s15 }
  0x44   : > { %p2728_p11 = scmp.lt.s32.totalorder %s2719_s21, %s2719_s21 }
  0x45   : > { %p2722_p5 = pnand %p2720_p7, %p2706_p10 }
  0x46   : > { %p2729_p1 = por %p2728_p11, %p2727_p9 }
  0x47   : > { %p2723_p2 = pneg %p2722_p5 }
  0x49   : > { %p2730_p6 = pnand %p2729_p1, %p2723_p2 }
  0x4b   : > { %2733 = shalt.err (!%p2730_p6)
}
  0x4c   : > { %s2793_s22 = smov [#allocation12]   ;;  %p5777_p12 = scmp.ne.s32.totalorder %s5773_s9, 0 }
  0x4d   : > { %2487 = dma.vmem_to_smem (!%p2897_p8), %s129_s15, 16, %s2793_s22, [#allocation13]  }
  0x4e   : > { %141 = sbr.rel (%p5777_p12) target bundleno = 803 (0x323), region = 28 }
  0x55   : > { %p5778_p13 = scmp.eq.s32.totalorder %s2855_s27, 0 }
  0x57   : > { %2757 = dma.done.wait (%p5778_p13), [#allocation11], 512   ;;  %p5779_p0 = pmov %p5778_p13 }
  0x59   : > { %2759 = vsyncadd (%p5779_p0), [#allocation11], 4294966784  ;;  %p5780_p5 = pmov %p5779_p0 }
  0x5a   : > { %p5781_p10 = pmov %p5779_p0 }
  0x5b   : > { %2761 = dma.done.wait (%p5780_p5), [#allocation13], 16  }
  0x5c   : > { %2763 = vsyncadd (%p5781_p10), [#allocation13], 4294967280 }
  0x5d   : > { %151 = sfence }
  0x5e   : > { %s5481_s23 = sand.u32 1, %s2774_s24   ;;  %v164_v0 = vlaneseq  ;;  %s2401_s0 = sshll.u32 %s2855_s27, 5  ;;  %v2794_v1 = vmov 0.0   ;;  %v2795_v2 = vmov 1.0  }
  0x5f   : > { %s2927_s28 = smul.u32 192, %s5481_s23  ;;  %s2929_s30 = scvt.s32.f32 %s2401_s0  ;;  %188 = vst [vmem:[#allocation2] sm:$0xff] %v2794_v1  ;;  %189 = vst [vmem:[#allocation2 + $0x8] sm:$0xff] %v2794_v1 }
  0x60   : > { %190 = vst [vmem:[#allocation2 + $0x10] sm:$0xff] %v2794_v1  ;;  %191 = vst [vmem:[#allocation2 + $0x18] sm:$0xff] %v2794_v1  ;;  %v165_v3 = vshrl.u32 %v164_v0, 7  ;;  %v170_v4 = vand.u32 127, %v164_v0  ;;  %s2932_s5 = sld [smem:[#allocation7 + %s2855_s27]] }
  0x61   : > { %192 = vst [vmem:[#allocation2 + $0x20] sm:$0xff] %v2794_v1  ;;  %193 = vst [vmem:[#allocation2 + $0x28] sm:$0xff] %v2794_v1  ;;  %s178_s10 = sadd.f32 0.5, %s2929_s30  ;;  %s2949_s11 = scalar_lea.vmem [#allocation14], %s2927_s28 }
  0x62   : > { %194 = vst [vmem:[#allocation2 + $0x30] sm:$0xff] %v2794_v1  ;;  %195 = vst [vmem:[#allocation2 + $0x38] sm:$0xff] %v2794_v1  ;;  %v166_v5 = vadd.s32 8, %v165_v3  ;;  %v167_v6 = vadd.s32 16, %v165_v3  ;;  %v168_v7 = vadd.s32 24, %v165_v3  ;;  %v171_v8 = vadd.s32 128, %v170_v4 }
  0x63   : > { %196 = vst [vmem:[#allocation3] sm:$0xff] %v2794_v1  ;;  %197 = vst [vmem:[#allocation3 + $0x8] sm:$0xff] %v2794_v1  ;;  %v172_v9 = vcvt.s32.f32 %v165_v3  ;;  %v179_v10 = vstv %s178_s10  ;;  %v184_v11 = vcvt.s32.f32 %v170_v4 }
  0x64   : > { %198 = vst [vmem:[#allocation3 + $0x10] sm:$0xff] %v2794_v1  ;;  %199 = vst [vmem:[#allocation3 + $0x18] sm:$0xff] %v2794_v1  ;;  %v173_v12 = vcvt.s32.f32 %v166_v5  ;;  %v174_v13 = vcvt.s32.f32 %v167_v6  ;;  %v175_v14 = vcvt.s32.f32 %v168_v7  ;;  %v185_v15 = vcvt.s32.f32 %v171_v8 }
  0x65   : > { %200 = vst [vmem:[#allocation3 + $0x20] sm:$0xff] %v2794_v1  ;;  %201 = vst [vmem:[#allocation3 + $0x28] sm:$0xff] %v2794_v1  ;;  %v2936_v16 = vadd.f32 %v179_v10, %v172_v9  ;;  %v2938_v17 = vadd.f32 0.5, %v184_v11 }
  0x66   : > { %202 = vst [vmem:[#allocation3 + $0x30] sm:$0xff] %v2794_v1  ;;  %203 = vst [vmem:[#allocation3 + $0x38] sm:$0xff] %v2794_v1  ;;  %v2940_v18 = vadd.f32 %v179_v10, %v173_v12  ;;  %v2942_v19 = vadd.f32 %v179_v10, %v174_v13  ;;  %v2944_v20 = vadd.f32 %v179_v10, %v175_v14  ;;  %v2946_v21 = vadd.f32 0.5, %v185_v15  ;;  %p2403_p1 = scmp.le.s32.totalorder %s2932_s5, 0 }
  0x67   : > { %204 = vst [vmem:[#allocation4] sm:$0xff] %v2794_v1  ;;  %205 = vst [vmem:[#allocation4 + $0x8] sm:$0xff] %v2794_v1  ;;  %s2952_s12 = smov (!%p2403_p1), 0  }
  0x68   : > { %206 = vst [vmem:[#allocation4 + $0x10] sm:$0xff] %v2794_v1  ;;  %207 = vst [vmem:[#allocation4 + $0x18] sm:$0xff] %v2794_v1 }
  0x69   : > { %208 = vst [vmem:[#allocation4 + $0x20] sm:$0xff] %v2794_v1  ;;  %209 = vst [vmem:[#allocation4 + $0x28] sm:$0xff] %v2794_v1 }
  0x6a   : > { %210 = vst [vmem:[#allocation4 + $0x30] sm:$0xff] %v2794_v1  ;;  %211 = vst [vmem:[#allocation4 + $0x38] sm:$0xff] %v2794_v1 }
  0x6b   : > { %212 = vst [vmem:[#allocation5] sm:$0xff] %v2795_v2  ;;  %213 = vst [vmem:[#allocation5 + $0x8] sm:$0xff] %v2795_v2  ;;  %2358 = sbr.rel (%p2403_p1) target bundleno = 763 (0x2fb), region = 81 }
  0x6c   : > { %214 = vst [vmem:[#allocation5 + $0x10] sm:$0xff] %v2795_v2  ;;  %215 = vst [vmem:[#allocation5 + $0x18] sm:$0xff] %v2795_v2 }
  0x6d   : > { %216 = vst [vmem:[#allocation5 + $0x20] sm:$0xff] %v2795_v2  ;;  %217 = vst [vmem:[#allocation5 + $0x28] sm:$0xff] %v2795_v2 }
  0x6e   : > { %218 = vst [vmem:[#allocation5 + $0x30] sm:$0xff] %v2795_v2  ;;  %219 = vst [vmem:[#allocation5 + $0x38] sm:$0xff] %v2795_v2 }
  0x6f   : > { %5782 = vst [vmem:[#allocation30_spill] sm:$0xff] %v2936_v16  ;;  %5783 = vst [vmem:[#allocation31_spill] sm:$0xff] %v2938_v17 }
  0x70   : > { %5784 = vst [vmem:[#allocation32_spill] sm:$0xff] %v2940_v18  ;;  %5785 = vst [vmem:[#allocation33_spill] sm:$0xff] %v2942_v19 }
  0x71   : > { %5786 = vst [vmem:[#allocation34_spill] sm:$0xff] %v2944_v20  ;;  %5787 = vst [vmem:[#allocation35_spill] sm:$0xff] %v2946_v21 }
  0x72 LB: >> { %v2957_v22 = vld [vmem:[#allocation5] sm:$0xff]  ;;  %v2959_v23 = vld [vmem:[#allocation5 + $0x8] sm:$0xff]  ;;  %s2786_s12 = sphi %s2952_s12, %s225_s12  }
  0x73   : >> { %v2961_v24 = vld [vmem:[#allocation5 + $0x10] sm:$0xff]  ;;  %v2963_v25 = vld [vmem:[#allocation5 + $0x18] sm:$0xff] }
  0x74   : >> { %5792 = vst [vmem:[#allocation36_spill] sm:$0xff] %v2963_v25  ;;  %v2965_v26 = vld [vmem:[#allocation5 + $0x20] sm:$0xff]  ;;  %v2967_v27 = vld [vmem:[#allocation5 + $0x28] sm:$0xff] }
  0x75   : >> { %5793 = vst [vmem:[#allocation37_spill] sm:$0xff] %v2965_v26  ;;  %5794 = vst [vmem:[#allocation38_spill] sm:$0xff] %v2967_v27  ;;  %v2969_v28 = vld [vmem:[#allocation5 + $0x30] sm:$0xff]  ;;  %v2971_v29 = vld [vmem:[#allocation5 + $0x38] sm:$0xff]  ;;  %v236_v30 = vmax.f32 %v2957_v22, %v2965_v26  ;;  %v237_v31 = vmax.f32 %v2959_v23, %v2967_v27 }
  0x76   : >> { %v5790_v16 = vld [vmem:[#allocation30_spill] sm:$0xff]  ;;  %v5791_v17 = vld [vmem:[#allocation31_spill] sm:$0xff]  ;;  %5795 = vst [vmem:[#allocation39_spill] sm:$0xff] %v2969_v28  ;;  %5796 = vst [vmem:[#allocation40_spill] sm:$0xff] %v2971_v29  ;;  %v238_v32 = vmax.f32 %v2961_v24, %v2969_v28  ;;  %v239_v33 = vmax.f32 %v2963_v25, %v2971_v29 }
  0x77   : >> { %v5788_v18 = vld [vmem:[#allocation32_spill] sm:$0xff]  ;;  %v240_v34 = vmax.f32 %v236_v30, %v237_v31 }
  0x78   : >> { %v5789_v21 = vld [vmem:[#allocation35_spill] sm:$0xff]  ;;  %v241_v35 = vmax.f32 %v238_v32, %v239_v33 }
  0x7a   : >> { %v242_v36 = vmax.f32 %v240_v34, %v241_v35 }
  0x7c   : >> { %243 = vmax.xlane.f32.xlu0 %v242_v36 }
 0x109   : >> { %v244_v37 = vpop.xlane.xlu0 %243 }
 0x10a   : >> { %v245_v38 = vrot.slane %v244_v37, 4 }
 0x10c   : >> { %v246_v39 = vmax.f32 %v244_v37, %v245_v38 }
 0x10e   : >> { %v247_v40 = vrot.slane %v246_v39, 2 }
 0x110   : >> { %v248_v41 = vmax.f32 %v246_v39, %v247_v40 }
 0x112   : >> { %v249_v42 = vrot.slane %v248_v41, 1 }
 0x114   : >> { %v250_v43 = vmax.f32 %v248_v41, %v249_v42 }
 0x116   : >> { %2463 = vpush %v250_v43 }
 0x147   : >> { %s2464_s13 = spop %2463 }
 0x148   : >> { %p252_p2 = scmp.ge.f32.partialorder %s2464_s13, 0.0001 }
 0x14a   : >> { %255 = sbr.rel (!%p252_p2) target bundleno = 753 (0x2f1), region = 47 }
 0x151   : >> { %s5797_s27 = sld [smem:[#allocation25_spill]]  ;;  %s2404_s14 = sshll.u32 %s2786_s12, 3  ;;  %v5813_v19 = vld [vmem:[#allocation33_spill] sm:$0xff] }
 0x157   : >> { %s5798_s9 = sshll.u32 %s5797_s27, 7 }
 0x158   : >> { %s2984_s15 = sadd.s32 %s2404_s14, %s5798_s9 }
 0x159   : >> { %s282_s16 = sld [smem:[#allocation8 + %s2984_s15]]  ;;  %s512_s17 = sadd.s32 1, %s2984_s15 }
 0x15a   : >> { %s743_s18 = sadd.s32 2, %s2984_s15  ;;  %s974_s19 = sadd.s32 3, %s2984_s15 }
 0x15b   : >> { %s2990_s20 = sld [smem:[#allocation8 + %s512_s17]]  ;;  %s1205_s21 = sadd.s32 4, %s2984_s15 }
 0x15c   : >> { %s2993_s22 = sld [smem:[#allocation8 + %s743_s18]]  ;;  %s1436_s30 = sadd.s32 5, %s2984_s15 }
 0x15d   : >> { %s2995_s0 = sld [smem:[#allocation8 + %s974_s19]] }
 0x15e   : >> { %s2997_s28 = sld [smem:[#allocation8 + %s1205_s21]] }
 0x15f   : >> { %s283_s10 = sshra.s32 %s282_s16, 7  ;;  %s3000_s13 = sand.u32 127, %s282_s16 }
 0x160   : >> { %s3002_s14 = sshll.u32 %s283_s10, 10  ;;  %s290_s17 = sadd.s32 128, %s3000_s13 }
 0x161   : >> { %s288_s18 = sadd.s32 %s3002_s14, %s3000_s13  ;;  %s291_s19 = sadd.s32 %s3002_s14, %s290_s17 }
 0x162   : >> { %s289_s21 = sld [smem:[#allocation9 + %s288_s18]]  ;;  %s293_s9 = sadd.s32 256, %s3000_s13 }
 0x163   : >> { %s292_s16 = sld [smem:[#allocation9 + %s291_s19]]  ;;  %s296_s23 = sadd.s32 384, %s3000_s13 }
 0x164   : >> { %s294_s2 = sadd.s32 %s3002_s14, %s293_s9  ;;  %s297_s3 = sadd.s32 %s3002_s14, %s296_s23 }
 0x165   : >> { %s295_s6 = sld [smem:[#allocation9 + %s294_s2]]  ;;  %s299_s25 = sadd.s32 512, %s3000_s13 }
 0x166   : >> { %s298_s10 = sld [smem:[#allocation9 + %s297_s3]]  ;;  %s302_s29 = sadd.s32 640, %s3000_s13 }
 0x167   : >> { %s300_s8 = sadd.s32 %s3002_s14, %s299_s25  ;;  %s303_s1 = sadd.s32 %s3002_s14, %s302_s29 }
 0x168   : >> { %s301_s26 = sld [smem:[#allocation9 + %s300_s8]]  ;;  %v315_v44 = vstv %s289_s21  ;;  %s305_s18 = sadd.s32 768, %s3000_s13 }
 0x169   : >> { %v3016_v45 = vstv %s292_s16  ;;  %s3018_s17 = sld [smem:[#allocation8 + %s1436_s30]]  ;;  %v3022_v46 = vsub.f32 %v5791_v17, %v315_v44  ;;  %s514_s2 = sshra.s32 %s2990_s20, 7  ;;  %v3028_v48 = vsub.f32 %v5789_v21, %v315_v44 }
 0x16a   : >> { %5799 = vst [vmem:[#allocation41_spill] sm:$0xff] %v3016_v45  ;;  %v319_v47 = vsub.f32 %v5790_v16, %v3016_v45  ;;  %v320_v49 = vsub.f32 %v5788_v18, %v3016_v45  ;;  %s3032_s3 = sld [smem:[#allocation9 + %s303_s1]]  ;;  %s3034_s25 = sshll.u32 %s514_s2, 10 }
 0x16b   : >> { %5800 = vst [vmem:[#allocation42_spill] sm:$0xff] %v3022_v46  ;;  %5801 = vst [vmem:[#allocation43_spill] sm:$0xff] %v3028_v48  ;;  %s3037_s29 = sadd.s32 %s3002_s14, %s305_s18  ;;  %v323_v50 = vstv %s295_s6  ;;  %s3042_s8 = sand.u32 127, %s2990_s20 }
 0x16c   : >> { %v3039_v51 = vstv %s298_s10  ;;  %v3045_v52 = vmul.f32 %v323_v50, %v3022_v46  ;;  %s519_s1 = sadd.s32 %s3034_s25, %s3042_s8  ;;  %s521_s23 = sadd.s32 128, %s3042_s8  ;;  %v3052_v54 = vmul.f32 %v323_v50, %v3028_v48 }
 0x16d   : >> { %5802 = vst [vmem:[#allocation44_spill] sm:$0xff] %v3039_v51  ;;  %v327_v53 = vmul.f32 %v3039_v51, %v319_v47  ;;  %v328_v55 = vmul.f32 %v3039_v51, %v320_v49  ;;  %s3055_s6 = sld [smem:[#allocation9 + %s519_s1]]  ;;  %s522_s9 = sadd.s32 %s3034_s25, %s521_s23 }
 0x16e   : >> { %5803 = vst [vmem:[#allocation45_spill] sm:$0xff] %v3045_v52  ;;  %5804 = vst [vmem:[#allocation46_spill] sm:$0xff] %v3052_v54  ;;  %v3059_v57 = vstv %s301_s26  ;;  %s523_s20 = sld [smem:[#allocation9 + %s522_s9]]  ;;  %s524_s30 = sadd.s32 256, %s3042_s8 }
 0x16f   : >> { %v331_v56 = vadd.f32 %v327_v53, %v3045_v52  ;;  %5805 = vst [vmem:[#allocation47_spill] sm:$0xff] %v3059_v57  ;;  %v332_v58 = vadd.f32 %v327_v53, %v3052_v54  ;;  %v348_v59 = vmul.f32 %v3059_v57, %v319_v47  ;;  %s525_s19 = sadd.s32 %s3034_s25, %s524_s30  ;;  %s527_s21 = sadd.s32 384, %s3042_s8  ;;  %v333_v60 = vadd.f32 %v328_v55, %v3045_v52 }
 0x170   : >> { %v349_v61 = vmul.f32 %v3059_v57, %v320_v49  ;;  %s3069_s26 = sld [smem:[#allocation9 + %s525_s19]]  ;;  %s528_s16 = sadd.s32 %s3034_s25, %s527_s21  ;;  %v334_v14 = vadd.f32 %v328_v55, %v3052_v54  ;;  %v3166_v55 = vsub.f32 %v5813_v19, %v3016_v45 }
 0x171   : >> { %v339_v62 = vmul.f32 %v331_v56, %v3022_v46  ;;  %v340_v63 = vmul.f32 %v332_v58, %v3028_v48  ;;  %v352_v0 = vmul.f32 %v348_v59, %v319_v47  ;;  %s529_s10 = sld [smem:[#allocation9 + %s528_s16]]  ;;  %s530_s18 = sadd.s32 512, %s3042_s8  ;;  %v341_v1 = vmul.f32 %v333_v60, %v3022_v46 }
 0x172   : >> { %v3075_v2 = vmul.f32 %v349_v61, %v320_v49  ;;  %s531_s2 = sadd.s32 %s3034_s25, %s530_s18  ;;  %s533_s1 = sadd.s32 640, %s3042_s8  ;;  %v342_v40 = vmul.f32 %v334_v14, %v3028_v48  ;;  %v3169_v56 = vstv %s3032_s3 }
 0x173   : >> { %v3079_v3 = vadd.f32 %v352_v0, %v339_v62  ;;  %s3081_s23 = sld [smem:[#allocation9 + %s531_s2]]  ;;  %s534_s9 = sadd.s32 %s3034_s25, %s533_s1  ;;  %v546_v4 = vstv %s3055_s6  ;;  %v3085_v5 = vadd.f32 %v352_v0, %v340_v63  ;;  %5814 = vst [vmem:[#allocation55_spill] sm:$0xff] %v3169_v56 }
 0x174   : >> { %s3088_s30 = sld [smem:[#allocation9 + %s3037_s29]]  ;;  %s536_s19 = sadd.s32 768, %s3042_s8  ;;  %v3092_v6 = vsub.f32 %v5791_v17, %v546_v4  ;;  %v3094_v7 = vstv %s523_s20  ;;  %v3097_v8 = vsub.f32 %v5789_v21, %v546_v4  ;;  %v3100_v9 = vadd.f32 %v3075_v2, %v341_v1 }
 0x175   : >> { %5807 = vst [vmem:[#allocation49_spill] sm:$0xff] %v3094_v7  ;;  %v364_v10 = vsub.f32 0.0, %v3079_v3  ;;  %s3103_s6 = sld [smem:[#allocation9 + %s534_s9]]  ;;  %v550_v11 = vsub.f32 %v5790_v16, %v3094_v7  ;;  %s745_s29 = sshra.s32 %s2993_s22, 7  ;;  %v365_v12 = vsub.f32 0.0, %v3085_v5  ;;  %v551_v36 = vsub.f32 %v5788_v18, %v3094_v7 }
 0x176   : >> { %5806 = vst [vmem:[#allocation48_spill] sm:$0xff] %v3092_v6  ;;  %5808 = vst [vmem:[#allocation50_spill] sm:$0xff] %v3097_v8  ;;  %s3110_s21 = sadd.s32 %s3034_s25, %s536_s19  ;;  %v554_v13 = vstv %s3069_s26  ;;  %s3113_s20 = sshll.u32 %s745_s29, 10  ;;  %v366_v35 = vsub.f32 0.0, %v3100_v9  ;;  %v3176_v59 = vadd.f32 %v3075_v2, %v342_v40  ;;  %vm405_vm0 = vcmp.ge.f32.partialorder %v3079_v3, 0.0 }
 0x177   : >> { %v372_v15 = vmul.f32 1.442695, %v364_v10  ;;  %v3117_v30 = vmul.f32 %v554_v13, %v3092_v6  ;;  %v3119_v31 = vstv %s529_s10  ;;  %s3122_s16 = sand.u32 127, %s2993_s22  ;;  %s976_s18 = sshra.s32 %s2995_s0, 7  ;;  %v374_v32 = vmul.f32 1.442695, %v365_v12 }
 0x178   : >> { %5810 = vst [vmem:[#allocation52_spill] sm:$0xff] %v3119_v31  ;;  %v558_v33 = vmul.f32 %v3119_v31, %v550_v11  ;;  %s750_s26 = sadd.s32 %s3113_s20, %s3122_s16  ;;  %s752_s2 = sadd.s32 128, %s3122_s16  ;;  %v3130_v34 = vmul.f32 %v554_v13, %v3097_v8  ;;  %v3151_v42 = vmul.f32 %v3119_v31, %v551_v36  ;;  %v376_v49 = vmul.f32 1.442695, %v366_v35  ;;  %5815 = vst [vmem:[#allocation56_spill] sm:$0xff] %v3176_v59 }
 0x179   : >> { %5809 = vst [vmem:[#allocation51_spill] sm:$0xff] %v3117_v30  ;;  %2552 = vpow2.f32 %v372_v15  ;;  %v3136_v37 = vstv %s3081_s23  ;;  %s3138_s22 = sld [smem:[#allocation9 + %s750_s26]]  ;;  %s753_s10 = sadd.s32 %s3113_s20, %s752_s2  ;;  %v350_v12 = vmul.f32 %v3059_v57, %v3166_v55  ;;  %vm406_vm2 = vcmp.ge.f32.partialorder %v3085_v5, 0.0 }
 0x17a   : >> { %5811 = vst [vmem:[#allocation53_spill] sm:$0xff] %v3130_v34  ;;  %5812 = vst [vmem:[#allocation54_spill] sm:$0xff] %v3136_v37  ;;  %v562_v38 = vadd.f32 %v558_v33, %v3117_v30  ;;  %v579_v39 = vmul.f32 %v3136_v37, %v550_v11  ;;  %s3143_s1 = sld [smem:[#allocation9 + %s753_s10]]  ;;  %s755_s9 = sadd.s32 256, %s3122_s16  ;;  %2554 = vpow2.f32 %v374_v32  ;;  %v563_v41 = vadd.f32 %v558_v33, %v3130_v34 }
 0x17b   : >> { %s756_s19 = sadd.s32 %s3113_s20, %s755_s9  ;;  %s758_s29 = sadd.s32 384, %s3122_s16  ;;  %v580_v43 = vmul.f32 %v3136_v37, %v551_v36  ;;  %v564_v53 = vadd.f32 %v3151_v42, %v3117_v30  ;;  %2556 = vpow2.f32 %v376_v49  ;;  %v367_v32 = vsub.f32 0.0, %v3176_v59 }
 0x17c   : >> { %v570_v44 = vmul.f32 %v562_v38, %v3092_v6  ;;  %v583_v47 = vmul.f32 %v579_v39, %v550_v11  ;;  %s3155_s23 = sld [smem:[#allocation9 + %s756_s19]]  ;;  %s759_s26 = sadd.s32 %s3113_s20, %s758_s29  ;;  %v571_v50 = vmul.f32 %v563_v41, %v3097_v8  ;;  %v3209_v11 = vmul.f32 %v3039_v51, %v3166_v55 }
 0x17d   : >> { %s3158_s2 = sld [smem:[#allocation9 + %s759_s26]]  ;;  %s761_s10 = sadd.s32 512, %s3122_s16  ;;  %v572_v62 = vmul.f32 %v564_v53, %v3092_v6  ;;  %v3185_v63 = vmul.f32 %v580_v43, %v551_v36  ;;  %v3238_v43 = vstv %s3088_s30  ;;  %vm407_vm10 = vcmp.ge.f32.partialorder %v3100_v9, 0.0 }
 0x17e   : >> { %v3171_v58 = vadd.f32 %v583_v47, %v570_v44  ;;  %s762_s9 = sadd.s32 %s3113_s20, %s761_s10  ;;  %s764_s19 = sadd.s32 640, %s3122_s16  ;;  %v3182_v61 = vadd.f32 %v583_v47, %v571_v50  ;;  %5819 = vst [vmem:[#allocation60_spill] sm:$0xff] %v3209_v11  ;;  %5823 = vst [vmem:[#allocation64_spill] sm:$0xff] %v3238_v43  ;;  %v3255_v50 = vadd.f32 %v3209_v11, %v3045_v52 }
 0x17f   : >> { %s3178_s29 = sld [smem:[#allocation9 + %s762_s9]]  ;;  %s765_s26 = sadd.s32 %s3113_s20, %s764_s19  ;;  %v777_v60 = vstv %s3138_s22  ;;  %5816 = vst [vmem:[#allocation57_spill] sm:$0xff] %v3185_v63  ;;  %v3234_v39 = vadd.f32 %v3185_v63, %v572_v62 }
 0x180   : >> { %s3188_s3 = sld [smem:[#allocation9 + %s3110_s21]]  ;;  %v595_v0 = vsub.f32 0.0, %v3171_v58  ;;  %s767_s10 = sadd.s32 768, %s3122_s16  ;;  %v3193_v1 = vsub.f32 %v5791_v17, %v777_v60  ;;  %v3196_v2 = vstv %s3143_s1  ;;  %v596_v10 = vsub.f32 0.0, %v3182_v61  ;;  %5825 = vst [vmem:[#allocation66_spill] sm:$0xff] %v3255_v50 }
 0x181   : >> { %5818 = vst [vmem:[#allocation59_spill] sm:$0xff] %v3196_v2  ;;  %s3198_s22 = sld [smem:[#allocation9 + %s765_s26]]  ;;  %v781_v4 = vsub.f32 %v5790_v16, %v3196_v2  ;;  %s3204_s9 = sshll.u32 %s976_s18, 10  ;;  %v3221_v15 = vsub.f32 %v5789_v21, %v777_v60  ;;  %vm636_vm5 = vcmp.ge.f32.partialorder %v3171_v58, 0.0  ;;  %vm637_vm7 = vcmp.ge.f32.partialorder %v3182_v61, 0.0 }
 0x182   : >> { %5817 = vst [vmem:[#allocation58_spill] sm:$0xff] %v3193_v1  ;;  %v603_v13 = vmul.f32 1.442695, %v595_v0  ;;  %s3214_s21 = sadd.s32 %s3113_s20, %s767_s10  ;;  %v785_v14 = vstv %s3155_s23  ;;  %s3218_s1 = sand.u32 127, %s2995_s0  ;;  %v605_v38 = vmul.f32 1.442695, %v596_v10 }
 0x183   : >> { %5820 = vst [vmem:[#allocation61_spill] sm:$0xff] %v3221_v15  ;;  %v2553_v33 = vpop.eup %2552  ;;  %v3225_v35 = vmul.f32 %v785_v14, %v3193_v1  ;;  %v3228_v36 = vstv %s3158_s2  ;;  %s981_s18 = sadd.s32 %s3204_s9, %s3218_s1  ;;  %s983_s23 = sadd.s32 128, %s3218_s1  ;;  %v378_v0 = vmul.f32 1.442695, %v367_v32  ;;  %v565_v32 = vadd.f32 %v3151_v42, %v3130_v34 }
 0x184   : >> { %5822 = vst [vmem:[#allocation63_spill] sm:$0xff] %v3228_v36  ;;  %v2555_v40 = vpop.eup %2554  ;;  %v389_v41 = vmul.f32 %v2553_v33, %v3169_v56  ;;  %2558 = vpow2.f32 %v603_v13  ;;  %v789_v44 = vmul.f32 %v3228_v36, %v781_v4  ;;  %s3241_s0 = sld [smem:[#allocation9 + %s981_s18]]  ;;  %s984_s2 = sadd.s32 %s3204_s9, %s983_s23  ;;  %v3267_v13 = vmul.f32 %v785_v14, %v3221_v15 }
 0x185   : >> { %5821 = vst [vmem:[#allocation62_spill] sm:$0xff] %v3225_v35  ;;  %v3245_v47 = vstv %s3178_s29  ;;  %s3247_s19 = sld [smem:[#allocation9 + %s984_s2]]  ;;  %s986_s26 = sadd.s32 256, %s3218_s1  ;;  %v3251_v49 = vmul.f32 %v2555_v40, %v3169_v56  ;;  %2560 = vpow2.f32 %v605_v38  ;;  %v597_v33 = vsub.f32 0.0, %v3234_v39 }
 0x186   : >> { %5824 = vst [vmem:[#allocation65_spill] sm:$0xff] %v3245_v47  ;;  %v397_v53 = vmin.f32 %v389_v41, 0.999  ;;  %v793_v60 = vadd.f32 %v789_v44, %v3225_v35  ;;  %v810_v62 = vmul.f32 %v3245_v47, %v781_v4  ;;  %s987_s30 = sadd.s32 %s3204_s9, %s986_s26  ;;  %s989_s29 = sadd.s32 384, %s3218_s1  ;;  %5826 = vst [vmem:[#allocation67_spill] sm:$0xff] %v3267_v13  ;;  %v3279_v41 = vstv %s3103_s6 }
 0x187   : >> { %s3262_s10 = sld [smem:[#allocation9 + %s987_s30]]  ;;  %s990_s18 = sadd.s32 %s3204_s9, %s989_s29  ;;  %v398_v10 = vmin.f32 %v3251_v49, 0.999  ;;  %5827 = vst [vmem:[#allocation68_spill] sm:$0xff] %v3279_v41  ;;  %v3282_v14 = vstv %s3188_s3  ;;  %v2557_v49 = vpop.eup %2556  ;;  %2562 = vpow2.f32 %v378_v0  ;;  %v3326_v57 = vmul.f32 %v565_v32, %v3097_v8 }
 0x188   : >> { %vm413_vm1 = vcmp.ge.f32.partialorder %v397_v53, 0.003921569  ;;  %v801_v38 = vmul.f32 %v793_v60, %v3193_v1  ;;  %v3271_v40 = vmul.f32 %v810_v62, %v781_v4  ;;  %s3273_s23 = sld [smem:[#allocation9 + %s990_s18]]  ;;  %s992_s2 = sadd.s32 512, %s3218_s1  ;;  %5828 = vst [vmem:[#allocation69_spill] sm:$0xff] %v3282_v14  ;;  %v3288_v4 = vmul.f32 %v350_v12, %v3166_v55 }
 0x189   : >> { %s993_s26 = sadd.s32 %s3204_s9, %s992_s2  ;;  %s995_s30 = sadd.s32 640, %s3218_s1  ;;  %vm3292_vm3 = vmand %vm405_vm0, %vm413_vm1  ;;  %vm3303_vm4 = vcmp.ge.f32.partialorder %v398_v10, 0.003921569  ;;  %v794_v12 = vadd.f32 %v789_v44, %v3267_v13  ;;  %5836 = vst [vmem:[#allocation73_spill] sm:$0xff] %v3326_v57  ;;  %v3345_v32 = vmul.f32 %v2557_v49, %v3169_v56 }
 0x18a   : >> { %5829 = vst [vmem:[#allocation70_spill] sm:$0xff] %v3288_v4  ;;  %v3297_v42 = vadd.f32 %v3271_v40, %v801_v38  ;;  %s3299_s6 = sld [smem:[#allocation9 + %s993_s26]]  ;;  %s996_s3 = sadd.s32 %s3204_s9, %s995_s30  ;;  %v1008_v62 = vstv %s3241_s0  ;;  %v607_v38 = vmul.f32 1.442695, %v597_v33  ;;  %v429_v44 = vsel %vm3292_vm3, %v397_v53, 0.0  ;;  %vm3340_vm6 = vmand %vm406_vm2, %vm3303_vm4 }
 0x18b   : >> { %s3308_s29 = sld [smem:[#allocation9 + %s3214_s21]]  ;;  %s998_s18 = sadd.s32 768, %s3218_s1  ;;  %v3312_v3 = vsub.f32 %v5791_v17, %v1008_v62  ;;  %v3315_v55 = vstv %s3247_s19  ;;  %v3349_v53 = vsub.f32 %v5788_v18, %v3196_v2  ;;  %v3352_v51 = vmul.f32 %v429_v44, %v2957_v22 }
 0x18c   : >> { %5835 = vst [vmem:[#allocation72_spill] sm:$0xff] %v3315_v55  ;;  %v826_v28 = vsub.f32 0.0, %v3297_v42  ;;  %s3320_s0 = sld [smem:[#allocation9 + %s996_s3]]  ;;  %v1012_v0 = vsub.f32 %v5790_v16, %v3315_v55  ;;  %s1207_s21 = sshra.s32 %s2997_s28, 7  ;;  %2564 = vpow2.f32 %v607_v38  ;;  %v496_v34 = vsub.f32 1.0, %v429_v44 }
 0x18d   : >> { %5834 = vst [vmem:[#allocation71_spill] sm:$0xff] %v3312_v3  ;;  %s3331_s19 = sadd.s32 %s3204_s9, %s998_s18  ;;  %v1016_v33 = vstv %s3262_s10  ;;  %s3334_s2 = sshll.u32 %s1207_s21, 10  ;;  %5839 = vst [vmem:[#allocation74_spill] sm:$0xff] %v3352_v51  ;;  %v446_v52 = vmul.f32 %v3238_v43, %v3352_v51  ;;  %v3399_v44 = vsub.f32 %v5789_v21, %v1008_v62  ;;  %v3410_v2 = vstv %s3198_s22 }
 0x18e   : >> { %v2559_v60 = vpop.eup %2558  ;;  %v834_v29 = vmul.f32 1.442695, %v826_v28  ;;  %v3355_v5 = vmul.f32 %v1016_v33, %v3312_v3  ;;  %v3358_v20 = vstv %s3273_s23  ;;  %s3361_s10 = sand.u32 127, %s2997_s28  ;;  %v802_v28 = vmul.f32 %v794_v12, %v3221_v15  ;;  %5846 = vst [vmem:[#allocation81_spill] sm:$0xff] %v3410_v2 }
 0x18f   : >> { %5841 = vst [vmem:[#allocation76_spill] sm:$0xff] %v3358_v20  ;;  %v2561_v49 = vpop.eup %2560  ;;  %v620_v45 = vmul.f32 %v2559_v60, %v3279_v41  ;;  %v3367_v27 = vmul.f32 %v3358_v20, %v1012_v0  ;;  %s1212_s30 = sadd.s32 %s3334_s2, %s3361_s10  ;;  %s1214_s3 = sadd.s32 128, %s3361_s10  ;;  %v430_v60 = vsel %vm3340_vm6, %v398_v10, 0.0  ;;  %5844 = vst [vmem:[#allocation79_spill] sm:$0xff] %v3399_v44  ;;  %vm867_vm11 = vcmp.ge.f32.partialorder %v3297_v42, 0.0 }
 0x190   : >> { %5840 = vst [vmem:[#allocation75_spill] sm:$0xff] %v3355_v5  ;;  %2566 = vpow2.f32 %v834_v29  ;;  %v3374_v8 = vstv %s3299_s6  ;;  %s3376_s28 = sld [smem:[#allocation9 + %s1212_s30]]  ;;  %s1215_s23 = sadd.s32 %s3334_s2, %s1214_s3  ;;  %v3382_v48 = vmul.f32 %v2561_v49, %v3279_v41  ;;  %v3395_v10 = vmul.f32 %v430_v60, %v2959_v23  ;;  %v256_v29 = vld [vmem:[#allocation2] sm:$0xff] }
 0x191   : >> { %5842 = vst [vmem:[#allocation77_spill] sm:$0xff] %v3374_v8  ;;  %v628_v11 = vmin.f32 %v620_v45, 0.999  ;;  %v1024_v12 = vadd.f32 %v3367_v27, %v3355_v5  ;;  %v1041_v38 = vmul.f32 %v3374_v8, %v1012_v0  ;;  %s3387_s18 = sld [smem:[#allocation9 + %s1215_s23]]  ;;  %s1217_s6 = sadd.s32 256, %s3361_s10  ;;  %v497_v51 = vsub.f32 1.0, %v430_v60  ;;  %v3407_v26 = vpop.eup %2562 }
 0x192   : >> { %s1218_s21 = sadd.s32 %s3334_s2, %s1217_s6  ;;  %s1220_s30 = sadd.s32 384, %s3361_s10  ;;  %5843 = vst [vmem:[#allocation78_spill] sm:$0xff] %v3395_v10  ;;  %5845 = vst [vmem:[#allocation80_spill] sm:$0xff] %v3407_v26  ;;  %v3413_v45 = vstv %s3308_s29  ;;  %v3419_v62 = vadd.f32 %v3271_v40, %v802_v28  ;;  %v3437_v40 = vmul.f32 %v1016_v33, %v3399_v44  ;;  %v447_v33 = vmul.f32 %v3238_v43, %v3395_v10  ;;  %v257_v10 = vld [vmem:[#allocation2 + $0x8] sm:$0xff] }
 0x193   : >> { %vm644_vm8 = vcmp.ge.f32.partialorder %v628_v11, 0.003921569  ;;  %v1032_v49 = vmul.f32 %v1024_v12, %v3312_v3  ;;  %v3402_v54 = vmul.f32 %v1041_v38, %v1012_v0  ;;  %s3404_s3 = sld [smem:[#allocation9 + %s1218_s21]]  ;;  %s1221_s23 = sadd.s32 %s3334_s2, %s1220_s30  ;;  %5847 = vst [vmem:[#allocation82_spill] sm:$0xff] %v3413_v45  ;;  %v3423_v12 = vmul.f32 %v496_v34, %v2957_v22 }
 0x194   : >> { %s3415_s6 = sld [smem:[#allocation9 + %s1221_s23]]  ;;  %s1223_s26 = sadd.s32 512, %s3361_s10  ;;  %vm3427_vm9 = vmand %vm636_vm5, %vm644_vm8  ;;  %5850 = vst [vmem:[#allocation83_spill] sm:$0xff] %v3437_v40  ;;  %v3442_v22 = vmul.f32 %v3228_v36, %v3349_v53  ;;  %v3444_v34 = vadd.f32 %v446_v52, %v256_v29  ;;  %v5851_v28 = vmin.f32 %v3382_v48, 0.999  ;;  %v3470_v36 = vmul.f32 %v497_v51, %v2959_v23 }
 0x195   : >> { %v3432_v38 = vadd.f32 %v3402_v54, %v1032_v49  ;;  %s1224_s22 = sadd.s32 %s3334_s2, %s1223_s26  ;;  %s1226_s29 = sadd.s32 640, %s3361_s10  ;;  %v3475_v37 = vstv %s3320_s0  ;;  %v827_v30 = vsub.f32 0.0, %v3419_v62  ;;  %v1025_v4 = vadd.f32 %v3367_v27, %v3437_v40 }
 0x196   : >> { %s3447_s21 = sld [smem:[#allocation9 + %s1224_s22]]  ;;  %v1239_v58 = vstv %s3376_s28  ;;  %vm3454_vm12 = vcmp.ge.f32.partialorder %v5851_v28, 0.003921569  ;;  %v660_v28 = vsel %vm3427_vm9, %v628_v11, 0.0  ;;  %5856 = vst [vmem:[#allocation86_spill] sm:$0xff] %v3475_v37  ;;  %s5857_s30 = sshra.s32 %s3018_s17, 7  ;;  %v2565_v31 = vpop.eup %2564  ;;  %v3514_v61 = vadd.f32 %v447_v33, %v257_v10 }
 0x197   : >> { %s3459_s26 = sld [smem:[#allocation9 + %s3331_s19]]  ;;  %v1057_v52 = vsub.f32 0.0, %v3432_v38  ;;  %v3463_v29 = vsub.f32 %v5791_v17, %v1239_v58  ;;  %v3466_v0 = vstv %s3387_s18  ;;  %s3478_s19 = sadd.s32 %s3334_s2, %s1226_s29  ;;  %v3488_v23 = vmul.f32 %v660_v28, %v3423_v12  ;;  %vm3499_vm13 = vmand %vm637_vm7, %vm3454_vm12 }
 0x198   : >> { %5855 = vst [vmem:[#allocation85_spill] sm:$0xff] %v3466_v0  ;;  %v1243_v6 = vsub.f32 %v5790_v16, %v3466_v0  ;;  %s3484_s23 = sshll.u32 %s5857_s30, 10  ;;  %s1229_s18 = sadd.s32 768, %s3361_s10  ;;  %v5863_v49 = vmin.f32 %v3345_v32, 0.999  ;;  %v727_v19 = vsub.f32 1.0, %v660_v28 }
 0x199   : >> { %5854 = vst [vmem:[#allocation84_spill] sm:$0xff] %v3463_v29  ;;  %5858 = vst [vmem:[#allocation87_spill] sm:$0xff] %v3488_v23  ;;  %v1065_v51 = vmul.f32 1.442695, %v1057_v52  ;;  %v1247_v11 = vstv %s3404_s3  ;;  %s3493_s0 = sand.u32 127, %s3018_s17  ;;  %vm1098_vm2 = vcmp.ge.f32.partialorder %v3432_v38, 0.0 }
 0x19a   : >> { %v2567_v52 = vpop.eup %2566  ;;  %v3506_v15 = vmul.f32 %v1247_v11, %v3463_v29  ;;  %v3509_v13 = vstv %s3415_s6  ;;  %s1443_s17 = sadd.s32 %s3484_s23, %s3493_s0  ;;  %s1445_s3 = sadd.s32 128, %s3493_s0  ;;  %vm3518_vm14 = vcmp.ge.f32.partialorder %v5863_v49, 0.003921569  ;;  %v5867_v33 = vmin.f32 %v3382_v48, 0.999 }
 0x19b   : >> { %5862 = vst [vmem:[#allocation89_spill] sm:$0xff] %v3509_v13  ;;  %v851_v27 = vmul.f32 %v2567_v52, %v3410_v2  ;;  %2568 = vpow2.f32 %v1065_v51  ;;  %v1251_v40 = vmul.f32 %v3509_v13, %v1243_v6  ;;  %s3524_s6 = sld [smem:[#allocation9 + %s1443_s17]]  ;;  %s1446_s22 = sadd.s32 %s3484_s23, %s1445_s3  ;;  %v836_v49 = vmul.f32 1.442695, %v827_v30  ;;  %vm3577_vm0 = vmand %vm407_vm10, %vm3518_vm14 }
 0x19c   : >> { %5861 = vst [vmem:[#allocation88_spill] sm:$0xff] %v3506_v15  ;;  %v3528_v10 = vstv %s3447_s21  ;;  %s3530_s29 = sld [smem:[#allocation9 + %s1446_s22]]  ;;  %s1448_s30 = sadd.s32 256, %s3493_s0  ;;  %v661_v28 = vsel %vm3499_vm13, %v5867_v33, 0.0  ;;  %v1033_v52 = vmul.f32 %v1025_v4, %v3399_v44  ;;  %v677_v51 = vmul.f32 %v3282_v14, %v3488_v23 }
 0x19d   : >> { %5866 = vst [vmem:[#allocation90_spill] sm:$0xff] %v3528_v10  ;;  %v859_v7 = vmin.f32 %v851_v27, 0.999  ;;  %v1255_v50 = vadd.f32 %v1251_v40, %v3506_v15  ;;  %v1272_v46 = vmul.f32 %v3528_v10, %v1243_v6  ;;  %s1449_s21 = sadd.s32 %s3484_s23, %s1448_s30  ;;  %s1451_s17 = sadd.s32 384, %s3493_s0  ;;  %v3548_v48 = vmul.f32 %v661_v28, %v3470_v36 }
 0x19e   : >> { %s3544_s3 = sld [smem:[#allocation9 + %s1449_s21]]  ;;  %s1452_s22 = sadd.s32 %s3484_s23, %s1451_s17  ;;  %2570 = vpow2.f32 %v836_v49  ;;  %v3551_v30 = vadd.f32 %v3402_v54, %v1033_v52  ;;  %v3554_v4 = vsub.f32 %v5789_v21, %v1239_v58  ;;  %v728_v33 = vsub.f32 1.0, %v661_v28 }
 0x19f   : >> { %5868 = vst [vmem:[#allocation91_spill] sm:$0xff] %v3548_v48  ;;  %vm875_vm15 = vcmp.ge.f32.partialorder %v859_v7, 0.003921569  ;;  %v1263_v60 = vmul.f32 %v1255_v50, %v3463_v29  ;;  %v3557_v27 = vmul.f32 %v1272_v46, %v1243_v6  ;;  %s3559_s30 = sld [smem:[#allocation9 + %s1452_s22]]  ;;  %s1454_s21 = sadd.s32 512, %s3493_s0  ;;  %v3563_v23 = vstv %s3459_s26 }
 0x1a0   : >> { %5869 = vst [vmem:[#allocation92_spill] sm:$0xff] %v3554_v4  ;;  %5870 = vst [vmem:[#allocation93_spill] sm:$0xff] %v3563_v23  ;;  %s1230_s17 = sadd.s32 %s3334_s2, %s1229_s18  ;;  %s1455_s28 = sadd.s32 %s3484_s23, %s1454_s21  ;;  %v1058_v54 = vsub.f32 0.0, %v3551_v30  ;;  %v3571_v50 = vmul.f32 %v1247_v11, %v3554_v4  ;;  %v3582_v6 = vmul.f32 %v2565_v31, %v3279_v41  ;;  %v3585_v58 = vmul.f32 %v727_v19, %v3423_v12 }
 0x1a1   : >> { %vm3589_vm1 = vmand %vm867_vm11, %vm875_vm15  ;;  %v3595_v25 = vadd.f32 %v3557_v27, %v1263_v60  ;;  %s3597_s26 = sld [smem:[#allocation9 + %s1455_s28]]  ;;  %s1457_s18 = sadd.s32 640, %s3493_s0  ;;  %v1470_v9 = vstv %s3524_s6  ;;  %v3602_v19 = vadd.f32 %v677_v51, %v3444_v34  ;;  %v678_v12 = vmul.f32 %v3282_v14, %v3548_v48 }
 0x1a2   : >> { %5871 = vst [vmem:[#allocation94_spill] sm:$0xff] %v3571_v50  ;;  %s1460_s22 = sadd.s32 768, %s3493_s0  ;;  %v3606_v31 = vsub.f32 %v5791_v17, %v1470_v9  ;;  %v3609_v42 = vstv %s3530_s29  ;;  %s3614_s21 = sld [smem:[#allocation9 + %s3478_s19]]  ;;  %v3624_v34 = vmul.f32 %v728_v33, %v3470_v36  ;;  %vm868_vm3 = vcmp.ge.f32.partialorder %v3419_v62, 0.0 }
 0x1a3   : >> { %5877 = vst [vmem:[#allocation96_spill] sm:$0xff] %v3609_v42  ;;  %v1288_v28 = vsub.f32 0.0, %v3595_v25  ;;  %v1474_v49 = vsub.f32 %v5790_v16, %v3609_v42  ;;  %s5878_s28 = sadd.s32 6, %s2984_s15  ;;  %v1067_v52 = vmul.f32 1.442695, %v1058_v54  ;;  %v891_v51 = vsel %vm3589_vm1, %v859_v7, 0.0  ;;  %s1458_s29 = sadd.s32 %s3484_s23, %s1457_s18 }
 0x1a4   : >> { %5876 = vst [vmem:[#allocation95_spill] sm:$0xff] %v3606_v31  ;;  %s3621_s6 = sld [smem:[#allocation8 + %s5878_s28]]  ;;  %v1478_v60 = vstv %s3544_s3  ;;  %v1256_v48 = vadd.f32 %v1251_v40, %v3571_v50  ;;  %v5879_v41 = vmin.f32 %v3345_v32, 0.999  ;;  %s1461_s28 = sadd.s32 %s3484_s23, %s1460_s22  ;;  %v3649_v11 = vmul.f32 %v891_v51, %v3585_v58 }
 0x1a5   : >> { %s3629_s19 = sld [smem:[#allocation9 + %s1230_s17]]  ;;  %v2569_v36 = vpop.eup %2568  ;;  %v1296_v33 = vmul.f32 1.442695, %v1288_v28  ;;  %v3642_v54 = vmul.f32 %v1478_v60, %v3606_v31  ;;  %v3645_v7 = vstv %s3559_s30  ;;  %s1898_s17 = sadd.s32 7, %s2984_s15  ;;  %2572 = vpow2.f32 %v1067_v52 }
 0x1a6   : >> { %v3638_v44 = vsel %vm3577_vm0, %v5879_v41, 0.0  ;;  %5881 = vst [vmem:[#allocation98_spill] sm:$0xff] %v3645_v7  ;;  %5882 = vst [vmem:[#allocation99_spill] sm:$0xff] %v3649_v11  ;;  %v1082_v32 = vmul.f32 %v2569_v36, %v3475_v37  ;;  %v1482_v41 = vmul.f32 %v3645_v7, %v1474_v49  ;;  %v1264_v40 = vmul.f32 %v1256_v48, %v3554_v4  ;;  %s3654_s3 = sld [smem:[#allocation9 + %s1458_s29]] }
 0x1a7   : >> { %5880 = vst [vmem:[#allocation97_spill] sm:$0xff] %v3642_v54  ;;  %2574 = vpow2.f32 %v1296_v33  ;;  %v3657_v46 = vstv %s3597_s26  ;;  %v3660_v28 = vsub.f32 %v5789_v21, %v1470_v9  ;;  %v3664_v52 = vmul.f32 %v3638_v44, %v2961_v24  ;;  %s3666_s15 = sld [smem:[#allocation9 + %s1461_s28]] }
 0x1a8   : >> { %5883 = vst [vmem:[#allocation100_spill] sm:$0xff] %v3657_v46  ;;  %v2571_v50 = vpop.eup %2570  ;;  %v958_v63 = vsub.f32 1.0, %v891_v51  ;;  %v1090_v36 = vmin.f32 %v1082_v32, 0.999  ;;  %v1486_v57 = vadd.f32 %v1482_v41, %v3642_v54  ;;  %v1503_v48 = vmul.f32 %v3657_v46, %v1474_v49  ;;  %s3670_s30 = sld [smem:[#allocation8 + %s1898_s17]] }
 0x1a9   : >> { %5884 = vst [vmem:[#allocation101_spill] sm:$0xff] %v3660_v28  ;;  %5885 = vst [vmem:[#allocation102_spill] sm:$0xff] %v3664_v52  ;;  %v3677_v9 = vadd.f32 %v678_v12, %v3514_v61  ;;  %v852_v33 = vmul.f32 %v2571_v50, %v3410_v2  ;;  %v3681_v51 = vadd.f32 %v3557_v27, %v1264_v40  ;;  %vm638_vm6 = vcmp.ge.f32.partialorder %v3234_v39, 0.0 }
 0x1aa   : >> { %s1669_s26 = sshra.s32 %s3621_s6, 7  ;;  %s3674_s18 = sand.u32 127, %s3621_s6  ;;  %v3684_v32 = vmul.f32 %v1478_v60, %v3660_v28  ;;  %v908_v4 = vmul.f32 %v3413_v45, %v3649_v11  ;;  %vm1106_vm4 = vcmp.ge.f32.partialorder %v1090_v36, 0.003921569  ;;  %v1494_v59 = vmul.f32 %v1486_v57, %v3606_v31 }
 0x1ab   : >> { %v1507_v26 = vmul.f32 %v1503_v48, %v1474_v49  ;;  %s3689_s22 = sshll.u32 %s1669_s26, 10  ;;  %s1676_s6 = sadd.s32 128, %s3674_s18  ;;  %vm3694_vm5 = vmand %vm1098_vm2, %vm1106_vm4  ;;  %v860_v27 = vmin.f32 %v852_v33, 0.999  ;;  %v1289_v50 = vsub.f32 0.0, %v3681_v51  ;;  %v448_v12 = vmul.f32 %v3238_v43, %v3664_v52 }
 0x1ac   : >> { %5886 = vst [vmem:[#allocation103_spill] sm:$0xff] %v3684_v32  ;;  %s1674_s29 = sadd.s32 %s3689_s22, %s3674_s18  ;;  %s1677_s28 = sadd.s32 %s3689_s22, %s1676_s6  ;;  %v1487_v57 = vadd.f32 %v1482_v41, %v3684_v32  ;;  %v3707_v38 = vmul.f32 %v958_v63, %v3585_v58  ;;  %v3710_v49 = vstv %s3614_s21  ;;  %v3713_v60 = vstv %s3629_s19  ;;  %v258_v41 = vld [vmem:[#allocation2 + $0x10] sm:$0xff] }
 0x1ad   : >> { %5889 = vst [vmem:[#allocation104_spill] sm:$0xff] %v3710_v49  ;;  %v3715_v40 = vadd.f32 %v1507_v26, %v1494_v59  ;;  %s3717_s17 = sld [smem:[#allocation9 + %s1674_s29]]  ;;  %vm1329_vm7 = vcmp.ge.f32.partialorder %v3595_v25, 0.0  ;;  %s1679_s6 = sadd.s32 256, %s3674_s18  ;;  %vm876_vm8 = vcmp.ge.f32.partialorder %v860_v27, 0.003921569  ;;  %v3728_v59 = vadd.f32 %v908_v4, %v3602_v19 }
 0x1ae   : >> { %s3719_s26 = sld [smem:[#allocation9 + %s1677_s28]]  ;;  %s1682_s4 = sadd.s32 384, %s3674_s18  ;;  %vm1099_vm9 = vcmp.ge.f32.partialorder %v3551_v30, 0.0  ;;  %v1495_v63 = vmul.f32 %v1487_v57, %v3660_v28  ;;  %v3732_v48 = vsel %vm3694_vm5, %v1090_v36, 0.0  ;;  %vm3739_vm10 = vmand %vm868_vm3, %vm876_vm8  ;;  %v1298_v57 = vmul.f32 1.442695, %v1289_v50 }
 0x1af   : >> { %v1519_v33 = vsub.f32 0.0, %v3715_v40  ;;  %s1680_s21 = sadd.s32 %s3689_s22, %s1679_s6  ;;  %s1683_s19 = sadd.s32 %s3689_s22, %s1682_s4  ;;  %v2573_v4 = vpop.eup %2572  ;;  %v3744_v19 = vstv %s3654_s3  ;;  %v3752_v61 = vadd.f32 %v448_v12, %v258_v41  ;;  %v5569_v62 = vmin.f32 %v3582_v6, 0.999 }
 0x1b0   : >> { %5892 = vst [vmem:[#allocation105_spill] sm:$0xff] %v3744_v19  ;;  %s3746_s29 = sld [smem:[#allocation9 + %s1680_s21]]  ;;  %v3750_v36 = vadd.f32 %v1507_v26, %v1495_v63  ;;  %v3757_v58 = vmul.f32 %v3732_v48, %v3707_v38  ;;  %v3760_v11 = vstv %s3666_s15  ;;  %s1685_s4 = sadd.s32 512, %s3674_s18  ;;  %v1083_v43 = vmul.f32 %v2573_v4, %v3475_v37 }
 0x1b1   : >> { %s3748_s28 = sld [smem:[#allocation9 + %s1683_s19]]  ;;  %v1527_v50 = vmul.f32 1.442695, %v1519_v33  ;;  %v2575_v28 = vpop.eup %2574  ;;  %v1189_v26 = vsub.f32 1.0, %v3732_v48  ;;  %s1686_s3 = sadd.s32 %s3689_s22, %s1685_s4  ;;  %v892_v12 = vsel %vm3739_vm10, %v860_v27, 0.0  ;;  %2576 = vpow2.f32 %v1298_v57 }
 0x1b2   : >> { %5893 = vst [vmem:[#allocation106_spill] sm:$0xff] %v3757_v58  ;;  %s1688_s6 = sadd.s32 640, %s3674_s18  ;;  %v1520_v41 = vsub.f32 0.0, %v3750_v36  ;;  %v1313_v63 = vmul.f32 %v2575_v28, %v3710_v49  ;;  %s3771_s15 = sld [smem:[#allocation9 + %s1686_s3]]  ;;  %v3784_v27 = vmul.f32 %v892_v12, %v3624_v34  ;;  %vm3788_vm11 = vcmp.ge.f32.partialorder %v5569_v62, 0.003921569 }
 0x1b3   : >> { %2578 = vpow2.f32 %v1527_v50  ;;  %v1701_v33 = vstv %s3717_s17  ;;  %s1900_s21 = sshra.s32 %s3670_s30, 7  ;;  %s3793_s17 = sadd.s32 %s3689_s22, %s1688_s6  ;;  %v959_v50 = vsub.f32 1.0, %v892_v12  ;;  %v1091_v32 = vmin.f32 %v1083_v43, 0.999  ;;  %vm3826_vm15 = vmand %vm638_vm6, %vm3788_vm11 }
 0x1b4   : >> { %v3775_v4 = vstv %s3719_s26  ;;  %v3778_v48 = vsub.f32 %v5791_v17, %v1701_v33  ;;  %5896 = vst [vmem:[#allocation109_spill] sm:$0xff] %v3784_v27  ;;  %v1321_v57 = vmin.f32 %v1313_v63, 0.999  ;;  %s3795_s26 = sshll.u32 %s1900_s21, 10  ;;  %v3798_v37 = vsub.f32 %v5789_v21, %v1701_v33  ;;  %s3808_s4 = sand.u32 127, %s3670_s30 }
 0x1b5   : >> { %5894 = vst [vmem:[#allocation107_spill] sm:$0xff] %v3775_v4  ;;  %v1705_v52 = vsub.f32 %v5790_v16, %v3775_v4  ;;  %v1139_v2 = vmul.f32 %v3563_v23, %v3757_v58  ;;  %v1529_v63 = vmul.f32 1.442695, %v1520_v41  ;;  %s1905_s3 = sadd.s32 %s3795_s26, %s3808_s4  ;;  %s1907_s6 = sadd.s32 128, %s3808_s4  ;;  %vm3817_vm13 = vcmp.ge.f32.partialorder %v1091_v32, 0.003921569 }
 0x1b6   : >> { %5895 = vst [vmem:[#allocation108_spill] sm:$0xff] %v3778_v48  ;;  %5899 = vst [vmem:[#allocation110_spill] sm:$0xff] %v3798_v37  ;;  %v1709_v62 = vstv %s3746_s29  ;;  %vm1337_vm12 = vcmp.ge.f32.partialorder %v1321_v57, 0.003921569  ;;  %vm1330_vm14 = vcmp.ge.f32.partialorder %v3681_v51, 0.0  ;;  %s3832_s30 = sld [smem:[#allocation9 + %s1905_s3]]  ;;  %s1908_s29 = sadd.s32 %s3795_s26, %s1907_s6  ;;  %v909_v58 = vmul.f32 %v3413_v45, %v3784_v27 }
 0x1b7   : >> { %v3805_v56 = vstv %s3748_s28  ;;  %v3811_v12 = vmul.f32 %v1709_v62, %v3778_v48  ;;  %vm1345_vm0 = vmand %vm1329_vm7, %vm1337_vm12  ;;  %2580 = vpow2.f32 %v1529_v63  ;;  %v3838_v28 = vmul.f32 %v1709_v62, %v3798_v37  ;;  %s3849_s28 = sld [smem:[#allocation9 + %s1908_s29]]  ;;  %s1910_s21 = sadd.s32 256, %s3808_s4 }
 0x1b8   : >> { %5900 = vst [vmem:[#allocation111_spill] sm:$0xff] %v3805_v56  ;;  %v1713_v43 = vmul.f32 %v3805_v56, %v1705_v52  ;;  %v5907_v39 = vsub.f32 1.0, %v3638_v44  ;;  %v1353_v4 = vsel %vm1345_vm0, %v1321_v57, 0.0  ;;  %v3847_v31 = vstv %s3771_s15  ;;  %vm1115_vm1 = vmand %vm1099_vm9, %vm3817_vm13  ;;  %s1911_s3 = sadd.s32 %s3795_s26, %s1910_s21  ;;  %s1913_s15 = sadd.s32 384, %s3808_s4 }
 0x1b9   : >> { %5901 = vst [vmem:[#allocation112_spill] sm:$0xff] %v3811_v12  ;;  %5906 = vst [vmem:[#allocation113_spill] sm:$0xff] %v3838_v28  ;;  %v967_v27 = vmul.f32 %v959_v50, %v3624_v34  ;;  %vm1560_vm2 = vcmp.ge.f32.partialorder %v3715_v40, 0.0  ;;  %v1734_v44 = vmul.f32 %v3847_v31, %v1705_v52  ;;  %v1123_v62 = vsel %vm1115_vm1, %v1091_v32, 0.0  ;;  %s3866_s6 = sld [smem:[#allocation9 + %s1911_s3]]  ;;  %s1914_s29 = sadd.s32 %s3795_s26, %s1913_s15 }
 0x1ba   : >> { %v3843_v56 = vmul.f32 %v5907_v39, %v2961_v24  ;;  %v1717_v25 = vadd.f32 %v1713_v43, %v3811_v12  ;;  %5908 = vst [vmem:[#allocation114_spill] sm:$0xff] %v3847_v31  ;;  %v1197_v24 = vmul.f32 %v1189_v26, %v3707_v38  ;;  %v3863_v57 = vadd.f32 %v1139_v2, %v3728_v59  ;;  %s3870_s21 = sld [smem:[#allocation9 + %s1914_s29]]  ;;  %s1916_s19 = sadd.s32 512, %s3808_s4 }
 0x1bb   : >> { %v1420_v34 = vsub.f32 1.0, %v1353_v4  ;;  %v1718_v30 = vadd.f32 %v1713_v43, %v3838_v28  ;;  %v2577_v38 = vpop.eup %2576  ;;  %v1738_v26 = vmul.f32 %v1734_v44, %v1705_v52  ;;  %v917_v32 = vadd.f32 %v909_v58, %v3677_v9  ;;  %s1917_s3 = sadd.s32 %s3795_s26, %s1916_s19  ;;  %s1919_s15 = sadd.s32 640, %s3808_s4 }
 0x1bc   : >> { %v1725_v50 = vmul.f32 %v1717_v25, %v3778_v48  ;;  %v1190_v2 = vsub.f32 1.0, %v1123_v62  ;;  %v5909_v59 = vmin.f32 %v3582_v6, 0.999  ;;  %v3882_v52 = vmul.f32 %v1123_v62, %v967_v27  ;;  %s5913_s29 = sadd.s32 768, %s3674_s18  ;;  %s3898_s19 = sld [smem:[#allocation9 + %s1917_s3]] }
 0x1bd   : >> { %v2579_v43 = vpop.eup %2578  ;;  %v1314_v33 = vmul.f32 %v2577_v38, %v3710_v49  ;;  %v1726_v39 = vmul.f32 %v1718_v30, %v3798_v37  ;;  %v3890_v6 = vmul.f32 %v1353_v4, %v1197_v24  ;;  %s1692_s7 = sadd.s32 %s3689_s22, %s5913_s29  ;;  %v1932_v25 = vstv %s3832_s30  ;;  %s1920_s27 = sadd.s32 %s3795_s26, %s1919_s15 }
 0x1be   : >> { %v3878_v63 = vsel %vm3826_vm15, %v5909_v59, 0.0  ;;  %5910 = vst [vmem:[#allocation115_spill] sm:$0xff] %v3882_v52  ;;  %v1544_v58 = vmul.f32 %v2579_v43, %v3744_v19  ;;  %v3896_v41 = vadd.f32 %v1738_v26, %v1725_v50  ;;  %v1428_v44 = vmul.f32 %v1420_v34, %v1197_v24  ;;  %s1922_s24 = sadd.s32 768, %s3808_s4  ;;  %s3915_s30 = sld [smem:[#allocation9 + %s3793_s17]] }
 0x1bf   : >> { %v3888_v9 = vmul.f32 %v3878_v63, %v3843_v56  ;;  %5912 = vst [vmem:[#allocation117_spill] sm:$0xff] %v3890_v6  ;;  %v3904_v62 = vsub.f32 %v5791_v17, %v1932_v25  ;;  %v3907_v30 = vstv %s3849_s28  ;;  %v1322_v4 = vmin.f32 %v1314_v33, 0.999  ;;  %s1923_s29 = sadd.s32 %s3795_s26, %s1922_s24  ;;  %s3917_s3 = sld [smem:[#allocation9 + %s1692_s7]] }
 0x1c0   : >> { %5915 = vst [vmem:[#allocation119_spill] sm:$0xff] %v3907_v30  ;;  %vm1561_vm3 = vcmp.ge.f32.partialorder %v3750_v36, 0.0  ;;  %v1552_v38 = vmin.f32 %v1544_v58, 0.999  ;;  %v1750_v50 = vsub.f32 0.0, %v3896_v41  ;;  %v1936_v59 = vsub.f32 %v5790_v16, %v3907_v30  ;;  %s3924_s24 = sld [smem:[#allocation9 + %s1920_s27]] }
 0x1c1   : >> { %5911 = vst [vmem:[#allocation116_spill] sm:$0xff] %v3888_v9  ;;  %5914 = vst [vmem:[#allocation118_spill] sm:$0xff] %v3904_v62  ;;  %v1198_v43 = vmul.f32 %v1190_v2, %v967_v27  ;;  %v1940_v24 = vstv %s3866_s6  ;;  %v1140_v34 = vmul.f32 %v3563_v23, %v3882_v52  ;;  %vm1338_vm4 = vcmp.ge.f32.partialorder %v1322_v4, 0.003921569  ;;  %v2581_v58 = vpop.eup %2580  ;;  %s3938_s7 = sld [smem:[#allocation9 + %s1923_s29]]  ;;  %s308_s27 = sadd.s32 896, %s3000_s13 }
 0x1c2   : >> { %v3922_v33 = vadd.f32 %v1738_v26, %v1726_v39  ;;  %vm1568_vm5 = vcmp.ge.f32.partialorder %v1552_v38, 0.003921569  ;;  %v1758_v17 = vmul.f32 1.442695, %v1750_v50  ;;  %v3927_v16 = vmul.f32 %v1940_v24, %v3904_v62  ;;  %vm1346_vm6 = vmand %vm1330_vm14, %vm1338_vm4  ;;  %s309_s17 = sadd.s32 %s3002_s14, %s308_s27  ;;  %s539_s6 = sadd.s32 896, %s3042_s8 }
 0x1c3   : >> { %v3930_v27 = vstv %s3870_s21  ;;  %v1370_v2 = vmul.f32 %v3713_v60, %v3890_v6  ;;  %vm1576_vm7 = vmand %vm1560_vm2, %vm1568_vm5  ;;  %v1354_v39 = vsel %vm1346_vm6, %v1322_v4, 0.0  ;;  %v1545_v50 = vmul.f32 %v2581_v58, %v3744_v19  ;;  %s4859_s28 = sld [smem:[#allocation9 + %s309_s17]]  ;;  %s770_s21 = sadd.s32 896, %s3122_s16 }
 0x1c4   : >> { %5916 = vst [vmem:[#allocation120_spill] sm:$0xff] %v3927_v16  ;;  %5917 = vst [vmem:[#allocation121_spill] sm:$0xff] %v3930_v27  ;;  %v1944_v26 = vmul.f32 %v3930_v27, %v1936_v59  ;;  %v1584_v52 = vsel %vm1576_vm7, %v1552_v38, 0.0  ;;  %2582 = vpow2.f32 %v1758_v17  ;;  %v3943_v37 = vstv %s3898_s19  ;;  %s540_s15 = sadd.s32 %s3034_s25, %s539_s6  ;;  %s1001_s19 = sadd.s32 896, %s3218_s1 }
 0x1c5   : >> { %5918 = vst [vmem:[#allocation122_spill] sm:$0xff] %v3943_v37  ;;  %v3945_v28 = vmul.f32 %v1354_v39, %v1198_v43  ;;  %v3947_v51 = vmul.f32 %v1584_v52, %v1428_v44  ;;  %v1965_v40 = vmul.f32 %v3943_v37, %v1936_v59  ;;  %v1751_v23 = vsub.f32 0.0, %v3922_v33  ;;  %s771_s29 = sadd.s32 %s3113_s20, %s770_s21  ;;  %s1694_s17 = sadd.s32 896, %s3674_s18 }
 0x1c6   : >> { %v1948_v6 = vadd.f32 %v1944_v26, %v3927_v16  ;;  %v1651_v45 = vsub.f32 1.0, %v1584_v52  ;;  %v1148_v4 = vadd.f32 %v1140_v34, %v917_v32  ;;  %v1553_v49 = vmin.f32 %v1545_v50, 0.999  ;;  %s4919_s27 = sld [smem:[#allocation9 + %s771_s29]]  ;;  %s1925_s6 = sadd.s32 896, %s3808_s4 }
 0x1c7   : >> { %5919 = vst [vmem:[#allocation123_spill] sm:$0xff] %v3945_v28  ;;  %5920 = vst [vmem:[#allocation124_spill] sm:$0xff] %v3947_v51  ;;  %v3953_v17 = vsub.f32 %v5789_v21, %v1932_v25  ;;  %v1969_v58 = vmul.f32 %v1965_v40, %v1936_v59  ;;  %v1371_v19 = vmul.f32 %v3713_v60, %v3945_v28  ;;  %v1421_v16 = vsub.f32 1.0, %v1354_v39 }
 0x1c8   : >> { %v1956_v38 = vmul.f32 %v1948_v6, %v3904_v62  ;;  %v1378_v48 = vadd.f32 %v1370_v2, %v3863_v57  ;;  %v1601_v37 = vmul.f32 %v3760_v11, %v3947_v51  ;;  %vm1569_vm8 = vcmp.ge.f32.partialorder %v1553_v49, 0.003921569 }
 0x1c9   : >> { %5921 = vst [vmem:[#allocation125_spill] sm:$0xff] %v3953_v17  ;;  %v729_v32 = vsub.f32 1.0, %v3878_v63  ;;  %v3963_v52 = vstv %s3915_s30  ;;  %v3966_v25 = vstv %s3917_s3  ;;  %v1760_v6 = vmul.f32 1.442695, %v1751_v23  ;;  %vm1577_vm10 = vmand %vm1561_vm3, %vm1569_vm8  ;;  %s4904_s30 = sld [smem:[#allocation9 + %s540_s15]]  ;;  %s1232_s3 = sadd.s32 896, %s3361_s10 }
 0x1ca   : >> { %5922 = vst [vmem:[#allocation126_spill] sm:$0xff] %v3966_v25  ;;  %v3968_v34 = vadd.f32 %v1969_v58, %v1956_v38  ;;  %v3970_v59 = vmul.f32 %v1651_v45, %v1428_v44  ;;  %vm1791_vm9 = vcmp.ge.f32.partialorder %v3896_v41, 0.0  ;;  %v3974_v39 = vstv %s3924_s24  ;;  %s1002_s24 = sadd.s32 %s3204_s9, %s1001_s19  ;;  %s1695_s19 = sadd.s32 %s3689_s22, %s1694_s17 }
 0x1cb   : >> { %v3979_v57 = vmul.f32 %v1940_v24, %v3953_v17  ;;  %v3983_v2 = vstv %s3938_s7  ;;  %v1379_v50 = vadd.f32 %v1371_v19, %v1148_v4  ;;  %v1429_v40 = vmul.f32 %v1421_v16, %v1198_v43  ;;  %s1463_s7 = sadd.s32 896, %s3493_s0  ;;  %s4935_s21 = sld [smem:[#allocation9 + %s1002_s24]] }
 0x1cc   : >> { %v1981_v63 = vsub.f32 0.0, %v3968_v34  ;;  %5924 = vst [vmem:[#allocation128_spill] sm:$0xff] %v3983_v2  ;;  %v3985_v38 = vadd.f32 %v1601_v37, %v1378_v48  ;;  %2584 = vpow2.f32 %v1760_v6  ;;  %v795_v23 = vadd.f32 %v3442_v22, %v3225_v35  ;;  %s1464_s15 = sadd.s32 %s3484_s23, %s1463_s7  ;;  %s4957_s7 = sld [smem:[#allocation9 + %s1695_s19]] }
 0x1cd   : >> { %5923 = vst [vmem:[#allocation127_spill] sm:$0xff] %v3979_v57  ;;  %v1949_v45 = vadd.f32 %v1944_v26, %v3979_v57  ;;  %v1585_v36 = vsel %vm1577_vm10, %v1553_v49, 0.0  ;;  %v679_v24 = vmul.f32 %v3282_v14, %v3888_v9  ;;  %v811_v21 = vmul.f32 %v3245_v47, %v3349_v53  ;;  %s4952_s24 = sld [smem:[#allocation9 + %s1464_s15]]  ;;  %s2457_s15 = sadd.s32 2048, %s3689_s22 }
 0x1ce   : >> { %v1989_v44 = vmul.f32 1.442695, %v1981_v63  ;;  %v2583_v28 = vpop.eup %2582  ;;  %v803_v16 = vmul.f32 %v795_v23, %v3193_v1  ;;  %v1013_v37 = vsub.f32 %v5788_v18, %v3315_v55  ;;  %v1244_v48 = vsub.f32 %v5788_v18, %v3466_v0  ;;  %s1699_s19 = sadd.s32 %s2457_s15, %s3674_s18 }
 0x1cf   : >> { %v1957_v19 = vmul.f32 %v1949_v45, %v3953_v17  ;;  %v1775_v43 = vmul.f32 %v2583_v28, %v3963_v52  ;;  %v4001_v49 = vmul.f32 %v1585_v36, %v1429_v40  ;;  %v4004_v26 = vmul.f32 %v811_v21, %v3349_v53  ;;  %s5176_s18 = sld [smem:[#allocation9 + %s1699_s19]] }
 0x1d0   : >> { %2586 = vpow2.f32 %v1989_v44  ;;  %v4009_v6 = vmul.f32 %v3358_v20, %v1013_v37  ;;  %v1042_v63 = vmul.f32 %v3374_v8, %v1013_v37  ;;  %v4013_v45 = vmul.f32 %v3509_v13, %v1244_v48  ;;  %v5970_v8 = vld [vmem:[#allocation103_spill] sm:$0xff] }
 0x1d1   : >> { %5925 = vst [vmem:[#allocation129_spill] sm:$0xff] %v4001_v49  ;;  %v4006_v4 = vadd.f32 %v1969_v58, %v1957_v19  ;;  %v1783_v23 = vmin.f32 %v1775_v43, 0.999  ;;  %vm1792_vm11 = vcmp.ge.f32.partialorder %v3922_v33, 0.0  ;;  %v4017_v28 = vadd.f32 %v4004_v26, %v803_v16 }
 0x1d2   : >> { %v1273_v44 = vmul.f32 %v3528_v10, %v1244_v48  ;;  %v1475_v21 = vsub.f32 %v5788_v18, %v3609_v42  ;;  %v4024_v58 = vmul.f32 %v729_v32, %v3843_v56  ;;  %v1026_v19 = vadd.f32 %v4009_v6, %v3355_v5 }
 0x1d3   : >> { %v1982_v53 = vsub.f32 0.0, %v4006_v4  ;;  %v4028_v9 = vmul.f32 %v1042_v63, %v1013_v37  ;;  %vm1799_vm12 = vcmp.ge.f32.partialorder %v1783_v23, 0.003921569  ;;  %v1652_v43 = vsub.f32 1.0, %v1585_v36 }
 0x1d4   : >> { %v828_v16 = vsub.f32 0.0, %v4017_v28  ;;  %v1257_v51 = vadd.f32 %v4013_v45, %v3506_v15  ;;  %vm1807_vm13 = vmand %vm1791_vm9, %vm1799_vm12  ;;  %vm2022_vm14 = vcmp.ge.f32.partialorder %v3968_v34, 0.0  ;;  %v1034_v56 = vmul.f32 %v1026_v19, %v3312_v3 }
 0x1d5   : >> { %v1991_v42 = vmul.f32 1.442695, %v1982_v53  ;;  %v4037_v32 = vmul.f32 %v1273_v44, %v1244_v48  ;;  %v4040_v37 = vmul.f32 %v3645_v7, %v1475_v21  ;;  %v1815_v63 = vsel %vm1807_vm13, %v1783_v23, 0.0 }
 0x1d6   : >> { %v1602_v36 = vmul.f32 %v3760_v11, %v4001_v49  ;;  %v838_v10 = vmul.f32 1.442695, %v828_v16  ;;  %v1265_v15 = vmul.f32 %v1257_v51, %v3463_v29  ;;  %v2585_v13 = vpop.eup %2584  ;;  %v4046_v41 = vmul.f32 %v1815_v63, %v3970_v59 }
 0x1d7   : >> { %2588 = vpow2.f32 %v1991_v42  ;;  %v4049_v53 = vadd.f32 %v4028_v9, %v1034_v56  ;;  %v1504_v48 = vmul.f32 %v3657_v46, %v1475_v21  ;;  %v1776_v44 = vmul.f32 %v2585_v13, %v3963_v52  ;;  %v5927_v13 = vld [vmem:[#allocation95_spill] sm:$0xff] }
 0x1d8   : >> { %5926 = vst [vmem:[#allocation130_spill] sm:$0xff] %v4046_v41  ;;  %2590 = vpow2.f32 %v838_v10  ;;  %v4054_v23 = vadd.f32 %v4037_v32, %v1265_v15  ;;  %v1488_v19 = vadd.f32 %v4040_v37, %v3642_v54  ;;  %v1882_v51 = vsub.f32 1.0, %v1815_v63 }
 0x1d9   : >> { %v1660_v16 = vmul.f32 %v1652_v43, %v1429_v40  ;;  %v4059_v49 = vadd.f32 %v679_v24, %v3752_v61  ;;  %v1059_v42 = vsub.f32 0.0, %v4049_v53  ;;  %v1610_v7 = vadd.f32 %v1602_v36, %v1379_v50  ;;  %v5928_v40 = vld [vmem:[#allocation107_spill] sm:$0xff] }
 0x1da   : >> { %v2587_v56 = vpop.eup %2586  ;;  %v1784_v29 = vmin.f32 %v1776_v44, 0.999  ;;  %v1290_v46 = vsub.f32 0.0, %v4054_v23  ;;  %v1496_v10 = vmul.f32 %v1488_v19, %v5927_v13  ;;  %v1832_v15 = vmul.f32 %v3966_v25, %v4046_v41  ;;  %v5934_v41 = vld [vmem:[#allocation80_spill] sm:$0xff] }
 0x1db   : >> { %v2006_v0 = vmul.f32 %v2587_v56, %v3974_v39  ;;  %v1069_v54 = vmul.f32 1.442695, %v1059_v42  ;;  %v4067_v63 = vmul.f32 %v1504_v48, %v1475_v21  ;;  %vm2023_vm0 = vcmp.ge.f32.partialorder %v4006_v4, 0.0 }
 0x1dc   : >> { %vm1800_vm15 = vcmp.ge.f32.partialorder %v1784_v29, 0.003921569  ;;  %v1300_v61 = vmul.f32 1.442695, %v1290_v46  ;;  %v1706_v50 = vsub.f32 %v5788_v18, %v5928_v40  ;;  %v1937_v24 = vsub.f32 %v5788_v18, %v3907_v30  ;;  %v5930_v46 = vld [vmem:[#allocation111_spill] sm:$0xff]  ;;  %v5961_v40 = vld [vmem:[#allocation36_spill] sm:$0xff] }
 0x1dd   : >> { %v4075_v43 = vmul.f32 %v1882_v51, %v3970_v59  ;;  %v2014_v36 = vmin.f32 %v2006_v0, 0.999  ;;  %vm1808_vm1 = vmand %vm1792_vm11, %vm1800_vm15  ;;  %2592 = vpow2.f32 %v1069_v54  ;;  %v4080_v21 = vadd.f32 %v4067_v63, %v1496_v10  ;;  %v5933_v18 = vld [vmem:[#allocation55_spill] sm:$0xff] }
 0x1de   : >> { %v1816_v48 = vsel %vm1808_vm1, %v1784_v29, 0.0  ;;  %2594 = vpow2.f32 %v1300_v61  ;;  %v4083_v44 = vmul.f32 %v5930_v46, %v1706_v50  ;;  %v1735_v19 = vmul.f32 %v3847_v31, %v1706_v50  ;;  %v5938_v31 = vld [vmem:[#allocation120_spill] sm:$0xff] }
 0x1df   : >> { %5929 = vst [vmem:[#allocation131_spill] sm:$0xff] %v4075_v43  ;;  %vm2030_vm2 = vcmp.ge.f32.partialorder %v2014_v36, 0.003921569  ;;  %v4086_v42 = vmul.f32 %v1816_v48, %v1660_v16  ;;  %vm869_vm3 = vcmp.ge.f32.partialorder %v4017_v28, 0.0  ;;  %v1521_v0 = vsub.f32 0.0, %v4080_v21 }
 0x1e0   : >> { %v1840_v33 = vadd.f32 %v1832_v15, %v3985_v38  ;;  %vm2038_vm4 = vmand %vm2022_vm14, %vm2030_vm2  ;;  %v1719_v29 = vadd.f32 %v4083_v44, %v3811_v12  ;;  %v4095_v54 = vmul.f32 %v1735_v19, %v1706_v50  ;;  %v4098_v59 = vmul.f32 %v3930_v27, %v1937_v24  ;;  %v5935_v38 = vld [vmem:[#allocation56_spill] sm:$0xff]  ;;  %v5940_v12 = vld [vmem:[#allocation122_spill] sm:$0xff] }
 0x1e1   : >> { %5931 = vst [vmem:[#allocation132_spill] sm:$0xff] %v4086_v42  ;;  %v2589_v51 = vpop.eup %2588  ;;  %v4100_v56 = vsel %vm2038_vm4, %v2014_v36, 0.0  ;;  %v1883_v10 = vsub.f32 1.0, %v1816_v48  ;;  %v1531_v61 = vmul.f32 1.442695, %v1521_v0  ;;  %v4104_v30 = vmul.f32 %v5934_v41, %v5933_v18  ;;  %v5937_v19 = vld [vmem:[#allocation108_spill] sm:$0xff] }
 0x1e2   : >> { %5932 = vst [vmem:[#allocation133_spill] sm:$0xff] %v4100_v56  ;;  %vm408_vm5 = vcmp.ge.f32.partialorder %v5935_v38, 0.0  ;;  %v2591_v34 = vpop.eup %2590  ;;  %v4109_v15 = vmul.f32 %v4100_v56, %v4075_v43  ;;  %v2007_v50 = vmul.f32 %v2589_v51, %v3974_v39  ;;  %v1727_v27 = vmul.f32 %v1719_v29, %v5937_v19  ;;  %v5939_v0 = vld [vmem:[#allocation81_spill] sm:$0xff] }
 0x1e3   : >> { %v1950_v36 = vadd.f32 %v4098_v59, %v5938_v31  ;;  %v1833_v48 = vmul.f32 %v3966_v25, %v4086_v42  ;;  %v853_v41 = vmul.f32 %v2591_v34, %v5939_v0  ;;  %2596 = vpow2.f32 %v1531_v61  ;;  %v5956_v38 = vld [vmem:[#allocation105_spill] sm:$0xff] }
 0x1e4   : >> { %5936 = vst [vmem:[#allocation80_spill] sm:$0xff] %v4109_v15  ;;  %v1966_v13 = vmul.f32 %v5940_v12, %v1937_v24  ;;  %v2063_v46 = vmul.f32 %v3983_v2, %v4109_v15  ;;  %v2015_v43 = vmin.f32 %v2007_v50, 0.999  ;;  %v4122_v56 = vadd.f32 %v4095_v54, %v1727_v27 }
 0x1e5   : >> { %v1958_v29 = vmul.f32 %v1950_v36, %v3904_v62  ;;  %v4125_v51 = vmul.f32 %v1883_v10, %v1660_v16  ;;  %v861_v31 = vmin.f32 %v853_v41, 0.999  ;;  %v400_v42 = vmin.f32 %v4104_v30, 0.999  ;;  %v5942_v16 = vld [vmem:[#allocation73_spill] sm:$0xff]  ;;  %v5949_v41 = vld [vmem:[#allocation104_spill] sm:$0xff] }
 0x1e6   : >> { %v4127_v19 = vmul.f32 %v1966_v13, %v1937_v24  ;;  %v2071_v34 = vadd.f32 %v2063_v46, %v1840_v33  ;;  %vm2031_vm6 = vcmp.ge.f32.partialorder %v2015_v43, 0.003921569  ;;  %vm1100_vm7 = vcmp.ge.f32.partialorder %v4049_v53, 0.0  ;;  %v5943_v13 = vld [vmem:[#allocation57_spill] sm:$0xff]  ;;  %v5945_v33 = vld [vmem:[#allocation86_spill] sm:$0xff] }
 0x1e7   : >> { %5941 = vst [vmem:[#allocation56_spill] sm:$0xff] %v4125_v51  ;;  %v1752_v61 = vsub.f32 0.0, %v4122_v56  ;;  %v2593_v15 = vpop.eup %2592  ;;  %v1841_v50 = vadd.f32 %v1833_v48, %v1610_v7  ;;  %vm2039_vm8 = vmand %vm2023_vm0, %vm2031_vm6  ;;  %vm877_vm9 = vcmp.ge.f32.partialorder %v861_v31, 0.003921569  ;;  %v4139_v24 = vadd.f32 %v5943_v13, %v5942_v16  ;;  %v5960_v62 = vld [vmem:[#allocation93_spill] sm:$0xff] }
 0x1e8   : >> { %v4135_v27 = vadd.f32 %v4127_v19, %v1958_v29  ;;  %v2595_v30 = vpop.eup %2594  ;;  %2129 = vst [vmem:[#allocation2] sm:$0xff] %v2071_v34  ;;  %v4141_v46 = vsel %vm2039_vm8, %v2015_v43, 0.0  ;;  %vm885_vm10 = vmand %vm869_vm3, %vm877_vm9  ;;  %v1084_v7 = vmul.f32 %v2593_v15, %v5945_v33  ;;  %vm4146_vm11 = vcmp.ge.f32.partialorder %v400_v42, 0.003921569 }
 0x1e9   : >> { %5944 = vst [vmem:[#allocation81_spill] sm:$0xff] %v4141_v46  ;;  %v1762_v10 = vmul.f32 1.442695, %v1752_v61  ;;  %v4152_v36 = vmul.f32 %v4141_v46, %v4125_v51  ;;  %v893_v48 = vsel %vm885_vm10, %v861_v31, 0.0  ;;  %v1315_v29 = vmul.f32 %v2595_v30, %v5949_v41  ;;  %v5951_v51 = vld [vmem:[#allocation82_spill] sm:$0xff]  ;;  %vm4169_vm14 = vmand %vm408_vm5, %vm4146_vm11  ;;  %v5957_v46 = vld [vmem:[#allocation49_spill] sm:$0xff] }
 0x1ea   : >> { %v1983_v43 = vsub.f32 0.0, %v4135_v27  ;;  %v4157_v34 = vmul.f32 %v893_v48, %v4024_v58  ;;  %v960_v28 = vsub.f32 1.0, %v893_v48  ;;  %v1092_v16 = vmin.f32 %v1084_v7, 0.999 }
 0x1eb   : >> { %5948 = vst [vmem:[#allocation73_spill] sm:$0xff] %v4152_v36  ;;  %2598 = vpow2.f32 %v1762_v10  ;;  %v2064_v15 = vmul.f32 %v3983_v2, %v4152_v36  ;;  %v1323_v61 = vmin.f32 %v1315_v29, 0.999  ;;  %vm1331_vm12 = vcmp.ge.f32.partialorder %v4054_v23, 0.0  ;;  %v5954_v23 = vld [vmem:[#allocation42_spill] sm:$0xff]  ;;  %v5958_v36 = vld [vmem:[#allocation33_spill] sm:$0xff] }
 0x1ec   : >> { %5950 = vst [vmem:[#allocation57_spill] sm:$0xff] %v4157_v34  ;;  %v1993_v13 = vmul.f32 1.442695, %v1983_v43  ;;  %v910_v31 = vmul.f32 %v5951_v51, %v4157_v34  ;;  %v968_v30 = vmul.f32 %v960_v28, %v4024_v58  ;;  %vm1108_vm13 = vcmp.ge.f32.partialorder %v1092_v16, 0.003921569  ;;  %v5955_v58 = vld [vmem:[#allocation66_spill] sm:$0xff] }
 0x1ed   : >> { %v598_v10 = vsub.f32 0.0, %v4139_v24  ;;  %v2597_v48 = vpop.eup %2596  ;;  %v2072_v29 = vadd.f32 %v2064_v15, %v1841_v50  ;;  %vm1116_vm15 = vmand %vm1100_vm7, %vm1108_vm13  ;;  %vm1339_vm0 = vcmp.ge.f32.partialorder %v1323_v61, 0.003921569  ;;  %v4178_v43 = vmul.f32 %v5955_v58, %v5954_v23 }
 0x1ee   : >> { %2600 = vpow2.f32 %v1993_v13  ;;  %v1124_v4 = vsel %vm1116_vm15, %v1092_v16, 0.0  ;;  %vm1347_vm1 = vmand %vm1331_vm12, %vm1339_vm0  ;;  %v1546_v28 = vmul.f32 %v2597_v48, %v5956_v38  ;;  %vm1562_vm2 = vcmp.ge.f32.partialorder %v4080_v21, 0.0 }
 0x1ef   : >> { %v4184_v34 = vsub.f32 %v5958_v36, %v5957_v46  ;;  %2130 = vst [vmem:[#allocation2 + $0x8] sm:$0xff] %v2072_v29  ;;  %v918_v53 = vadd.f32 %v910_v31, %v4059_v49  ;;  %v4187_v50 = vmul.f32 %v1124_v4, %v968_v30  ;;  %v1191_v15 = vsub.f32 1.0, %v1124_v4  ;;  %v5963_v49 = vld [vmem:[#allocation67_spill] sm:$0xff] }
 0x1f0   : >> { %v1355_v13 = vsel %vm1347_vm1, %v1323_v61, 0.0  ;;  %vm1793_vm3 = vcmp.ge.f32.partialorder %v4122_v56, 0.0  ;;  %v1554_v16 = vmin.f32 %v1546_v28, 0.999  ;;  %v432_v48 = vsel %vm4169_vm14, %v400_v42, 0.0  ;;  %v5964_v61 = vld [vmem:[#allocation83_spill] sm:$0xff] }
 0x1f1   : >> { %5959 = vst [vmem:[#allocation86_spill] sm:$0xff] %v4187_v50  ;;  %v1422_v58 = vsub.f32 1.0, %v1355_v13  ;;  %v609_v23 = vmul.f32 1.442695, %v598_v10  ;;  %v1141_v12 = vmul.f32 %v5960_v62, %v4187_v50  ;;  %v1199_v46 = vmul.f32 %v1191_v15, %v968_v30  ;;  %v5965_v28 = vld [vmem:[#allocation94_spill] sm:$0xff]  ;;  %v5967_v30 = vld [vmem:[#allocation61_spill] sm:$0xff] }
 0x1f2   : >> { %v4195_v29 = vmul.f32 %v432_v48, %v5961_v40  ;;  %v796_v31 = vadd.f32 %v3442_v22, %v5963_v49  ;;  %vm1570_vm4 = vcmp.ge.f32.partialorder %v1554_v16, 0.003921569  ;;  %v1027_v4 = vadd.f32 %v4009_v6, %v5964_v61  ;;  %v5968_v22 = vld [vmem:[#allocation79_spill] sm:$0xff] }
 0x1f3   : >> { %2602 = vpow2.f32 %v609_v23  ;;  %v1258_v7 = vadd.f32 %v4013_v45, %v5965_v28  ;;  %v1149_v42 = vadd.f32 %v1141_v12, %v918_v53  ;;  %v4203_v10 = vmul.f32 %v1355_v13, %v1199_v46  ;;  %vm1578_vm5 = vmand %vm1562_vm2, %vm1570_vm4  ;;  %v5969_v23 = vld [vmem:[#allocation92_spill] sm:$0xff] }
 0x1f4   : >> { %5962 = vst [vmem:[#allocation104_spill] sm:$0xff] %v4195_v29  ;;  %v1430_v3 = vmul.f32 %v1422_v58, %v1199_v46  ;;  %v804_v15 = vmul.f32 %v796_v31, %v5967_v30  ;;  %v1586_v5 = vsel %vm1578_vm5, %v1554_v16, 0.0  ;;  %v1035_v49 = vmul.f32 %v1027_v4, %v5968_v22  ;;  %v5972_v16 = vld [vmem:[#allocation101_spill] sm:$0xff] }
 0x1f5   : >> { %5966 = vst [vmem:[#allocation82_spill] sm:$0xff] %v4203_v10  ;;  %v2599_v50 = vpop.eup %2598  ;;  %v1266_v62 = vmul.f32 %v1258_v7, %v5969_v23  ;;  %v1489_v6 = vadd.f32 %v4040_v37, %v5970_v8  ;;  %v1372_v12 = vmul.f32 %v3713_v60, %v4203_v10  ;;  %v1653_v46 = vsub.f32 1.0, %v1586_v5 }
 0x1f6   : >> { %v4214_v45 = vmul.f32 %v1586_v5, %v1430_v3  ;;  %v1777_v21 = vmul.f32 %v2599_v50, %v3963_v52  ;;  %v4218_v53 = vadd.f32 %v4004_v26, %v804_v15  ;;  %v4221_v13 = vadd.f32 %v4028_v9, %v1035_v49 }
 0x1f7   : >> { %v4224_v58 = vadd.f32 %v4037_v32, %v1266_v62  ;;  %v1497_v31 = vmul.f32 %v1489_v6, %v5972_v16  ;;  %v1380_v4 = vadd.f32 %v1372_v12, %v1149_v42  ;;  %vm2024_vm6 = vcmp.ge.f32.partialorder %v4135_v27, 0.0  ;;  %v5973_v32 = vld [vmem:[#allocation64_spill] sm:$0xff]  ;;  %v5979_v27 = vld [vmem:[#allocation110_spill] sm:$0xff] }
 0x1f8   : >> { %5971 = vst [vmem:[#allocation66_spill] sm:$0xff] %v4214_v45  ;;  %v2601_v37 = vpop.eup %2600  ;;  %v1603_v7 = vmul.f32 %v3760_v11, %v4214_v45  ;;  %v1785_v10 = vmin.f32 %v1777_v21, 0.999  ;;  %vm639_vm7 = vcmp.ge.f32.partialorder %v4139_v24, 0.0  ;;  %v1661_v5 = vmul.f32 %v1653_v46, %v1430_v3  ;;  %v5974_v45 = vld [vmem:[#allocation113_spill] sm:$0xff] }
 0x1f9   : >> { %v2008_v26 = vmul.f32 %v2601_v37, %v3974_v39  ;;  %v829_v9 = vsub.f32 0.0, %v4218_v53  ;;  %v1060_v62 = vsub.f32 0.0, %v4221_v13  ;;  %v449_v50 = vmul.f32 %v5973_v32, %v4195_v29 }
 0x1fa   : >> { %vm1801_vm8 = vcmp.ge.f32.partialorder %v1785_v10, 0.003921569  ;;  %v499_v49 = vsub.f32 1.0, %v432_v48  ;;  %v1291_v42 = vsub.f32 0.0, %v4224_v58  ;;  %v4240_v3 = vadd.f32 %v4067_v63, %v1497_v31 }
 0x1fb   : >> { %vm1809_vm9 = vmand %vm1793_vm3, %vm1801_vm8  ;;  %v2016_v15 = vmin.f32 %v2008_v26, 0.999  ;;  %v840_v6 = vmul.f32 1.442695, %v829_v9  ;;  %v1071_v12 = vmul.f32 1.442695, %v1060_v62  ;;  %v1611_v46 = vadd.f32 %v1603_v7, %v1380_v4 }
 0x1fc   : >> { %v1817_v21 = vsel %vm1809_vm9, %v1785_v10, 0.0  ;;  %v1302_v37 = vmul.f32 1.442695, %v1291_v42  ;;  %v1720_v16 = vadd.f32 %v4083_v44, %v5974_v45  ;;  %v507_v56 = vmul.f32 %v499_v49, %v5961_v40  ;;  %v5976_v26 = vld [vmem:[#allocation68_spill] sm:$0xff]  ;;  %v259_v7 = vld [vmem:[#allocation2 + $0x18] sm:$0xff] }
 0x1fd   : >> { %v2603_v8 = vpop.eup %2602  ;;  %v4244_v29 = vmul.f32 %v1817_v21, %v1661_v5  ;;  %v1884_v48 = vsub.f32 1.0, %v1817_v21  ;;  %vm2032_vm10 = vcmp.ge.f32.partialorder %v2016_v15, 0.003921569  ;;  %2604 = vpow2.f32 %v840_v6  ;;  %v5981_v6 = vld [vmem:[#allocation70_spill] sm:$0xff] }
 0x1fe   : >> { %vm2040_vm11 = vmand %vm2024_vm6, %vm2032_vm10  ;;  %v623_v63 = vmul.f32 %v2603_v8, %v5976_v26  ;;  %2606 = vpow2.f32 %v1071_v12  ;;  %v1522_v10 = vsub.f32 0.0, %v4240_v3  ;;  %v1728_v42 = vmul.f32 %v1720_v16, %v5979_v27 }
 0x1ff   : >> { %5975 = vst [vmem:[#allocation105_spill] sm:$0xff] %v4244_v29  ;;  %v1834_v31 = vmul.f32 %v3966_v25, %v4244_v29  ;;  %v4253_v44 = vmul.f32 %v1884_v48, %v1661_v5  ;;  %v4255_v4 = vsel %vm2040_vm11, %v2016_v15, 0.0  ;;  %2608 = vpow2.f32 %v1302_v37  ;;  %v5982_v15 = vld [vmem:[#allocation52_spill] sm:$0xff]  ;;  %v5983_v37 = vld [vmem:[#allocation51_spill] sm:$0xff] }
 0x200   : >> { %5978 = vst [vmem:[#allocation94_spill] sm:$0xff] %v4255_v4  ;;  %v631_v9 = vmin.f32 %v623_v63, 0.999  ;;  %v1533_v62 = vmul.f32 1.442695, %v1522_v10  ;;  %v1951_v40 = vadd.f32 %v4098_v59, %v3979_v57  ;;  %v4266_v5 = vadd.f32 %v5981_v6, %v4178_v43 }
 0x201   : >> { %5977 = vst [vmem:[#allocation83_spill] sm:$0xff] %v4253_v44  ;;  %v1842_v8 = vadd.f32 %v1834_v31, %v1611_v46  ;;  %v4262_v49 = vmul.f32 %v4255_v4, %v4253_v44  ;;  %v4270_v12 = vmul.f32 %v5982_v15, %v4184_v34  ;;  %v4273_v16 = vadd.f32 %v4095_v54, %v1728_v42  ;;  %v5987_v4 = vld [vmem:[#allocation59_spill] sm:$0xff] }
 0x202   : >> { %vm647_vm12 = vcmp.ge.f32.partialorder %v631_v9, 0.003921569  ;;  %2610 = vpow2.f32 %v1533_v62  ;;  %v1959_v59 = vmul.f32 %v1951_v40, %v3953_v17  ;;  %v457_v21 = vadd.f32 %v449_v50, %v259_v7 }
 0x203   : >> { %5980 = vst [vmem:[#allocation61_spill] sm:$0xff] %v4262_v49  ;;  %v2065_v46 = vmul.f32 %v3983_v2, %v4262_v49  ;;  %vm655_vm13 = vmand %vm639_vm7, %vm647_vm12  ;;  %v368_v43 = vsub.f32 0.0, %v4266_v5  ;;  %v566_v48 = vadd.f32 %v4270_v12, %v5983_v37  ;;  %vm870_vm14 = vcmp.ge.f32.partialorder %v4218_v53, 0.0 }
 0x204   : >> { %v663_v63 = vsel %vm655_vm13, %v631_v9, 0.0  ;;  %v1753_v54 = vsub.f32 0.0, %v4273_v16  ;;  %v4286_v10 = vadd.f32 %v4127_v19, %v1959_v59  ;;  %vm1101_vm15 = vcmp.ge.f32.partialorder %v4221_v13, 0.0  ;;  %v5985_v19 = vld [vmem:[#allocation48_spill] sm:$0xff] }
 0x205   : >> { %v2073_v31 = vadd.f32 %v2065_v46, %v1842_v8  ;;  %v4288_v62 = vmul.f32 %v663_v63, %v507_v56  ;;  %v380_v24 = vmul.f32 1.442695, %v368_v43  ;;  %v730_v50 = vsub.f32 1.0, %v663_v63  ;;  %v5986_v8 = vld [vmem:[#allocation54_spill] sm:$0xff] }
 0x206   : >> { %vm1332_vm0 = vcmp.ge.f32.partialorder %v4224_v58, 0.0  ;;  %v1764_v7 = vmul.f32 1.442695, %v1753_v54  ;;  %v1984_v42 = vsub.f32 0.0, %v4286_v10  ;;  %v574_v59 = vmul.f32 %v566_v48, %v5985_v19 }
 0x207   : >> { %5984 = vst [vmem:[#allocation79_spill] sm:$0xff] %v4288_v62  ;;  %v2605_v9 = vpop.eup %2604  ;;  %2131 = vst [vmem:[#allocation2 + $0x10] sm:$0xff] %v2073_v31  ;;  %v680_v40 = vmul.f32 %v3282_v14, %v4288_v62  ;;  %2612 = vpow2.f32 %v380_v24  ;;  %v581_v46 = vmul.f32 %v5986_v8, %v4184_v34  ;;  %v783_v54 = vsub.f32 %v5958_v36, %v5987_v4 }
 0x208   : >> { %v2607_v44 = vpop.eup %2606  ;;  %v854_v43 = vmul.f32 %v2605_v9, %v5939_v0  ;;  %2614 = vpow2.f32 %v1764_v7  ;;  %v1995_v63 = vmul.f32 1.442695, %v1984_v42  ;;  %vm1563_vm1 = vcmp.ge.f32.partialorder %v4240_v3, 0.0  ;;  %v5988_v7 = vld [vmem:[#allocation63_spill] sm:$0xff] }
 0x209   : >> { %v2609_v49 = vpop.eup %2608  ;;  %v1085_v31 = vmul.f32 %v2607_v44, %v5945_v33  ;;  %v4304_v24 = vmul.f32 %v581_v46, %v4184_v34  ;;  %v4308_v48 = vsub.f32 %v5958_v36, %v3315_v55  ;;  %v4312_v42 = vmul.f32 %v5988_v7, %v783_v54  ;;  %v5992_v7 = vld [vmem:[#allocation93_spill] sm:$0xff] }
 0x20a   : >> { %v862_v29 = vmin.f32 %v854_v43, 0.999  ;;  %v1316_v9 = vmul.f32 %v2609_v49, %v5949_v41  ;;  %2616 = vpow2.f32 %v1995_v63  ;;  %v738_v62 = vmul.f32 %v730_v50, %v507_v56 }
 0x20b   : >> { %v1093_v19 = vmin.f32 %v1085_v31, 0.999  ;;  %v4315_v44 = vadd.f32 %v4304_v24, %v574_v59  ;;  %v812_v37 = vmul.f32 %v3245_v47, %v783_v54  ;;  %v688_v46 = vadd.f32 %v680_v40, %v457_v21 }
 0x20c   : >> { %v2611_v34 = vpop.eup %2610  ;;  %vm878_vm2 = vcmp.ge.f32.partialorder %v862_v29, 0.003921569  ;;  %v1324_v4 = vmin.f32 %v1316_v9, 0.999  ;;  %vm409_vm3 = vcmp.ge.f32.partialorder %v4266_v5, 0.0  ;;  %v797_v49 = vadd.f32 %v4312_v42, %v3225_v35 }
 0x20d   : >> { %vm886_vm4 = vmand %vm870_vm14, %vm878_vm2  ;;  %vm1109_vm5 = vcmp.ge.f32.partialorder %v1093_v19, 0.003921569  ;;  %v1547_v56 = vmul.f32 %v2611_v34, %v5956_v38  ;;  %v599_v50 = vsub.f32 0.0, %v4315_v44  ;;  %v4327_v59 = vmul.f32 %v3358_v20, %v4308_v48 }
 0x20e   : >> { %v894_v21 = vsel %vm886_vm4, %v862_v29, 0.0  ;;  %vm1117_vm6 = vmand %vm1101_vm15, %vm1109_vm5  ;;  %vm1340_vm7 = vcmp.ge.f32.partialorder %v1324_v4, 0.003921569  ;;  %vm1794_vm8 = vcmp.ge.f32.partialorder %v4273_v16, 0.0  ;;  %v805_v40 = vmul.f32 %v797_v49, %v3193_v1 }
 0x20f   : >> { %v4333_v53 = vmul.f32 %v812_v37, %v783_v54  ;;  %v4335_v43 = vmul.f32 %v894_v21, %v738_v62  ;;  %v961_v63 = vsub.f32 1.0, %v894_v21  ;;  %v1125_v31 = vsel %vm1117_vm6, %v1093_v19, 0.0  ;;  %vm1348_vm9 = vmand %vm1332_vm0, %vm1340_vm7 }
 0x210   : >> { %v1555_v9 = vmin.f32 %v1547_v56, 0.999  ;;  %v1192_v34 = vsub.f32 1.0, %v1125_v31  ;;  %v1356_v29 = vsel %vm1348_vm9, %v1324_v4, 0.0  ;;  %vm2025_vm10 = vcmp.ge.f32.partialorder %v4286_v10, 0.0  ;;  %v5990_v56 = vld [vmem:[#allocation77_spill] sm:$0xff] }
 0x211   : >> { %5989 = vst [vmem:[#allocation92_spill] sm:$0xff] %v4335_v43  ;;  %v611_v13 = vmul.f32 1.442695, %v599_v50  ;;  %v4341_v20 = vadd.f32 %v4333_v53, %v805_v40  ;;  %v2613_v55 = vpop.eup %2612  ;;  %v911_v37 = vmul.f32 %v5951_v51, %v4335_v43  ;;  %v969_v54 = vmul.f32 %v961_v63, %v738_v62 }
 0x212   : >> { %v1423_v49 = vsub.f32 1.0, %v1356_v29  ;;  %vm1571_vm11 = vcmp.ge.f32.partialorder %v1555_v9, 0.003921569  ;;  %v2615_v19 = vpop.eup %2614  ;;  %v393_v58 = vmul.f32 %v2613_v55, %v5933_v18  ;;  %v1043_v50 = vmul.f32 %v5990_v56, %v4308_v48 }
 0x213   : >> { %vm1579_vm12 = vmand %vm1563_vm1, %vm1571_vm11  ;;  %2618 = vpow2.f32 %v611_v13  ;;  %v830_v4 = vsub.f32 0.0, %v4341_v20  ;;  %v919_v21 = vadd.f32 %v911_v37, %v688_v46  ;;  %v4351_v40 = vmul.f32 %v1125_v31, %v969_v54  ;;  %v5994_v46 = vld [vmem:[#allocation75_spill] sm:$0xff] }
 0x214   : >> { %v1200_v47 = vmul.f32 %v1192_v34, %v969_v54  ;;  %v1587_v43 = vsel %vm1579_vm12, %v1555_v9, 0.0  ;;  %v2617_v62 = vpop.eup %2616  ;;  %v1778_v1 = vmul.f32 %v2615_v19, %v3963_v52  ;;  %v401_v35 = vmin.f32 %v393_v58, 0.999 }
 0x215   : >> { %5991 = vst [vmem:[#allocation64_spill] sm:$0xff] %v4351_v40  ;;  %v1654_v63 = vsub.f32 1.0, %v1587_v43  ;;  %v842_v3 = vmul.f32 1.442695, %v830_v4  ;;  %v1142_v55 = vmul.f32 %v5992_v7, %v4351_v40  ;;  %v2009_v15 = vmul.f32 %v2617_v62, %v3974_v39  ;;  %v5997_v4 = vld [vmem:[#allocation37_spill] sm:$0xff]  ;;  %v6008_v40 = vld [vmem:[#allocation84_spill] sm:$0xff] }
 0x216   : >> { %v4356_v13 = vmul.f32 %v1356_v29, %v1200_v47  ;;  %v1431_v8 = vmul.f32 %v1423_v49, %v1200_v47  ;;  %v1786_v56 = vmin.f32 %v1778_v1, 0.999  ;;  %vm417_vm13 = vcmp.ge.f32.partialorder %v401_v35, 0.003921569  ;;  %v5996_v49 = vld [vmem:[#allocation71_spill] sm:$0xff] }
 0x217   : >> { %2620 = vpow2.f32 %v842_v3  ;;  %v1028_v31 = vadd.f32 %v4327_v59, %v5994_v46  ;;  %v1150_v9 = vadd.f32 %v1142_v55, %v919_v21  ;;  %vm425_vm14 = vmand %vm409_vm3, %vm417_vm13  ;;  %v2017_v47 = vmin.f32 %v2009_v15, 0.999  ;;  %v5999_v15 = vld [vmem:[#allocation85_spill] sm:$0xff] }
 0x218   : >> { %5993 = vst [vmem:[#allocation68_spill] sm:$0xff] %v4356_v13  ;;  %v1373_v34 = vmul.f32 %v3713_v60, %v4356_v13  ;;  %v4363_v37 = vmul.f32 %v1587_v43, %v1431_v8  ;;  %v1662_v54 = vmul.f32 %v1654_v63, %v1431_v8  ;;  %vm1802_vm15 = vcmp.ge.f32.partialorder %v1786_v56, 0.003921569 }
 0x219   : >> { %v433_v29 = vsel %vm425_vm14, %v401_v35, 0.0  ;;  %v1036_v1 = vmul.f32 %v1028_v31, %v5996_v49  ;;  %vm1810_vm0 = vmand %vm1794_vm8, %vm1802_vm15  ;;  %vm2033_vm1 = vcmp.ge.f32.partialorder %v2017_v47, 0.003921569  ;;  %v4376_v5 = vmul.f32 %v1043_v50, %v4308_v48  ;;  %v6009_v49 = vld [vmem:[#allocation107_spill] sm:$0xff] }
 0x21a   : >> { %5995 = vst [vmem:[#allocation70_spill] sm:$0xff] %v4363_v37  ;;  %v1381_v19 = vadd.f32 %v1373_v34, %v1150_v9  ;;  %v1604_v58 = vmul.f32 %v3760_v11, %v4363_v37  ;;  %v4373_v21 = vmul.f32 %v433_v29, %v5997_v4  ;;  %v500_v43 = vsub.f32 1.0, %v433_v29  ;;  %vm2041_vm2 = vmand %vm2025_vm10, %vm2033_vm1 }
 0x21b   : >> { %v1818_v8 = vsel %vm1810_vm0, %v1786_v56, 0.0  ;;  %v1245_v35 = vsub.f32 %v5958_v36, %v5999_v15  ;;  %vm640_vm3 = vcmp.ge.f32.partialorder %v4315_v44, 0.0  ;;  %v4385_v55 = vsel %vm2041_vm2, %v2017_v47, 0.0  ;;  %v6002_v56 = vld [vmem:[#allocation89_spill] sm:$0xff] }
 0x21c   : >> { %5998 = vst [vmem:[#allocation93_spill] sm:$0xff] %v4373_v21  ;;  %v1612_v62 = vadd.f32 %v1604_v58, %v1381_v19  ;;  %v4380_v63 = vmul.f32 %v1818_v8, %v1662_v54  ;;  %v1885_v3 = vsub.f32 1.0, %v1818_v8  ;;  %6001 = vst [vmem:[#allocation135_spill] sm:$0xff] %v4385_v55  ;;  %vm871_vm4 = vcmp.ge.f32.partialorder %v4341_v20, 0.0  ;;  %v6004_v19 = vld [vmem:[#allocation88_spill] sm:$0xff]  ;;  %v6005_v58 = vld [vmem:[#allocation90_spill] sm:$0xff] }
 0x21d   : >> { %v2619_v16 = vpop.eup %2618  ;;  %v4389_v48 = vadd.f32 %v4376_v5, %v1036_v1  ;;  %v4392_v50 = vmul.f32 %v6002_v56, %v1245_v35  ;;  %v450_v10 = vmul.f32 %v5973_v32, %v4373_v21  ;;  %v508_v47 = vmul.f32 %v500_v43, %v5997_v4  ;;  %v6013_v56 = vld [vmem:[#allocation97_spill] sm:$0xff] }
 0x21e   : >> { %6000 = vst [vmem:[#allocation134_spill] sm:$0xff] %v4380_v63  ;;  %v1835_v31 = vmul.f32 %v3966_v25, %v4380_v63  ;;  %v4396_v9 = vmul.f32 %v1885_v3, %v1662_v54  ;;  %v624_v34 = vmul.f32 %v2619_v16, %v5976_v26  ;;  %v1274_v8 = vmul.f32 %v6005_v58, %v1245_v35  ;;  %v6007_v3 = vld [vmem:[#allocation96_spill] sm:$0xff]  ;;  %v6021_v20 = vld [vmem:[#allocation121_spill] sm:$0xff] }
 0x21f   : >> { %v1061_v29 = vsub.f32 0.0, %v4389_v48  ;;  %v1259_v1 = vadd.f32 %v4392_v50, %v6004_v19  ;;  %v1476_v21 = vsub.f32 %v5958_v36, %v6007_v3  ;;  %v1707_v19 = vsub.f32 %v5958_v36, %v6009_v49 }
 0x220   : >> { %6003 = vst [vmem:[#allocation136_spill] sm:$0xff] %v4396_v9  ;;  %v1843_v37 = vadd.f32 %v1835_v31, %v1612_v62  ;;  %v4408_v63 = vmul.f32 %v4385_v55, %v4396_v9  ;;  %v632_v54 = vmin.f32 %v624_v34, 0.999  ;;  %v4413_v43 = vmul.f32 %v1274_v8, %v1245_v35  ;;  %v260_v31 = vld [vmem:[#allocation2 + $0x20] sm:$0xff]  ;;  %v6012_v8 = vld [vmem:[#allocation111_spill] sm:$0xff] }
 0x221   : >> { %v2621_v13 = vpop.eup %2620  ;;  %v1073_v16 = vmul.f32 1.442695, %v1061_v29  ;;  %v1267_v4 = vmul.f32 %v1259_v1, %v6008_v40  ;;  %v6010_v34 = vld [vmem:[#allocation98_spill] sm:$0xff]  ;;  %v6011_v29 = vld [vmem:[#allocation100_spill] sm:$0xff]  ;;  %v4430_v40 = vmul.f32 %v6012_v8, %v1707_v19  ;;  %vm1102_vm9 = vcmp.ge.f32.partialorder %v4389_v48, 0.0 }
 0x222   : >> { %6006 = vst [vmem:[#allocation137_spill] sm:$0xff] %v4408_v63  ;;  %v2066_v62 = vmul.f32 %v3983_v2, %v4408_v63  ;;  %vm648_vm5 = vcmp.ge.f32.partialorder %v632_v54, 0.003921569  ;;  %v855_v9 = vmul.f32 %v2621_v13, %v5939_v0  ;;  %v4421_v55 = vmul.f32 %v6010_v34, %v1476_v21  ;;  %v6016_v8 = vld [vmem:[#allocation112_spill] sm:$0xff] }
 0x223   : >> { %vm656_vm6 = vmand %vm640_vm3, %vm648_vm5  ;;  %2622 = vpow2.f32 %v1073_v16  ;;  %v4426_v35 = vadd.f32 %v4413_v43, %v1267_v4  ;;  %v1505_v1 = vmul.f32 %v6011_v29, %v1476_v21  ;;  %v458_v34 = vadd.f32 %v450_v10, %v260_v31  ;;  %v6015_v4 = vld [vmem:[#allocation95_spill] sm:$0xff]  ;;  %v6018_v31 = vld [vmem:[#allocation108_spill] sm:$0xff] }
 0x224   : >> { %v2074_v63 = vadd.f32 %v2066_v62, %v1843_v37  ;;  %v664_v49 = vsel %vm656_vm6, %v632_v54, 0.0  ;;  %v863_v58 = vmin.f32 %v855_v9, 0.999  ;;  %v1490_v13 = vadd.f32 %v4421_v55, %v6013_v56 }
 0x225   : >> { %v4434_v46 = vmul.f32 %v664_v49, %v508_v47  ;;  %v731_v44 = vsub.f32 1.0, %v664_v49  ;;  %v1292_v16 = vsub.f32 0.0, %v4426_v35  ;;  %v4438_v29 = vmul.f32 %v1505_v1, %v1476_v21  ;;  %v6017_v49 = vld [vmem:[#allocation114_spill] sm:$0xff]  ;;  %v6019_v21 = vld [vmem:[#allocation119_spill] sm:$0xff] }
 0x226   : >> { %2132 = vst [vmem:[#allocation2 + $0x18] sm:$0xff] %v2074_v63  ;;  %vm879_vm7 = vcmp.ge.f32.partialorder %v863_v58, 0.003921569  ;;  %v1498_v3 = vmul.f32 %v1490_v13, %v6015_v4  ;;  %v1721_v37 = vadd.f32 %v4430_v40, %v6016_v8  ;;  %v1736_v62 = vmul.f32 %v6017_v49, %v1707_v19 }
 0x227   : >> { %6014 = vst [vmem:[#allocation138_spill] sm:$0xff] %v4434_v46  ;;  %v681_v9 = vmul.f32 %v3282_v14, %v4434_v46  ;;  %v739_v54 = vmul.f32 %v731_v44, %v508_v47  ;;  %vm887_vm8 = vmand %vm871_vm4, %vm879_vm7  ;;  %v1304_v10 = vmul.f32 1.442695, %v1292_v16  ;;  %v1938_v1 = vsub.f32 %v5958_v36, %v6019_v21 }
 0x228   : >> { %v4448_v63 = vadd.f32 %v4438_v29, %v1498_v3  ;;  %v1729_v13 = vmul.f32 %v1721_v37, %v6018_v31  ;;  %v895_v4 = vsel %vm887_vm8, %v863_v58, 0.0  ;;  %v4456_v44 = vmul.f32 %v1736_v62, %v1707_v19  ;;  %v6022_v3 = vld [vmem:[#allocation122_spill] sm:$0xff]  ;;  %v6024_v31 = vld [vmem:[#allocation60_spill] sm:$0xff]  ;;  %v6026_v19 = vld [vmem:[#allocation53_spill] sm:$0xff] }
 0x229   : >> { %2624 = vpow2.f32 %v1304_v10  ;;  %v4453_v8 = vmul.f32 %v895_v4, %v739_v54  ;;  %v4459_v16 = vmul.f32 %v6021_v20, %v1938_v1  ;;  %v689_v46 = vadd.f32 %v681_v9, %v458_v34  ;;  %v6023_v37 = vld [vmem:[#allocation46_spill] sm:$0xff]  ;;  %v6025_v10 = vld [vmem:[#allocation120_spill] sm:$0xff]  ;;  %v6027_v9 = vld [vmem:[#allocation43_spill] sm:$0xff] }
 0x22a   : >> { %v1523_v47 = vsub.f32 0.0, %v4448_v63  ;;  %v1967_v49 = vmul.f32 %v6022_v3, %v1938_v1  ;;  %v336_v56 = vadd.f32 %v6024_v31, %v6023_v37  ;;  %v4466_v58 = vadd.f32 %v4456_v44, %v1729_v13  ;;  %v6028_v3 = vld [vmem:[#allocation67_spill] sm:$0xff]  ;;  %v6029_v37 = vld [vmem:[#allocation118_spill] sm:$0xff] }
 0x22b   : >> { %6020 = vst [vmem:[#allocation139_spill] sm:$0xff] %v4453_v8  ;;  %v1952_v21 = vadd.f32 %v4459_v16, %v6025_v10  ;;  %v567_v62 = vadd.f32 %v4270_v12, %v6026_v19  ;;  %v962_v15 = vsub.f32 1.0, %v895_v4  ;;  %v798_v2 = vadd.f32 %v4312_v42, %v6028_v3  ;;  %v6030_v4 = vld [vmem:[#allocation50_spill] sm:$0xff] }
 0x22c   : >> { %v1535_v36 = vmul.f32 1.442695, %v1523_v47  ;;  %v4472_v34 = vmul.f32 %v1967_v49, %v1938_v1  ;;  %v344_v14 = vmul.f32 %v336_v56, %v6027_v9  ;;  %v912_v31 = vmul.f32 %v5951_v51, %v4453_v8 }
 0x22d   : >> { %v2623_v20 = vpop.eup %2622  ;;  %v1754_v47 = vsub.f32 0.0, %v4466_v58  ;;  %v1960_v10 = vmul.f32 %v1952_v21, %v6029_v37  ;;  %v575_v49 = vmul.f32 %v567_v62, %v6030_v4  ;;  %v806_v56 = vmul.f32 %v798_v2, %v5967_v30 }
 0x22e   : >> { %v1086_v13 = vmul.f32 %v2623_v20, %v5945_v33  ;;  %2626 = vpow2.f32 %v1535_v36  ;;  %v4483_v12 = vadd.f32 %v5981_v6, %v344_v14  ;;  %vm1333_vm10 = vcmp.ge.f32.partialorder %v4426_v35, 0.0 }
 0x22f   : >> { %v1766_v42 = vmul.f32 1.442695, %v1754_v47  ;;  %v1029_v8 = vadd.f32 %v4327_v59, %v5964_v61  ;;  %v970_v20 = vmul.f32 %v962_v15, %v739_v54  ;;  %v4491_v36 = vadd.f32 %v4472_v34, %v1960_v10 }
 0x230   : >> { %v1094_v1 = vmin.f32 %v1086_v13, 0.999  ;;  %v369_v21 = vsub.f32 0.0, %v4483_v12  ;;  %v4495_v14 = vadd.f32 %v4304_v24, %v575_v49  ;;  %v4498_v2 = vadd.f32 %v4333_v53, %v806_v56 }
 0x231   : >> { %2628 = vpow2.f32 %v1766_v42  ;;  %v1037_v6 = vmul.f32 %v1029_v8, %v5968_v22  ;;  %v920_v13 = vadd.f32 %v912_v31, %v689_v46  ;;  %v1985_v59 = vsub.f32 0.0, %v4491_v36 }
 0x232   : >> { %vm1110_vm11 = vcmp.ge.f32.partialorder %v1094_v1, 0.003921569  ;;  %v382_v15 = vmul.f32 1.442695, %v369_v21  ;;  %v600_v54 = vsub.f32 0.0, %v4495_v14  ;;  %v831_v47 = vsub.f32 0.0, %v4498_v2 }
 0x233   : >> { %v2625_v62 = vpop.eup %2624  ;;  %vm1118_vm12 = vmand %vm1102_vm9, %vm1110_vm11  ;;  %v1260_v53 = vadd.f32 %v4392_v50, %v5965_v28  ;;  %v1997_v46 = vmul.f32 1.442695, %v1985_v59  ;;  %v4512_v42 = vadd.f32 %v4376_v5, %v1037_v6  ;;  %vm1564_vm13 = vcmp.ge.f32.partialorder %v4448_v63, 0.0 }
 0x234   : >> { %v1126_v10 = vsel %vm1118_vm12, %v1094_v1, 0.0  ;;  %v1317_v24 = vmul.f32 %v2625_v62, %v5949_v41  ;;  %2630 = vpow2.f32 %v382_v15  ;;  %v613_v31 = vmul.f32 1.442695, %v600_v54  ;;  %v6032_v54 = vld [vmem:[#allocation103_spill] sm:$0xff] }
 0x235   : >> { %v4509_v49 = vmul.f32 %v1126_v10, %v970_v20  ;;  %v1193_v8 = vsub.f32 1.0, %v1126_v10  ;;  %v844_v56 = vmul.f32 1.442695, %v831_v47  ;;  %2632 = vpow2.f32 %v1997_v46 }
 0x236   : >> { %v1325_v48 = vmin.f32 %v1317_v24, 0.999  ;;  %vm1795_vm15 = vcmp.ge.f32.partialorder %v4466_v58, 0.0  ;;  %2634 = vpow2.f32 %v613_v31  ;;  %v1062_v50 = vsub.f32 0.0, %v4512_v42 }
 0x237   : >> { %6031 = vst [vmem:[#allocation60_spill] sm:$0xff] %v4509_v49  ;;  %v1143_v1 = vmul.f32 %v5992_v7, %v4509_v49  ;;  %v1201_v21 = vmul.f32 %v1193_v8, %v970_v20  ;;  %2636 = vpow2.f32 %v844_v56  ;;  %v1268_v6 = vmul.f32 %v1260_v53, %v5969_v23  ;;  %v6034_v53 = vld [vmem:[#allocation101_spill] sm:$0xff] }
 0x238   : >> { %v2627_v62 = vpop.eup %2626  ;;  %vm1341_vm14 = vcmp.ge.f32.partialorder %v1325_v48, 0.003921569  ;;  %v1075_v15 = vmul.f32 1.442695, %v1062_v50  ;;  %v1491_v10 = vadd.f32 %v4421_v55, %v6032_v54  ;;  %v1722_v24 = vadd.f32 %v4430_v40, %v5974_v45 }
 0x239   : >> { %v1151_v59 = vadd.f32 %v1143_v1, %v920_v13  ;;  %vm1349_vm0 = vmand %vm1333_vm10, %vm1341_vm14  ;;  %v1548_v5 = vmul.f32 %v2627_v62, %v5956_v38  ;;  %vm410_vm1 = vcmp.ge.f32.partialorder %v4483_v12, 0.0  ;;  %v4531_v35 = vadd.f32 %v4413_v43, %v1268_v6 }
 0x23a   : >> { %v1357_v20 = vsel %vm1349_vm0, %v1325_v48, 0.0  ;;  %vm2026_vm2 = vcmp.ge.f32.partialorder %v4491_v36, 0.0  ;;  %2638 = vpow2.f32 %v1075_v15  ;;  %v1499_v48 = vmul.f32 %v1491_v10, %v6034_v53  ;;  %v261_v36 = vld [vmem:[#allocation2 + $0x28] sm:$0xff] }
 0x23b   : >> { %v4527_v47 = vmul.f32 %v1357_v20, %v1201_v21  ;;  %v1424_v8 = vsub.f32 1.0, %v1357_v20  ;;  %v1556_v13 = vmin.f32 %v1548_v5, 0.999  ;;  %v2629_v46 = vpop.eup %2628  ;;  %v1730_v55 = vmul.f32 %v1722_v24, %v5979_v27 }
 0x23c   : >> { %v1953_v40 = vadd.f32 %v4459_v16, %v3979_v57  ;;  %v1779_v1 = vmul.f32 %v2629_v46, %v3963_v52  ;;  %vm641_vm5 = vcmp.ge.f32.partialorder %v4495_v14, 0.0  ;;  %v1293_v43 = vsub.f32 0.0, %v4531_v35  ;;  %v6042_v14 = vld [vmem:[#allocation128_spill] sm:$0xff]  ;;  %v6081_v57 = vld [vmem:[#allocation107_spill] sm:$0xff] }
 0x23d   : >> { %6033 = vst [vmem:[#allocation53_spill] sm:$0xff] %v4527_v47  ;;  %v1374_v31 = vmul.f32 %v3713_v60, %v4527_v47  ;;  %v1432_v56 = vmul.f32 %v1424_v8, %v1201_v21  ;;  %vm1572_vm3 = vcmp.ge.f32.partialorder %v1556_v13, 0.003921569  ;;  %v4546_v62 = vadd.f32 %v4438_v29, %v1499_v48 }
 0x23e   : >> { %vm1580_vm4 = vmand %vm1564_vm13, %vm1572_vm3  ;;  %v4549_v50 = vadd.f32 %v4456_v44, %v1730_v55  ;;  %v2631_v16 = vpop.eup %2630  ;;  %v1787_v21 = vmin.f32 %v1779_v1, 0.999  ;;  %vm872_vm6 = vcmp.ge.f32.partialorder %v4498_v2, 0.0  ;;  %v1306_v10 = vmul.f32 1.442695, %v1293_v43 }
 0x23f   : >> { %v1382_v5 = vadd.f32 %v1374_v31, %v1151_v59  ;;  %v1588_v6 = vsel %vm1580_vm4, %v1556_v13, 0.0  ;;  %v394_v15 = vmul.f32 %v2631_v16, %v5933_v18  ;;  %v2633_v24 = vpop.eup %2632  ;;  %vm1103_vm8 = vcmp.ge.f32.partialorder %v4512_v42, 0.0 }
 0x240   : >> { %v4552_v20 = vmul.f32 %v1588_v6, %v1432_v56  ;;  %v1655_v63 = vsub.f32 1.0, %v1588_v6  ;;  %vm1803_vm7 = vcmp.ge.f32.partialorder %v1787_v21, 0.003921569  ;;  %v1524_v29 = vsub.f32 0.0, %v4546_v62  ;;  %v2635_v8 = vpop.eup %2634 }
 0x241   : >> { %v1755_v44 = vsub.f32 0.0, %v4549_v50  ;;  %v1961_v59 = vmul.f32 %v1953_v40, %v3953_v17  ;;  %vm1811_vm9 = vmand %vm1795_vm15, %vm1803_vm7  ;;  %v2010_v48 = vmul.f32 %v2633_v24, %v3974_v39  ;;  %v402_v55 = vmin.f32 %v394_v15, 0.999  ;;  %v2637_v31 = vpop.eup %2636  ;;  %v6078_v17 = vld [vmem:[#allocation100_spill] sm:$0xff] }
 0x242   : >> { %6035 = vst [vmem:[#allocation43_spill] sm:$0xff] %v4552_v20  ;;  %v1605_v13 = vmul.f32 %v3760_v11, %v4552_v20  ;;  %v1663_v46 = vmul.f32 %v1655_v63, %v1432_v56  ;;  %v1819_v1 = vsel %vm1811_vm9, %v1787_v21, 0.0  ;;  %v625_v43 = vmul.f32 %v2635_v8, %v5976_v26 }
 0x243   : >> { %2640 = vpow2.f32 %v1306_v10  ;;  %v1537_v16 = vmul.f32 1.442695, %v1524_v29  ;;  %v1886_v40 = vsub.f32 1.0, %v1819_v1  ;;  %v2018_v49 = vmin.f32 %v2010_v48, 0.999 }
 0x244   : >> { %v1613_v6 = vadd.f32 %v1605_v13, %v1382_v5  ;;  %v4565_v47 = vmul.f32 %v1819_v1, %v1663_v46  ;;  %vm418_vm10 = vcmp.ge.f32.partialorder %v402_v55, 0.003921569  ;;  %v633_v20 = vmin.f32 %v625_v43, 0.999  ;;  %v2639_v58 = vpop.eup %2638  ;;  %v6039_v13 = vld [vmem:[#allocation38_spill] sm:$0xff] }
 0x245   : >> { %v856_v56 = vmul.f32 %v2637_v31, %v5939_v0  ;;  %2642 = vpow2.f32 %v1537_v16  ;;  %v4570_v15 = vmul.f32 %v1886_v40, %v1663_v46  ;;  %vm2034_vm11 = vcmp.ge.f32.partialorder %v2018_v49, 0.003921569  ;;  %vm426_vm12 = vmand %vm410_vm1, %vm418_vm10 }
 0x246   : >> { %6036 = vst [vmem:[#allocation67_spill] sm:$0xff] %v4565_v47  ;;  %v1836_v63 = vmul.f32 %v3966_v25, %v4565_v47  ;;  %v1768_v5 = vmul.f32 1.442695, %v1755_v44  ;;  %vm2042_vm13 = vmand %vm2026_vm2, %vm2034_vm11  ;;  %v434_v21 = vsel %vm426_vm12, %v402_v55, 0.0  ;;  %vm649_vm14 = vcmp.ge.f32.partialorder %v633_v20, 0.003921569 }
 0x247   : >> { %6037 = vst [vmem:[#allocation118_spill] sm:$0xff] %v4570_v15  ;;  %v864_v10 = vmin.f32 %v856_v56, 0.999  ;;  %v1087_v24 = vmul.f32 %v2639_v58, %v5945_v33  ;;  %v4577_v8 = vsel %vm2042_vm13, %v2018_v49, 0.0  ;;  %v4580_v48 = vmul.f32 %v434_v21, %v6039_v13  ;;  %vm657_vm15 = vmand %vm641_vm5, %vm649_vm14  ;;  %v6061_v47 = vld [vmem:[#allocation62_spill] sm:$0xff] }
 0x248   : >> { %v1844_v29 = vadd.f32 %v1836_v63, %v1613_v6  ;;  %6038 = vst [vmem:[#allocation50_spill] sm:$0xff] %v4577_v8  ;;  %v501_v46 = vsub.f32 1.0, %v434_v21  ;;  %v4586_v12 = vmul.f32 %v4577_v8, %v4570_v15  ;;  %v665_v44 = vsel %vm657_vm15, %v633_v20, 0.0  ;;  %v6044_v21 = vld [vmem:[#allocation41_spill] sm:$0xff] }
 0x249   : >> { %6040 = vst [vmem:[#allocation103_spill] sm:$0xff] %v4580_v48  ;;  %vm880_vm0 = vcmp.ge.f32.partialorder %v864_v10, 0.003921569  ;;  %v1095_v55 = vmin.f32 %v1087_v24, 0.999  ;;  %vm1334_vm1 = vcmp.ge.f32.partialorder %v4531_v35, 0.0  ;;  %v451_v49 = vmul.f32 %v5973_v32, %v4580_v48 }
 0x24a   : >> { %6041 = vst [vmem:[#allocation140_spill] sm:$0xff] %v4586_v12  ;;  %v509_v31 = vmul.f32 %v501_v46, %v6039_v13  ;;  %v732_v1 = vsub.f32 1.0, %v665_v44  ;;  %vm888_vm2 = vmand %vm872_vm6, %vm880_vm0  ;;  %2644 = vpow2.f32 %v1768_v5  ;;  %v2067_v43 = vmul.f32 %v6042_v14, %v4586_v12  ;;  %v6045_v24 = vld [vmem:[#allocation34_spill] sm:$0xff]  ;;  %v6046_v13 = vld [vmem:[#allocation69_spill] sm:$0xff] }
 0x24b   : >> { %v896_v16 = vsel %vm888_vm2, %v864_v10, 0.0  ;;  %vm1111_vm3 = vcmp.ge.f32.partialorder %v1095_v55, 0.003921569  ;;  %vm1565_vm4 = vcmp.ge.f32.partialorder %v4546_v62, 0.0  ;;  %v459_v20 = vadd.f32 %v451_v49, %v261_v36 }
 0x24c   : >> { %v4597_v6 = vmul.f32 %v665_v44, %v509_v31  ;;  %v740_v40 = vmul.f32 %v732_v1, %v509_v31  ;;  %v963_v56 = vsub.f32 1.0, %v896_v16  ;;  %vm1119_vm5 = vmand %vm1103_vm8, %vm1111_vm3  ;;  %v2075_v63 = vadd.f32 %v2067_v43, %v1844_v29 }
 0x24d   : >> { %v2641_v58 = vpop.eup %2640  ;;  %v1127_v2 = vsel %vm1119_vm5, %v1095_v55, 0.0  ;;  %v4602_v5 = vadd.f32 %v4472_v34, %v1961_v59  ;;  %v322_v10 = vsub.f32 %v6045_v24, %v6044_v21  ;;  %vm1796_vm6 = vcmp.ge.f32.partialorder %v4549_v50, 0.0  ;;  %v6048_v34 = vld [vmem:[#allocation44_spill] sm:$0xff]  ;;  %v6050_v21 = vld [vmem:[#allocation45_spill] sm:$0xff] }
 0x24e   : >> { %6043 = vst [vmem:[#allocation141_spill] sm:$0xff] %v4597_v6  ;;  %v682_v46 = vmul.f32 %v6046_v13, %v4597_v6  ;;  %v4608_v36 = vmul.f32 %v896_v16, %v740_v40  ;;  %v971_v44 = vmul.f32 %v963_v56, %v740_v40  ;;  %v1194_v49 = vsub.f32 1.0, %v1127_v2  ;;  %2133 = vst [vmem:[#allocation2 + $0x20] sm:$0xff] %v2075_v63  ;;  %v6064_v6 = vld [vmem:[#allocation65_spill] sm:$0xff] }
 0x24f   : >> { %v2643_v31 = vpop.eup %2642  ;;  %v1318_v42 = vmul.f32 %v2641_v58, %v5949_v41  ;;  %v1986_v29 = vsub.f32 0.0, %v4602_v5  ;;  %v4614_v59 = vmul.f32 %v6048_v34, %v322_v10  ;;  %v6051_v34 = vld [vmem:[#allocation47_spill] sm:$0xff]  ;;  %vm2027_vm13 = vcmp.ge.f32.partialorder %v4602_v5, 0.0 }
 0x250   : >> { %6047 = vst [vmem:[#allocation41_spill] sm:$0xff] %v4608_v36  ;;  %v690_v55 = vadd.f32 %v682_v46, %v459_v20  ;;  %v913_v1 = vmul.f32 %v5951_v51, %v4608_v36  ;;  %v4618_v43 = vmul.f32 %v1127_v2, %v971_v44  ;;  %v1202_v16 = vmul.f32 %v1194_v49, %v971_v44  ;;  %v6052_v20 = vld [vmem:[#allocation49_spill] sm:$0xff]  ;;  %v6053_v44 = vld [vmem:[#allocation42_spill] sm:$0xff] }
 0x251   : >> { %v1326_v40 = vmin.f32 %v1318_v42, 0.999  ;;  %v1549_v56 = vmul.f32 %v2643_v31, %v5956_v38  ;;  %v1999_v63 = vmul.f32 1.442695, %v1986_v29  ;;  %v337_v58 = vadd.f32 %v4614_v59, %v6050_v21  ;;  %v6055_v21 = vld [vmem:[#allocation54_spill] sm:$0xff] }
 0x252   : >> { %6049 = vst [vmem:[#allocation69_spill] sm:$0xff] %v4618_v43  ;;  %v921_v15 = vadd.f32 %v913_v1, %v690_v55  ;;  %v1144_v8 = vmul.f32 %v5992_v7, %v4618_v43  ;;  %v351_v12 = vmul.f32 %v6051_v34, %v322_v10  ;;  %v553_v46 = vsub.f32 %v6045_v24, %v6052_v20  ;;  %v6054_v55 = vld [vmem:[#allocation52_spill] sm:$0xff] }
 0x253   : >> { %vm1342_vm7 = vcmp.ge.f32.partialorder %v1326_v40, 0.003921569  ;;  %v1557_v2 = vmin.f32 %v1549_v56, 0.999  ;;  %2646 = vpow2.f32 %v1999_v63  ;;  %v345_v49 = vmul.f32 %v337_v58, %v6053_v44  ;;  %v6056_v56 = vld [vmem:[#allocation59_spill] sm:$0xff] }
 0x254   : >> { %v2645_v42 = vpop.eup %2644  ;;  %v1152_v31 = vadd.f32 %v1144_v8, %v921_v15  ;;  %vm1350_vm8 = vmand %vm1334_vm1, %vm1342_vm7  ;;  %v4631_v29 = vmul.f32 %v351_v12, %v322_v10  ;;  %v4634_v1 = vmul.f32 %v6054_v55, %v553_v46  ;;  %v582_v34 = vmul.f32 %v6055_v21, %v553_v46  ;;  %v6058_v8 = vld [vmem:[#allocation51_spill] sm:$0xff] }
 0x255   : >> { %v1358_v43 = vsel %vm1350_vm8, %v1326_v40, 0.0  ;;  %vm1573_vm9 = vcmp.ge.f32.partialorder %v1557_v2, 0.003921569  ;;  %v1780_v20 = vmul.f32 %v2645_v42, %v3963_v52  ;;  %v784_v63 = vsub.f32 %v6045_v24, %v6056_v56  ;;  %v6059_v42 = vld [vmem:[#allocation63_spill] sm:$0xff] }
 0x256   : >> { %v4640_v58 = vmul.f32 %v1358_v43, %v1202_v16  ;;  %v1425_v15 = vsub.f32 1.0, %v1358_v43  ;;  %vm1581_vm10 = vmand %vm1565_vm4, %vm1573_vm9  ;;  %v4645_v35 = vadd.f32 %v4631_v29, %v345_v49  ;;  %v568_v12 = vadd.f32 %v4634_v1, %v6058_v8  ;;  %v6060_v49 = vld [vmem:[#allocation48_spill] sm:$0xff] }
 0x257   : >> { %v1589_v10 = vsel %vm1581_vm10, %v1557_v2, 0.0  ;;  %v1788_v40 = vmin.f32 %v1780_v20, 0.999  ;;  %v4649_v44 = vmul.f32 %v582_v34, %v553_v46  ;;  %v4652_v55 = vmul.f32 %v6059_v42, %v784_v63 }
 0x258   : >> { %6057 = vst [vmem:[#allocation44_spill] sm:$0xff] %v4640_v58  ;;  %v1375_v21 = vmul.f32 %v3713_v60, %v4640_v58  ;;  %v1433_v43 = vmul.f32 %v1425_v15, %v1202_v16  ;;  %v1656_v56 = vsub.f32 1.0, %v1589_v10  ;;  %v370_v62 = vsub.f32 0.0, %v4645_v35  ;;  %v6063_v15 = vld [vmem:[#allocation58_spill] sm:$0xff] }
 0x259   : >> { %vm1804_vm11 = vcmp.ge.f32.partialorder %v1788_v40, 0.003921569  ;;  %v576_v36 = vmul.f32 %v568_v12, %v6060_v49  ;;  %v799_v8 = vadd.f32 %v4652_v55, %v6061_v47  ;;  %v813_v48 = vmul.f32 %v6064_v6, %v784_v63 }
 0x25a   : >> { %v1383_v2 = vadd.f32 %v1375_v21, %v1152_v31  ;;  %v4660_v20 = vmul.f32 %v1589_v10, %v1433_v43  ;;  %v1664_v46 = vmul.f32 %v1656_v56, %v1433_v43  ;;  %vm1812_vm12 = vmand %vm1796_vm6, %vm1804_vm11  ;;  %v384_v34 = vmul.f32 1.442695, %v370_v62 }
 0x25b   : >> { %v1820_v42 = vsel %vm1812_vm12, %v1788_v40, 0.0  ;;  %v4665_v16 = vadd.f32 %v4649_v44, %v576_v36  ;;  %v807_v58 = vmul.f32 %v799_v8, %v6063_v15  ;;  %v4674_v21 = vmul.f32 %v813_v48, %v784_v63  ;;  %v6066_v40 = vld [vmem:[#allocation72_spill] sm:$0xff]  ;;  %v6068_v48 = vld [vmem:[#allocation77_spill] sm:$0xff] }
 0x25c   : >> { %6062 = vst [vmem:[#allocation45_spill] sm:$0xff] %v4660_v20  ;;  %v1606_v12 = vmul.f32 %v3760_v11, %v4660_v20  ;;  %v4671_v47 = vmul.f32 %v1820_v42, %v1664_v46  ;;  %v1887_v31 = vsub.f32 1.0, %v1820_v42  ;;  %2648 = vpow2.f32 %v384_v34  ;;  %v6067_v8 = vld [vmem:[#allocation76_spill] sm:$0xff] }
 0x25d   : >> { %v2647_v10 = vpop.eup %2646  ;;  %v601_v50 = vsub.f32 0.0, %v4665_v16  ;;  %v1015_v36 = vsub.f32 %v6045_v24, %v6066_v40  ;;  %v4683_v49 = vadd.f32 %v4674_v21, %v807_v58  ;;  %v6071_v40 = vld [vmem:[#allocation96_spill] sm:$0xff]  ;;  %v6072_v58 = vld [vmem:[#allocation75_spill] sm:$0xff]  ;;  %vm411_vm0 = vcmp.ge.f32.partialorder %v4645_v35, 0.0 }
 0x25e   : >> { %6065 = vst [vmem:[#allocation47_spill] sm:$0xff] %v4671_v47  ;;  %v1614_v43 = vadd.f32 %v1606_v12, %v1383_v2  ;;  %v1837_v56 = vmul.f32 %v3966_v25, %v4671_v47  ;;  %v2011_v6 = vmul.f32 %v2647_v10, %v3974_v39  ;;  %v4689_v42 = vmul.f32 %v1887_v31, %v1664_v46  ;;  %v6070_v2 = vld [vmem:[#allocation85_spill] sm:$0xff]  ;;  %v6074_v31 = vld [vmem:[#allocation90_spill] sm:$0xff] }
 0x25f   : >> { %v615_v62 = vmul.f32 1.442695, %v601_v50  ;;  %v4686_v34 = vmul.f32 %v6067_v8, %v1015_v36  ;;  %v1044_v63 = vmul.f32 %v6068_v48, %v1015_v36  ;;  %v1246_v12 = vsub.f32 %v6045_v24, %v6070_v2  ;;  %v6073_v48 = vld [vmem:[#allocation89_spill] sm:$0xff] }
 0x260   : >> { %6069 = vst [vmem:[#allocation49_spill] sm:$0xff] %v4689_v42  ;;  %v2019_v15 = vmin.f32 %v2011_v6, 0.999  ;;  %v1477_v10 = vsub.f32 %v6045_v24, %v6071_v40  ;;  %v1845_v47 = vadd.f32 %v1837_v56, %v1614_v43  ;;  %v832_v50 = vsub.f32 0.0, %v4683_v49  ;;  %v6075_v40 = vld [vmem:[#allocation71_spill] sm:$0xff]  ;;  %v6076_v56 = vld [vmem:[#allocation98_spill] sm:$0xff] }
 0x261   : >> { %2650 = vpow2.f32 %v615_v62  ;;  %v1030_v20 = vadd.f32 %v4686_v34, %v6072_v58  ;;  %v4698_v8 = vmul.f32 %v1044_v63, %v1015_v36  ;;  %v4701_v46 = vmul.f32 %v6073_v48, %v1246_v12  ;;  %v6080_v36 = vld [vmem:[#allocation88_spill] sm:$0xff] }
 0x262   : >> { %vm2035_vm14 = vcmp.ge.f32.partialorder %v2019_v15, 0.003921569  ;;  %v1275_v6 = vmul.f32 %v6074_v31, %v1246_v12  ;;  %v846_v2 = vmul.f32 1.442695, %v832_v50  ;;  %v4708_v62 = vmul.f32 %v6076_v56, %v1477_v10  ;;  %v6083_v50 = vld [vmem:[#allocation97_spill] sm:$0xff] }
 0x263   : >> { %vm2043_vm15 = vmand %vm2027_vm13, %vm2035_vm14  ;;  %v1038_v43 = vmul.f32 %v1030_v20, %v6075_v40  ;;  %v1506_v27 = vmul.f32 %v6078_v17, %v1477_v10  ;;  %v1261_v63 = vadd.f32 %v4701_v46, %v6080_v36  ;;  %v1708_v31 = vsub.f32 %v6045_v24, %v6081_v57  ;;  %v6084_v40 = vld [vmem:[#allocation84_spill] sm:$0xff]  ;;  %v6086_v57 = vld [vmem:[#allocation114_spill] sm:$0xff] }
 0x264   : >> { %6077 = vst [vmem:[#allocation42_spill] sm:$0xff] %v4708_v62  ;;  %v4711_v58 = vsel %vm2043_vm15, %v2019_v15, 0.0  ;;  %v4715_v48 = vmul.f32 %v1275_v6, %v1246_v12  ;;  %2652 = vpow2.f32 %v846_v2  ;;  %v1492_v17 = vadd.f32 %v4708_v62, %v6083_v50  ;;  %v6085_v12 = vld [vmem:[#allocation111_spill] sm:$0xff] }
 0x265   : >> { %6079 = vst [vmem:[#allocation52_spill] sm:$0xff] %v4711_v58  ;;  %v4721_v5 = vmul.f32 %v4711_v58, %v4689_v42  ;;  %v4724_v20 = vadd.f32 %v4698_v8, %v1038_v43  ;;  %v1269_v56 = vmul.f32 %v1261_v63, %v6084_v40  ;;  %v4729_v36 = vmul.f32 %v1506_v27, %v1477_v10  ;;  %v6087_v63 = vld [vmem:[#allocation95_spill] sm:$0xff]  ;;  %v6088_v10 = vld [vmem:[#allocation112_spill] sm:$0xff] }
 0x266   : >> { %v2649_v15 = vpop.eup %2648  ;;  %v4732_v6 = vmul.f32 %v6085_v12, %v1708_v31  ;;  %v1737_v45 = vmul.f32 %v6086_v57, %v1708_v31  ;;  %v1500_v27 = vmul.f32 %v1492_v17, %v6087_v63  ;;  %v6091_v17 = vld [vmem:[#allocation121_spill] sm:$0xff]  ;;  %vm642_vm3 = vcmp.ge.f32.partialorder %v4665_v16, 0.0 }
 0x267   : >> { %6082 = vst [vmem:[#allocation54_spill] sm:$0xff] %v4721_v5  ;;  %v2068_v42 = vmul.f32 %v6042_v14, %v4721_v5  ;;  %v395_v2 = vmul.f32 %v2649_v15, %v5933_v18  ;;  %v1063_v43 = vsub.f32 0.0, %v4724_v20  ;;  %v4741_v50 = vadd.f32 %v4715_v48, %v1269_v56  ;;  %v6089_v5 = vld [vmem:[#allocation119_spill] sm:$0xff]  ;;  %v6090_v56 = vld [vmem:[#allocation108_spill] sm:$0xff] }
 0x268   : >> { %v1723_v40 = vadd.f32 %v4732_v6, %v6088_v10  ;;  %v4746_v12 = vmul.f32 %v1737_v45, %v1708_v31  ;;  %v1939_v15 = vsub.f32 %v6045_v24, %v6089_v5  ;;  %v4752_v25 = vadd.f32 %v4729_v36, %v1500_v27 }
 0x269   : >> { %v2076_v57 = vadd.f32 %v2068_v42, %v1845_v47  ;;  %v403_v58 = vmin.f32 %v395_v2, 0.999  ;;  %v1077_v53 = vmul.f32 1.442695, %v1063_v43  ;;  %v1294_v14 = vsub.f32 0.0, %v4741_v50  ;;  %v6092_v47 = vld [vmem:[#allocation122_spill] sm:$0xff] }
 0x26a   : >> { %v1731_v18 = vmul.f32 %v1723_v40, %v6090_v56  ;;  %v4756_v45 = vmul.f32 %v6091_v17, %v1939_v15  ;;  %v1968_v42 = vmul.f32 %v6092_v47, %v1939_v15  ;;  %v1525_v2 = vsub.f32 0.0, %v4752_v25  ;;  %v6094_v40 = vld [vmem:[#allocation39_spill] sm:$0xff]  ;;  %v262_v17 = vld [vmem:[#allocation2 + $0x30] sm:$0xff] }
 0x26b   : >> { %v2651_v62 = vpop.eup %2650  ;;  %2134 = vst [vmem:[#allocation2 + $0x28] sm:$0xff] %v2076_v57  ;;  %vm419_vm1 = vcmp.ge.f32.partialorder %v403_v58, 0.003921569  ;;  %2654 = vpow2.f32 %v1077_v53  ;;  %v1308_v5 = vmul.f32 1.442695, %v1294_v14  ;;  %v6093_v53 = vld [vmem:[#allocation120_spill] sm:$0xff] }
 0x26c   : >> { %vm427_vm2 = vmand %vm411_vm0, %vm419_vm1  ;;  %v626_v31 = vmul.f32 %v2651_v62, %v5976_v26  ;;  %v4765_v63 = vadd.f32 %v4746_v12, %v1731_v18  ;;  %v1954_v27 = vadd.f32 %v4756_v45, %v6093_v53  ;;  %v4769_v10 = vmul.f32 %v1968_v42, %v1939_v15 }
 0x26d   : >> { %v435_v43 = vsel %vm427_vm2, %v403_v58, 0.0  ;;  %2656 = vpow2.f32 %v1308_v5  ;;  %vm873_vm4 = vcmp.ge.f32.partialorder %v4683_v49, 0.0  ;;  %v1539_v14 = vmul.f32 1.442695, %v1525_v2  ;;  %v6096_v2 = vld [vmem:[#allocation46_spill] sm:$0xff] }
 0x26e   : >> { %v4772_v57 = vmul.f32 %v435_v43, %v6094_v40  ;;  %v502_v35 = vsub.f32 1.0, %v435_v43  ;;  %v634_v56 = vmin.f32 %v626_v31, 0.999  ;;  %v2653_v62 = vpop.eup %2652  ;;  %v1756_v58 = vsub.f32 0.0, %v4765_v63 }
 0x26f   : >> { %v1962_v18 = vmul.f32 %v1954_v27, %v6029_v37  ;;  %v857_v42 = vmul.f32 %v2653_v62, %v5939_v0  ;;  %vm1104_vm6 = vcmp.ge.f32.partialorder %v4724_v20, 0.0  ;;  %2658 = vpow2.f32 %v1539_v14 }
 0x270   : >> { %6095 = vst [vmem:[#allocation59_spill] sm:$0xff] %v4772_v57  ;;  %v452_v47 = vmul.f32 %v5973_v32, %v4772_v57  ;;  %v510_v15 = vmul.f32 %v502_v35, %v6094_v40  ;;  %vm650_vm5 = vcmp.ge.f32.partialorder %v634_v56, 0.003921569  ;;  %v1770_v31 = vmul.f32 1.442695, %v1756_v58 }
 0x271   : >> { %vm658_vm7 = vmand %vm642_vm3, %vm650_vm5  ;;  %v4785_v5 = vadd.f32 %v4769_v10, %v1962_v18  ;;  %v338_v37 = vadd.f32 %v4614_v59, %v6096_v2  ;;  %v865_v27 = vmin.f32 %v857_v42, 0.999  ;;  %v569_v40 = vadd.f32 %v4634_v1, %v6026_v19 }
 0x272   : >> { %v460_v43 = vadd.f32 %v452_v47, %v262_v17  ;;  %v666_v53 = vsel %vm658_vm7, %v634_v56, 0.0  ;;  %2660 = vpow2.f32 %v1770_v31  ;;  %vm1335_vm9 = vcmp.ge.f32.partialorder %v4741_v50, 0.0 }
 0x273   : >> { %v4791_v35 = vmul.f32 %v666_v53, %v510_v15  ;;  %v733_v62 = vsub.f32 1.0, %v666_v53  ;;  %v1987_v16 = vsub.f32 0.0, %v4785_v5  ;;  %vm881_vm8 = vcmp.ge.f32.partialorder %v865_v27, 0.003921569 }
 0x274   : >> { %v346_v14 = vmul.f32 %v338_v37, %v6027_v9  ;;  %v577_v58 = vmul.f32 %v569_v40, %v6030_v4  ;;  %vm889_vm10 = vmand %vm873_vm4, %vm881_vm8  ;;  %v800_v1 = vadd.f32 %v4652_v55, %v6028_v3  ;;  %vm1566_vm11 = vcmp.ge.f32.partialorder %v4752_v25, 0.0 }
 0x275   : >> { %6097 = vst [vmem:[#allocation51_spill] sm:$0xff] %v4791_v35  ;;  %v2655_v59 = vpop.eup %2654  ;;  %v683_v56 = vmul.f32 %v6046_v13, %v4791_v35  ;;  %v741_v17 = vmul.f32 %v733_v62, %v510_v15  ;;  %v2001_v19 = vmul.f32 1.442695, %v1987_v16  ;;  %v897_v18 = vsel %vm889_vm10, %v865_v27, 0.0 }
 0x276   : >> { %v1088_v47 = vmul.f32 %v2655_v59, %v5945_v33  ;;  %v4805_v42 = vadd.f32 %v4631_v29, %v346_v14  ;;  %v4808_v9 = vadd.f32 %v4649_v44, %v577_v58  ;;  %v964_v15 = vsub.f32 1.0, %v897_v18 }
 0x277   : >> { %v691_v4 = vadd.f32 %v683_v56, %v460_v43  ;;  %v4810_v31 = vmul.f32 %v897_v18, %v741_v17  ;;  %2662 = vpow2.f32 %v2001_v19  ;;  %v2657_v49 = vpop.eup %2656  ;;  %vm1797_vm12 = vcmp.ge.f32.partialorder %v4765_v63, 0.0 }
 0x278   : >> { %v1096_v2 = vmin.f32 %v1088_v47, 0.999  ;;  %v371_v3 = vsub.f32 0.0, %v4805_v42  ;;  %v602_v55 = vsub.f32 0.0, %v4808_v9  ;;  %v972_v37 = vmul.f32 %v964_v15, %v741_v17 }
 0x279   : >> { %v914_v29 = vmul.f32 %v5951_v51, %v4810_v31  ;;  %v1319_v44 = vmul.f32 %v2657_v49, %v5949_v41  ;;  %v808_v27 = vmul.f32 %v800_v1, %v5967_v30  ;;  %v2659_v40 = vpop.eup %2658  ;;  %v1031_v14 = vadd.f32 %v4686_v34, %v5964_v61 }
 0x27a   : >> { %vm1112_vm13 = vcmp.ge.f32.partialorder %v1096_v2, 0.003921569  ;;  %v386_v43 = vmul.f32 1.442695, %v371_v3  ;;  %v617_v53 = vmul.f32 1.442695, %v602_v55  ;;  %v1262_v58 = vadd.f32 %v4701_v46, %v5965_v28 }
 0x27b   : >> { %v922_v62 = vadd.f32 %v914_v29, %v691_v4  ;;  %vm1120_vm14 = vmand %vm1104_vm6, %vm1112_vm13  ;;  %v1327_v16 = vmin.f32 %v1319_v44, 0.999  ;;  %v1550_v56 = vmul.f32 %v2659_v40, %v5956_v38  ;;  %v4828_v17 = vadd.f32 %v4674_v21, %v808_v27 }
 0x27c   : >> { %v1128_v59 = vsel %vm1120_vm14, %v1096_v2, 0.0  ;;  %2664 = vpow2.f32 %v386_v43  ;;  %v2661_v30 = vpop.eup %2660  ;;  %vm2028_vm1 = vcmp.ge.f32.partialorder %v4785_v5, 0.0  ;;  %v1039_v18 = vmul.f32 %v1031_v14, %v5968_v22 }
 0x27d   : >> { %v4830_v19 = vmul.f32 %v1128_v59, %v972_v37  ;;  %v1195_v20 = vsub.f32 1.0, %v1128_v59  ;;  %vm1343_vm15 = vcmp.ge.f32.partialorder %v1327_v16, 0.003921569  ;;  %2666 = vpow2.f32 %v617_v53  ;;  %v6098_v59 = vld [vmem:[#allocation42_spill] sm:$0xff] }
 0x27e   : >> { %vm1351_vm0 = vmand %vm1335_vm9, %vm1343_vm15  ;;  %v1558_v61 = vmin.f32 %v1550_v56, 0.999  ;;  %v1781_v28 = vmul.f32 %v2661_v30, %v3963_v52  ;;  %v833_v34 = vsub.f32 0.0, %v4828_v17  ;;  %v1270_v4 = vmul.f32 %v1262_v58, %v5969_v23 }
 0x27f   : >> { %v1145_v21 = vmul.f32 %v5992_v7, %v4830_v19  ;;  %v1203_v46 = vmul.f32 %v1195_v20, %v972_v37  ;;  %v1359_v1 = vsel %vm1351_vm0, %v1327_v16, 0.0  ;;  %v4847_v55 = vadd.f32 %v4698_v8, %v1039_v18 }
 0x280   : >> { %v1426_v47 = vsub.f32 1.0, %v1359_v1  ;;  %vm1574_vm2 = vcmp.ge.f32.partialorder %v1558_v61, 0.003921569  ;;  %v1789_v50 = vmin.f32 %v1781_v28, 0.999  ;;  %vm412_vm6 = vcmp.ge.f32.partialorder %v4805_v42, 0.0 }
 0x281   : >> { %v2663_v15 = vpop.eup %2662  ;;  %v1153_v49 = vadd.f32 %v1145_v21, %v922_v62  ;;  %v4842_v2 = vmul.f32 %v1359_v1, %v1203_v46  ;;  %vm1582_vm3 = vmand %vm1566_vm11, %vm1574_vm2  ;;  %v848_v3 = vmul.f32 1.442695, %v833_v34  ;;  %v1064_v25 = vsub.f32 0.0, %v4847_v55  ;;  %v6100_v28 = vld [vmem:[#allocation55_spill] sm:$0xff]  ;;  %v6102_v1 = vld [vmem:[#allocation126_spill] sm:$0xff] }
 0x282   : >> { %v1434_v29 = vmul.f32 %v1426_v47, %v1203_v46  ;;  %v1590_v22 = vsel %vm1582_vm3, %v1558_v61, 0.0  ;;  %vm1805_vm4 = vcmp.ge.f32.partialorder %v1789_v50, 0.003921569  ;;  %v2012_v37 = vmul.f32 %v2663_v15, %v3974_v39  ;;  %v6103_v15 = vld [vmem:[#allocation101_spill] sm:$0xff] }
 0x283   : >> { %v1376_v23 = vmul.f32 %v3713_v60, %v4842_v2  ;;  %v1657_v44 = vsub.f32 1.0, %v1590_v22  ;;  %vm1813_vm5 = vmand %vm1797_vm12, %vm1805_vm4  ;;  %2668 = vpow2.f32 %v848_v3  ;;  %v1079_v16 = vmul.f32 1.442695, %v1064_v25  ;;  %v6107_v25 = vld [vmem:[#allocation110_spill] sm:$0xff] }
 0x284   : >> { %v4856_v43 = vmul.f32 %v1590_v22, %v1434_v29  ;;  %v1821_v8 = vsel %vm1813_vm5, %v1789_v50, 0.0  ;;  %v2020_v53 = vmin.f32 %v2012_v37, 0.999  ;;  %v4864_v58 = vadd.f32 %v4715_v48, %v1270_v4  ;;  %v6105_v22 = vld [vmem:[#allocation128_spill] sm:$0xff] }
 0x285   : >> { %v1384_v27 = vadd.f32 %v1376_v23, %v1153_v49  ;;  %v1665_v40 = vmul.f32 %v1657_v44, %v1434_v29  ;;  %v1888_v62 = vsub.f32 1.0, %v1821_v8  ;;  %v1493_v56 = vadd.f32 %v6098_v59, %v6032_v54  ;;  %v6104_v49 = vld [vmem:[#allocation113_spill] sm:$0xff]  ;;  %v6106_v23 = vld [vmem:[#allocation127_spill] sm:$0xff] }
 0x286   : >> { %v2665_v14 = vpop.eup %2664  ;;  %v1607_v63 = vmul.f32 %v3760_v11, %v4856_v43  ;;  %vm2036_vm7 = vcmp.ge.f32.partialorder %v2020_v53, 0.003921569  ;;  %2670 = vpow2.f32 %v1079_v16  ;;  %v1295_v54 = vsub.f32 0.0, %v4864_v58 }
 0x287   : >> { %v2667_v30 = vpop.eup %2666  ;;  %v4869_v20 = vmul.f32 %v1821_v8, %v1665_v40  ;;  %v4871_v61 = vmul.f32 %v1888_v62, %v1665_v40  ;;  %vm2044_vm8 = vmand %vm2028_vm1, %vm2036_vm7  ;;  %v396_v34 = vmul.f32 %v2665_v14, %v6100_v28  ;;  %vm643_vm9 = vcmp.ge.f32.partialorder %v4808_v9, 0.0  ;;  %v263_v9 = vld [vmem:[#allocation2 + $0x38] sm:$0xff] }
 0x288   : >> { %v1615_v21 = vadd.f32 %v1607_v63, %v1384_v27  ;;  %v4876_v48 = vsel %vm2044_vm8, %v2020_v53, 0.0  ;;  %v627_v46 = vmul.f32 %v2667_v30, %v5976_v26  ;;  %v1310_v4 = vmul.f32 1.442695, %v1295_v54 }
 0x289   : >> { %6099 = vst [vmem:[#allocation63_spill] sm:$0xff] %v4871_v61  ;;  %6101 = vst [vmem:[#allocation48_spill] sm:$0xff] %v4876_v48  ;;  %v1838_v18 = vmul.f32 %v6102_v1, %v4869_v20  ;;  %v4885_v5 = vmul.f32 %v4876_v48, %v4871_v61  ;;  %v404_v47 = vmin.f32 %v396_v34, 0.999  ;;  %v1501_v26 = vmul.f32 %v1493_v56, %v6103_v15  ;;  %v6121_v48 = vld [vmem:[#allocation115_spill] sm:$0xff] }
 0x28a   : >> { %v635_v50 = vmin.f32 %v627_v46, 0.999  ;;  %v1724_v3 = vadd.f32 %v4732_v6, %v6104_v49  ;;  %v1955_v44 = vadd.f32 %v4756_v45, %v6106_v23  ;;  %2672 = vpow2.f32 %v1310_v4  ;;  %v6108_v45 = vld [vmem:[#allocation125_spill] sm:$0xff] }
 0x28b   : >> { %v1846_v29 = vadd.f32 %v1838_v18, %v1615_v21  ;;  %v2069_v37 = vmul.f32 %v6105_v22, %v4885_v5  ;;  %vm420_vm10 = vcmp.ge.f32.partialorder %v404_v47, 0.003921569  ;;  %v4901_v6 = vadd.f32 %v4729_v36, %v1501_v26  ;;  %v6109_v36 = vld [vmem:[#allocation40_spill] sm:$0xff] }
 0x28c   : >> { %vm428_vm11 = vmand %vm412_vm6, %vm420_vm10  ;;  %vm651_vm12 = vcmp.ge.f32.partialorder %v635_v50, 0.003921569  ;;  %v1732_v8 = vmul.f32 %v1724_v3, %v6107_v25  ;;  %v1963_v42 = vmul.f32 %v1955_v44, %v6108_v45  ;;  %v4911_v62 = vstv %s4859_s28  ;;  %s1233_s28 = sadd.s32 %s3334_s2, %s1232_s3  ;;  %s1926_s3 = sadd.s32 %s3795_s26, %s1925_s6 }
 0x28d   : >> { %v2669_v53 = vpop.eup %2668  ;;  %v2077_v27 = vadd.f32 %v2069_v37, %v1846_v29  ;;  %v436_v40 = vsel %vm428_vm11, %v404_v47, 0.0  ;;  %vm659_vm13 = vmand %vm643_vm9, %vm651_vm12  ;;  %vm874_vm14 = vcmp.ge.f32.partialorder %v4828_v17, 0.0  ;;  %v1526_v30 = vsub.f32 0.0, %v4901_v6  ;;  %v264_v47 = vld [vmem:[#allocation3] sm:$0xff]  ;;  %s4945_s29 = sld [smem:[#allocation9 + %s1233_s28]]  ;;  %s2449_s28 = sadd.s32 2048, %s3113_s20 }
 0x28e   : >> { %v4916_v16 = vmul.f32 %v436_v40, %v6109_v36  ;;  %v503_v14 = vsub.f32 1.0, %v436_v40  ;;  %v667_v63 = vsel %vm659_vm13, %v635_v50, 0.0  ;;  %v858_v59 = vmul.f32 %v2669_v53, %v5939_v0  ;;  %v6110_v50 = vld [vmem:[#allocation74_spill] sm:$0xff]  ;;  %s4961_s17 = sld [smem:[#allocation9 + %s1926_s3]]  ;;  %s2453_s20 = sadd.s32 2048, %s3334_s2 }
 0x28f   : >> { %2135 = vst [vmem:[#allocation2 + $0x30] sm:$0xff] %v2077_v27  ;;  %v734_v56 = vsub.f32 1.0, %v667_v63  ;;  %v4925_v28 = vadd.f32 %v4746_v12, %v1732_v8  ;;  %v4933_v46 = vadd.f32 %v4769_v10, %v1963_v42  ;;  %vm1105_vm15 = vcmp.ge.f32.partialorder %v4847_v55, 0.0  ;;  %s775_s6 = sadd.s32 %s2449_s28, %s3122_s16  ;;  %s1237_s16 = sadd.s32 %s2453_s20, %s3361_s10 }
 0x290   : >> { %v453_v0 = vmul.f32 %v5973_v32, %v4916_v16  ;;  %v511_v34 = vmul.f32 %v503_v14, %v6109_v36  ;;  %v866_v21 = vmin.f32 %v858_v59, 0.999  ;;  %v2671_v54 = vpop.eup %2670  ;;  %v1541_v12 = vmul.f32 1.442695, %v1526_v30  ;;  %v6111_v36 = vld [vmem:[#allocation87_spill] sm:$0xff] }
 0x291   : >> { %v1757_v18 = vsub.f32 0.0, %v4925_v28  ;;  %v463_v32 = vmul.f32 %v4911_v62, %v6110_v50  ;;  %v1089_v10 = vmul.f32 %v2671_v54, %v5945_v33  ;;  %v1988_v3 = vsub.f32 0.0, %v4933_v46 }
 0x292   : >> { %v461_v4 = vadd.f32 %v453_v0, %v263_v9  ;;  %v4943_v15 = vmul.f32 %v667_v63, %v511_v34  ;;  %v742_v26 = vmul.f32 %v734_v56, %v511_v34  ;;  %vm882_vm0 = vcmp.ge.f32.partialorder %v866_v21, 0.003921569  ;;  %v6112_v63 = vld [vmem:[#allocation99_spill] sm:$0xff] }
 0x293   : >> { %vm890_vm1 = vmand %vm874_vm14, %vm882_vm0  ;;  %2674 = vpow2.f32 %v1541_v12  ;;  %v1772_v49 = vmul.f32 1.442695, %v1757_v18  ;;  %vm1336_vm2 = vcmp.ge.f32.partialorder %v4864_v58, 0.0  ;;  %v471_v23 = vadd.f32 %v463_v32, %v264_v47  ;;  %v6114_v12 = vld [vmem:[#allocation117_spill] sm:$0xff] }
 0x294   : >> { %v684_v29 = vmul.f32 %v6046_v13, %v4943_v15  ;;  %v898_v37 = vsel %vm890_vm1, %v866_v21, 0.0  ;;  %v1097_v44 = vmin.f32 %v1089_v10, 0.999  ;;  %v2673_v25 = vpop.eup %2672  ;;  %v2003_v53 = vmul.f32 1.442695, %v1988_v3  ;;  %v6113_v21 = vld [vmem:[#allocation106_spill] sm:$0xff] }
 0x295   : >> { %v4959_v17 = vmul.f32 %v898_v37, %v742_v26  ;;  %v965_v33 = vsub.f32 1.0, %v898_v37  ;;  %2676 = vpow2.f32 %v1772_v49  ;;  %v4964_v27 = vstv %s4904_s30  ;;  %v265_v49 = vld [vmem:[#allocation3 + $0x8] sm:$0xff]  ;;  %v6115_v37 = vld [vmem:[#allocation124_spill] sm:$0xff]  ;;  %s2445_s30 = sadd.s32 2048, %s3002_s14 }
 0x296   : >> { %v692_v8 = vadd.f32 %v684_v29, %v461_v4  ;;  %v4967_v13 = vstv %s4919_s27  ;;  %vm1113_vm3 = vcmp.ge.f32.partialorder %v1097_v44, 0.003921569  ;;  %v1320_v42 = vmul.f32 %v2673_v25, %v5949_v41  ;;  %s2447_s27 = sadd.s32 2048, %s3034_s25  ;;  %s313_s14 = sadd.s32 %s2445_s30, %s3000_s13 }
 0x297   : >> { %v915_v40 = vmul.f32 %v5951_v51, %v4959_v17  ;;  %v973_v45 = vmul.f32 %v965_v33, %v742_v26  ;;  %vm1121_vm4 = vmand %vm1105_vm15, %vm1113_vm3  ;;  %2678 = vpow2.f32 %v2003_v53  ;;  %v694_v14 = vmul.f32 %v4964_v27, %v6111_v36  ;;  %s544_s25 = sadd.s32 %s2447_s27, %s3042_s8  ;;  %s2451_s13 = sadd.s32 2048, %s3204_s9 }
 0x298   : >> { %v925_v59 = vmul.f32 %v4967_v13, %v6112_v63  ;;  %v4979_v9 = vstv %s4935_s21  ;;  %v1129_v51 = vsel %vm1121_vm4, %v1097_v44, 0.0  ;;  %v1328_v30 = vmin.f32 %v1320_v42, 0.999  ;;  %v6116_v44 = vld [vmem:[#allocation78_spill] sm:$0xff]  ;;  %s5115_s8 = sld [smem:[#allocation9 + %s313_s14]]  ;;  %s1006_s2 = sadd.s32 %s2451_s13, %s3218_s1 }
 0x299   : >> { %v923_v56 = vadd.f32 %v915_v40, %v692_v8  ;;  %vm1567_vm5 = vcmp.ge.f32.partialorder %v4901_v6, 0.0  ;;  %v4982_v41 = vmul.f32 %v1129_v51, %v973_v45  ;;  %v1196_v55 = vsub.f32 1.0, %v1129_v51  ;;  %v6117_v42 = vld [vmem:[#allocation130_spill] sm:$0xff]  ;;  %v6118_v51 = vld [vmem:[#allocation91_spill] sm:$0xff]  ;;  %v266_v6 = vld [vmem:[#allocation3 + $0x10] sm:$0xff]  ;;  %s5126_s9 = sld [smem:[#allocation9 + %s544_s25]] }
 0x29a   : >> { %vm1798_vm6 = vcmp.ge.f32.partialorder %v4925_v28, 0.0  ;;  %v702_v0 = vadd.f32 %v694_v14, %v471_v23  ;;  %v4986_v34 = vstv %s4945_s29  ;;  %vm1344_vm7 = vcmp.ge.f32.partialorder %v1328_v30, 0.003921569  ;;  %s2455_s21 = sadd.s32 2048, %s3484_s23  ;;  %s5145_s1 = sld [smem:[#allocation9 + %s775_s6]] }
 0x29b   : >> { %v1156_v54 = vmul.f32 %v4979_v9, %v6113_v21  ;;  %v1387_v18 = vmul.f32 %v4986_v34, %v6114_v12  ;;  %v4993_v47 = vstv %s4952_s24  ;;  %v1146_v32 = vmul.f32 %v5992_v7, %v4982_v41  ;;  %vm1352_vm8 = vmand %vm1336_vm2, %vm1344_vm7  ;;  %s2459_s23 = sadd.s32 2048, %s3795_s26  ;;  %s5152_s10 = sld [smem:[#allocation9 + %s1006_s2]] }
 0x29c   : >> { %v1204_v4 = vmul.f32 %v1196_v55, %v973_v45  ;;  %v933_v26 = vadd.f32 %v925_v59, %v702_v0  ;;  %v5000_v10 = vstv %s4957_s7  ;;  %v1360_v29 = vsel %vm1352_vm8, %v1328_v30, 0.0  ;;  %s1468_s22 = sadd.s32 %s2455_s21, %s3493_s0  ;;  %s5159_s26 = sld [smem:[#allocation9 + %s1237_s16]] }
 0x29d   : >> { %v2675_v3 = vpop.eup %2674  ;;  %vm2029_vm9 = vcmp.ge.f32.partialorder %v4933_v46, 0.0  ;;  %v1618_v23 = vmul.f32 %v4993_v47, %v6115_v37  ;;  %v5006_v33 = vstv %s4961_s17  ;;  %v464_v7 = vmul.f32 %v4911_v62, %v6116_v44  ;;  %s1930_s0 = sadd.s32 %s2459_s23, %s3808_s4  ;;  %s5172_s29 = sld [smem:[#allocation9 + %s1468_s22]] }
 0x29e   : >> { %v1154_v25 = vadd.f32 %v1146_v32, %v923_v56  ;;  %v5010_v8 = vmul.f32 %v1360_v29, %v1204_v4  ;;  %v1427_v58 = vsub.f32 1.0, %v1360_v29  ;;  %v1551_v53 = vmul.f32 %v2675_v3, %v5956_v38  ;;  %v6119_v32 = vld [vmem:[#allocation80_spill] sm:$0xff]  ;;  %s5184_s4 = sld [smem:[#allocation9 + %s1930_s0]] }
 0x29f   : >> { %v2677_v40 = vpop.eup %2676  ;;  %v1164_v45 = vadd.f32 %v1156_v54, %v933_v26  ;;  %v1849_v14 = vmul.f32 %v5000_v10, %v6117_v42  ;;  %v472_v59 = vadd.f32 %v464_v7, %v265_v49  ;;  %v695_v30 = vmul.f32 %v4964_v27, %v6118_v51  ;;  %v6120_v54 = vld [vmem:[#allocation109_spill] sm:$0xff] }
 0x2a0   : >> { %v1377_v55 = vmul.f32 %v3713_v60, %v5010_v8  ;;  %v1559_v0 = vmin.f32 %v1551_v53, 0.999  ;;  %v1782_v56 = vmul.f32 %v2677_v40, %v3963_v52  ;;  %v2080_v29 = vmul.f32 %v5006_v33, %v6119_v32  ;;  %v6123_v40 = vld [vmem:[#allocation129_spill] sm:$0xff] }
 0x2a1   : >> { %v1435_v24 = vmul.f32 %v1427_v58, %v1204_v4  ;;  %v1395_v38 = vadd.f32 %v1387_v18, %v1164_v45  ;;  %v703_v3 = vadd.f32 %v695_v30, %v472_v59  ;;  %v926_v26 = vmul.f32 %v4967_v13, %v6120_v54  ;;  %v2679_v61 = vpop.eup %2678  ;;  %v6122_v4 = vld [vmem:[#allocation123_spill] sm:$0xff]  ;;  %v6124_v45 = vld [vmem:[#allocation132_spill] sm:$0xff] }
 0x2a2   : >> { %v1385_v49 = vadd.f32 %v1377_v55, %v1154_v25  ;;  %vm1575_vm10 = vcmp.ge.f32.partialorder %v1559_v0, 0.003921569  ;;  %v1790_v7 = vmin.f32 %v1782_v56, 0.999  ;;  %v1157_v42 = vmul.f32 %v4979_v9, %v6121_v48 }
 0x2a3   : >> { %vm1583_vm11 = vmand %vm1567_vm5, %vm1575_vm10  ;;  %v2013_v60 = vmul.f32 %v2679_v61, %v3974_v39  ;;  %v1626_v52 = vadd.f32 %v1618_v23, %v1395_v38  ;;  %v934_v53 = vadd.f32 %v926_v26, %v703_v3  ;;  %v1388_v18 = vmul.f32 %v4986_v34, %v6122_v4  ;;  %v6125_v38 = vld [vmem:[#allocation102_spill] sm:$0xff]  ;;  %v6126_v3 = vld [vmem:[#allocation116_spill] sm:$0xff] }
 0x2a4   : >> { %v1591_v58 = vsel %vm1583_vm11, %v1559_v0, 0.0  ;;  %vm1806_vm12 = vcmp.ge.f32.partialorder %v1790_v7, 0.003921569  ;;  %v1619_v25 = vmul.f32 %v4993_v47, %v6123_v40  ;;  %v1850_v59 = vmul.f32 %v5000_v10, %v6124_v45 }
 0x2a5   : >> { %v5035_v30 = vmul.f32 %v1591_v58, %v1435_v24  ;;  %v1658_v55 = vsub.f32 1.0, %v1591_v58  ;;  %vm1814_vm13 = vmand %vm1798_vm6, %vm1806_vm12  ;;  %v2021_v39 = vmin.f32 %v2013_v60, 0.999  ;;  %v1857_v61 = vadd.f32 %v1849_v14, %v1626_v52 }
 0x2a6   : >> { %v1822_v23 = vsel %vm1814_vm13, %v1790_v7, 0.0  ;;  %v1165_v56 = vadd.f32 %v1157_v42, %v934_v53  ;;  %v465_v0 = vmul.f32 %v4911_v62, %v6125_v38  ;;  %v696_v26 = vmul.f32 %v4964_v27, %v6126_v3  ;;  %v6127_v7 = vld [vmem:[#allocation57_spill] sm:$0xff]  ;;  %v6131_v38 = vld [vmem:[#allocation86_spill] sm:$0xff] }
 0x2a7   : >> { %v1608_v45 = vmul.f32 %v3760_v11, %v5035_v30  ;;  %v1666_v40 = vmul.f32 %v1658_v55, %v1435_v24  ;;  %v1889_v4 = vsub.f32 1.0, %v1822_v23  ;;  %vm2037_vm14 = vcmp.ge.f32.partialorder %v2021_v39, 0.003921569  ;;  %v6130_v24 = vld [vmem:[#allocation73_spill] sm:$0xff] }
 0x2a8   : >> { %vm2045_vm15 = vmand %vm2029_vm9, %vm2037_vm14  ;;  %v2088_v28 = vadd.f32 %v2080_v29, %v1857_v61  ;;  %v1396_v14 = vadd.f32 %v1388_v18, %v1165_v56  ;;  %v473_v60 = vadd.f32 %v465_v0, %v266_v6  ;;  %v927_v42 = vmul.f32 %v4967_v13, %v6127_v7  ;;  %v6133_v61 = vld [vmem:[#allocation104_spill] sm:$0xff]  ;;  %v6134_v0 = vld [vmem:[#allocation66_spill] sm:$0xff] }
 0x2a9   : >> { %v1616_v52 = vadd.f32 %v1608_v45, %v1385_v49  ;;  %v5049_v53 = vmul.f32 %v1822_v23, %v1666_v40  ;;  %v5051_v58 = vmul.f32 %v1889_v4, %v1666_v40  ;;  %v5053_v3 = vsel %vm2045_vm15, %v2021_v39, 0.0  ;;  %v267_v4 = vld [vmem:[#allocation3 + $0x18] sm:$0xff]  ;;  %v6132_v39 = vld [vmem:[#allocation82_spill] sm:$0xff]  ;;  %v6156_v7 = vld [vmem:[#allocation44_spill] sm:$0xff] }
 0x2aa   : >> { %6129 = vst [vmem:[#allocation58_spill] sm:$0xff] %v5053_v3  ;;  %2137 = vst [vmem:[#allocation3] sm:$0xff] %v2088_v28  ;;  %v1627_v11 = vadd.f32 %v1619_v25, %v1396_v14  ;;  %v2081_v55 = vmul.f32 %v5006_v33, %v6130_v24  ;;  %v704_v46 = vadd.f32 %v696_v26, %v473_v60  ;;  %v6135_v26 = vld [vmem:[#allocation79_spill] sm:$0xff] }
 0x2ab   : >> { %6128 = vst [vmem:[#allocation62_spill] sm:$0xff] %v5051_v58  ;;  %v1158_v29 = vmul.f32 %v4979_v9, %v6131_v38  ;;  %v1839_v18 = vmul.f32 %v6102_v1, %v5049_v53  ;;  %v5063_v49 = vmul.f32 %v5053_v3, %v5051_v58  ;;  %v1389_v25 = vmul.f32 %v4986_v34, %v6132_v39  ;;  %v6137_v58 = vld [vmem:[#allocation105_spill] sm:$0xff]  ;;  %v6139_v3 = vld [vmem:[#allocation64_spill] sm:$0xff]  ;;  %v6149_v39 = vld [vmem:[#allocation103_spill] sm:$0xff] }
 0x2ac   : >> { %v1858_v40 = vadd.f32 %v1850_v59, %v1627_v11  ;;  %v935_v45 = vadd.f32 %v927_v42, %v704_v46  ;;  %v466_v6 = vmul.f32 %v4911_v62, %v6133_v61  ;;  %v1620_v1 = vmul.f32 %v4993_v47, %v6134_v0  ;;  %v6136_v42 = vld [vmem:[#allocation92_spill] sm:$0xff]  ;;  %v268_v61 = vld [vmem:[#allocation3 + $0x20] sm:$0xff] }
 0x2ad   : >> { %v1847_v23 = vadd.f32 %v1839_v18, %v1616_v52  ;;  %v2070_v56 = vmul.f32 %v6105_v22, %v5063_v49  ;;  %v697_v28 = vmul.f32 %v4964_v27, %v6135_v26  ;;  %v928_v11 = vmul.f32 %v4967_v13, %v6136_v42  ;;  %v6138_v18 = vld [vmem:[#allocation61_spill] sm:$0xff]  ;;  %v6143_v42 = vld [vmem:[#allocation134_spill] sm:$0xff]  ;;  %v6153_v38 = vld [vmem:[#allocation140_spill] sm:$0xff] }
 0x2ae   : >> { %v2089_v14 = vadd.f32 %v2081_v55, %v1858_v40  ;;  %v1166_v59 = vadd.f32 %v1158_v29, %v935_v45  ;;  %v474_v60 = vadd.f32 %v466_v6, %v267_v4  ;;  %v1851_v52 = vmul.f32 %v5000_v10, %v6137_v58  ;;  %v6140_v4 = vld [vmem:[#allocation68_spill] sm:$0xff]  ;;  %v6141_v45 = vld [vmem:[#allocation93_spill] sm:$0xff] }
 0x2af   : >> { %v2078_v46 = vadd.f32 %v2070_v56, %v1847_v23  ;;  %v2082_v22 = vmul.f32 %v5006_v33, %v6138_v18  ;;  %v1159_v0 = vmul.f32 %v4979_v9, %v6139_v3  ;;  %v1390_v40 = vmul.f32 %v4986_v34, %v6140_v4  ;;  %v6142_v23 = vld [vmem:[#allocation70_spill] sm:$0xff]  ;;  %v6144_v18 = vld [vmem:[#allocation137_spill] sm:$0xff]  ;;  %v6147_v58 = vld [vmem:[#allocation60_spill] sm:$0xff] }
 0x2b0   : >> { %2138 = vst [vmem:[#allocation3 + $0x8] sm:$0xff] %v2089_v14  ;;  %v1397_v55 = vadd.f32 %v1389_v25, %v1166_v59  ;;  %v705_v29 = vadd.f32 %v697_v28, %v474_v60  ;;  %v467_v6 = vmul.f32 %v4911_v62, %v6141_v45  ;;  %v1621_v56 = vmul.f32 %v4993_v47, %v6142_v23  ;;  %v6145_v25 = vld [vmem:[#allocation138_spill] sm:$0xff]  ;;  %v269_v23 = vld [vmem:[#allocation3 + $0x28] sm:$0xff]  ;;  %v6148_v26 = vld [vmem:[#allocation53_spill] sm:$0xff] }
 0x2b1   : >> { %2136 = vst [vmem:[#allocation2 + $0x38] sm:$0xff] %v2078_v46  ;;  %v1852_v3 = vmul.f32 %v5000_v10, %v6143_v42  ;;  %v5095_v14 = vmul.f32 %v5006_v33, %v6144_v18  ;;  %v698_v28 = vmul.f32 %v4964_v27, %v6145_v25  ;;  %v6146_v46 = vld [vmem:[#allocation139_spill] sm:$0xff]  ;;  %v1160_v42 = vmul.f32 %v4979_v9, %v6147_v58 }
 0x2b2   : >> { %v1628_v59 = vadd.f32 %v1620_v1, %v1397_v55  ;;  %v936_v60 = vadd.f32 %v928_v11, %v705_v29  ;;  %v475_v45 = vadd.f32 %v467_v6, %v268_v61  ;;  %v929_v4 = vmul.f32 %v4967_v13, %v6146_v46  ;;  %v6150_v1 = vld [vmem:[#allocation141_spill] sm:$0xff]  ;;  %v6151_v6 = vld [vmem:[#allocation43_spill] sm:$0xff] }
 0x2b3   : >> { %v1391_v18 = vmul.f32 %v4986_v34, %v6148_v26  ;;  %v468_v25 = vmul.f32 %v4911_v62, %v6149_v39  ;;  %v699_v11 = vmul.f32 %v4964_v27, %v6150_v1  ;;  %v1622_v46 = vmul.f32 %v4993_v47, %v6151_v6  ;;  %v6152_v58 = vld [vmem:[#allocation67_spill] sm:$0xff] }
 0x2b4   : >> { %v1859_v61 = vadd.f32 %v1851_v52, %v1628_v59  ;;  %v1167_v55 = vadd.f32 %v1159_v0, %v936_v60  ;;  %v706_v29 = vadd.f32 %v698_v28, %v475_v45  ;;  %v1853_v26 = vmul.f32 %v5000_v10, %v6152_v58  ;;  %v6154_v52 = vld [vmem:[#allocation41_spill] sm:$0xff]  ;;  %v270_v58 = vld [vmem:[#allocation3 + $0x30] sm:$0xff] }
 0x2b5   : >> { %v5122_v39 = vmul.f32 %v5006_v33, %v6153_v38  ;;  %v476_v1 = vadd.f32 %v468_v25, %v269_v23  ;;  %v930_v0 = vmul.f32 %v4967_v13, %v6154_v52  ;;  %v6155_v60 = vld [vmem:[#allocation69_spill] sm:$0xff]  ;;  %v1392_v23 = vmul.f32 %v4986_v34, %v6156_v7 }
 0x2b6   : >> { %v2090_v45 = vadd.f32 %v2082_v22, %v1859_v61  ;;  %v1398_v28 = vadd.f32 %v1390_v40, %v1167_v55  ;;  %v937_v59 = vadd.f32 %v929_v4, %v706_v29  ;;  %v1161_v6 = vmul.f32 %v4979_v9, %v6155_v60  ;;  %v6157_v61 = vld [vmem:[#allocation45_spill] sm:$0xff]  ;;  %v6158_v29 = vld [vmem:[#allocation47_spill] sm:$0xff] }
 0x2b7   : >> { %v707_v38 = vadd.f32 %v699_v11, %v476_v1  ;;  %v469_v25 = vmul.f32 %v4911_v62, %v4772_v57  ;;  %v700_v22 = vmul.f32 %v4964_v27, %v4791_v35  ;;  %v1623_v55 = vmul.f32 %v4993_v47, %v6157_v61  ;;  %v6159_v57 = vld [vmem:[#allocation54_spill] sm:$0xff] }
 0x2b8   : >> { %2139 = vst [vmem:[#allocation3 + $0x10] sm:$0xff] %v2090_v45  ;;  %v1629_v4 = vadd.f32 %v1621_v56, %v1398_v28  ;;  %v1168_v40 = vadd.f32 %v1160_v42, %v937_v59  ;;  %v1854_v1 = vmul.f32 %v5000_v10, %v6158_v29  ;;  %v2085_v7 = vmul.f32 %v5006_v33, %v6159_v57 }
 0x2b9   : >> { %v938_v11 = vadd.f32 %v930_v0, %v707_v38  ;;  %v477_v35 = vadd.f32 %v469_v25, %v270_v58  ;;  %v931_v56 = vmul.f32 %v4967_v13, %v4810_v31  ;;  %v1162_v28 = vmul.f32 %v4979_v9, %v4830_v19  ;;  %v271_v38 = vld [vmem:[#allocation3 + $0x38] sm:$0xff] }
 0x2ba   : >> { %v1860_v42 = vadd.f32 %v1852_v3, %v1629_v4  ;;  %v1399_v45 = vadd.f32 %v1391_v18, %v1168_v40  ;;  %v1393_v59 = vmul.f32 %v4986_v34, %v4842_v2  ;;  %v470_v25 = vmul.f32 %v4911_v62, %v4916_v16 }
 0x2bb   : >> { %v1169_v0 = vadd.f32 %v1161_v6, %v938_v11  ;;  %v708_v58 = vadd.f32 %v700_v22, %v477_v35  ;;  %v701_v57 = vmul.f32 %v4964_v27, %v4943_v15  ;;  %v1624_v4 = vmul.f32 %v4993_v47, %v4856_v43 }
 0x2bc   : >> { %v2091_v3 = vadd.f32 %v5095_v14, %v1860_v42  ;;  %v1630_v18 = vadd.f32 %v1622_v46, %v1399_v45  ;;  %v1855_v40 = vmul.f32 %v5000_v10, %v4869_v20  ;;  %v478_v22 = vadd.f32 %v470_v25, %v271_v38  ;;  %v272_v42 = vld [vmem:[#allocation4] sm:$0xff] }
 0x2bd   : >> { %v1400_v35 = vadd.f32 %v1392_v23, %v1169_v0  ;;  %v939_v6 = vadd.f32 %v931_v56, %v708_v58  ;;  %v932_v62 = vmul.f32 %v4967_v13, %v4959_v17  ;;  %v2086_v14 = vmul.f32 %v5006_v33, %v4885_v5 }
 0x2be   : >> { %2140 = vst [vmem:[#allocation3 + $0x18] sm:$0xff] %v2091_v3  ;;  %v1861_v27 = vadd.f32 %v1853_v26, %v1630_v18  ;;  %v1163_v46 = vmul.f32 %v4979_v9, %v4982_v41  ;;  %v1394_v23 = vmul.f32 %v4986_v34, %v5010_v8  ;;  %v709_v13 = vadd.f32 %v701_v57, %v478_v22 }
 0x2bf   : >> { %v1631_v11 = vadd.f32 %v1623_v55, %v1400_v35  ;;  %v1170_v56 = vadd.f32 %v1162_v28, %v939_v6  ;;  %v5187_v45 = vstv %s5115_s8  ;;  %v5193_v0 = vstv %s5126_s9 }
 0x2c0   : >> { %v2092_v26 = vadd.f32 %v5122_v39, %v1861_v27  ;;  %v480_v38 = vmul.f32 %v5187_v45, %v6110_v50  ;;  %v5196_v9 = vstv %s5145_s1  ;;  %v940_v55 = vadd.f32 %v932_v62, %v709_v13  ;;  %v273_v27 = vld [vmem:[#allocation4 + $0x8] sm:$0xff]  ;;  %v6160_v13 = vld [vmem:[#allocation130_spill] sm:$0xff] }
 0x2c1   : >> { %v1862_v34 = vadd.f32 %v1854_v1, %v1631_v11  ;;  %v1401_v58 = vadd.f32 %v1393_v59, %v1170_v56  ;;  %v711_v28 = vmul.f32 %v5193_v0, %v6111_v36  ;;  %v942_v39 = vmul.f32 %v5196_v9, %v6112_v63 }
 0x2c2   : >> { %2141 = vst [vmem:[#allocation3 + $0x20] sm:$0xff] %v2092_v26  ;;  %v488_v57 = vadd.f32 %v480_v38, %v272_v42  ;;  %v5203_v25 = vstv %s5152_s10  ;;  %v5206_v50 = vstv %s5159_s26  ;;  %v1171_v1 = vadd.f32 %v1163_v46, %v940_v55 }
 0x2c3   : >> { %v2093_v3 = vadd.f32 %v2085_v7, %v1862_v34  ;;  %v1632_v18 = vadd.f32 %v1624_v4, %v1401_v58  ;;  %v1625_v59 = vmul.f32 %v4993_v47, %v5035_v30  ;;  %v1856_v36 = vmul.f32 %v5000_v10, %v5049_v53 }
 0x2c4   : >> { %v719_v35 = vadd.f32 %v711_v28, %v488_v57  ;;  %v1173_v6 = vmul.f32 %v5203_v25, %v6113_v21  ;;  %v5215_v22 = vstv %s5172_s29  ;;  %v1402_v62 = vadd.f32 %v1394_v23, %v1171_v1  ;;  %v6162_v28 = vld [vmem:[#allocation102_spill] sm:$0xff] }
 0x2c5   : >> { %2142 = vst [vmem:[#allocation3 + $0x28] sm:$0xff] %v2093_v3  ;;  %v1863_v63 = vadd.f32 %v1855_v40, %v1632_v18  ;;  %v1404_v7 = vmul.f32 %v5206_v50, %v6114_v12  ;;  %v5220_v4 = vstv %s5176_s18  ;;  %v5223_v47 = vstv %s5184_s4  ;;  %v6164_v18 = vld [vmem:[#allocation129_spill] sm:$0xff] }
 0x2c6   : >> { %v950_v46 = vadd.f32 %v942_v39, %v719_v35  ;;  %v481_v10 = vmul.f32 %v5187_v45, %v6116_v44  ;;  %v712_v21 = vmul.f32 %v5193_v0, %v6118_v51  ;;  %v1633_v56 = vadd.f32 %v1625_v59, %v1402_v62  ;;  %v6163_v39 = vld [vmem:[#allocation116_spill] sm:$0xff] }
 0x2c7   : >> { %v2094_v11 = vadd.f32 %v2086_v14, %v1863_v63  ;;  %v2087_v40 = vmul.f32 %v5006_v33, %v5063_v49  ;;  %v1635_v12 = vmul.f32 %v5215_v22, %v6115_v37  ;;  %v1866_v42 = vmul.f32 %v5220_v4, %v6160_v13  ;;  %v6161_v33 = vld [vmem:[#allocation123_spill] sm:$0xff]  ;;  %v274_v37 = vld [vmem:[#allocation4 + $0x10] sm:$0xff]  ;;  %v6166_v63 = vld [vmem:[#allocation57_spill] sm:$0xff] }
 0x2c8   : >> { %v1181_v23 = vadd.f32 %v1173_v6, %v950_v46  ;;  %v489_v26 = vadd.f32 %v481_v10, %v273_v27  ;;  %v943_v38 = vmul.f32 %v5196_v9, %v6120_v54  ;;  %v1864_v44 = vadd.f32 %v1856_v36, %v1633_v56  ;;  %v6167_v27 = vld [vmem:[#allocation86_spill] sm:$0xff] }
 0x2c9   : >> { %2143 = vst [vmem:[#allocation3 + $0x30] sm:$0xff] %v2094_v11  ;;  %v2097_v51 = vmul.f32 %v5223_v47, %v6119_v32  ;;  %v1174_v14 = vmul.f32 %v5203_v25, %v6121_v48  ;;  %v1405_v34 = vmul.f32 %v5206_v50, %v6161_v33  ;;  %v482_v57 = vmul.f32 %v5187_v45, %v6162_v28  ;;  %v6165_v32 = vld [vmem:[#allocation132_spill] sm:$0xff]  ;;  %v6168_v10 = vld [vmem:[#allocation82_spill] sm:$0xff] }
 0x2ca   : >> { %v1412_v58 = vadd.f32 %v1404_v7, %v1181_v23  ;;  %v720_v55 = vadd.f32 %v712_v21, %v489_v26  ;;  %v713_v54 = vmul.f32 %v5193_v0, %v6163_v39  ;;  %v2095_v3 = vadd.f32 %v2087_v40, %v1864_v44  ;;  %v275_v7 = vld [vmem:[#allocation4 + $0x18] sm:$0xff]  ;;  %v6169_v11 = vld [vmem:[#allocation104_spill] sm:$0xff]  ;;  %v6170_v40 = vld [vmem:[#allocation79_spill] sm:$0xff] }
 0x2cb   : >> { %v1636_v1 = vmul.f32 %v5215_v22, %v6164_v18  ;;  %v1867_v59 = vmul.f32 %v5220_v4, %v6165_v32  ;;  %v2098_v48 = vmul.f32 %v5223_v47, %v6130_v24  ;;  %v490_v6 = vadd.f32 %v482_v57, %v274_v37  ;;  %v6171_v26 = vld [vmem:[#allocation66_spill] sm:$0xff]  ;;  %v6172_v44 = vld [vmem:[#allocation105_spill] sm:$0xff]  ;;  %v6174_v28 = vld [vmem:[#allocation92_spill] sm:$0xff] }
 0x2cc   : >> { %v1643_v36 = vadd.f32 %v1635_v12, %v1412_v58  ;;  %v951_v35 = vadd.f32 %v943_v38, %v720_v55  ;;  %v944_v62 = vmul.f32 %v5196_v9, %v6166_v63  ;;  %2144 = vst [vmem:[#allocation3 + $0x38] sm:$0xff] %v2095_v3  ;;  %v1175_v46 = vmul.f32 %v5203_v25, %v6167_v27  ;;  %v6173_v37 = vld [vmem:[#allocation61_spill] sm:$0xff]  ;;  %v6175_v32 = vld [vmem:[#allocation64_spill] sm:$0xff]  ;;  %v6178_v27 = vld [vmem:[#allocation138_spill] sm:$0xff] }
 0x2cd   : >> { %v1406_v21 = vmul.f32 %v5206_v50, %v6168_v10  ;;  %v483_v56 = vmul.f32 %v5187_v45, %v6169_v11  ;;  %v714_v24 = vmul.f32 %v5193_v0, %v6170_v40  ;;  %v721_v13 = vadd.f32 %v713_v54, %v490_v6  ;;  %v6177_v6 = vld [vmem:[#allocation93_spill] sm:$0xff] }
 0x2ce   : >> { %v1874_v12 = vadd.f32 %v1866_v42, %v1643_v36  ;;  %v1182_v23 = vadd.f32 %v1174_v14, %v951_v35  ;;  %v1637_v38 = vmul.f32 %v5215_v22, %v6171_v26  ;;  %v1868_v33 = vmul.f32 %v5220_v4, %v6172_v44  ;;  %v276_v14 = vld [vmem:[#allocation4 + $0x20] sm:$0xff]  ;;  %v6176_v36 = vld [vmem:[#allocation68_spill] sm:$0xff] }
 0x2cf   : >> { %v2099_v58 = vmul.f32 %v5223_v47, %v6173_v37  ;;  %v491_v55 = vadd.f32 %v483_v56, %v275_v7  ;;  %v945_v57 = vmul.f32 %v5196_v9, %v6174_v28  ;;  %v952_v18 = vadd.f32 %v944_v62, %v721_v13  ;;  %v6180_v62 = vld [vmem:[#allocation134_spill] sm:$0xff]  ;;  %v6182_v13 = vld [vmem:[#allocation139_spill] sm:$0xff] }
 0x2d0   : >> { %v2105_v39 = vadd.f32 %v2097_v51, %v1874_v12  ;;  %v1413_v3 = vadd.f32 %v1405_v34, %v1182_v23  ;;  %v1176_v42 = vmul.f32 %v5203_v25, %v6175_v32  ;;  %v1407_v35 = vmul.f32 %v5206_v50, %v6176_v36  ;;  %v6179_v51 = vld [vmem:[#allocation70_spill] sm:$0xff]  ;;  %v6185_v32 = vld [vmem:[#allocation103_spill] sm:$0xff] }
 0x2d1   : >> { %v722_v54 = vadd.f32 %v714_v24, %v491_v55  ;;  %v484_v63 = vmul.f32 %v5187_v45, %v6177_v6  ;;  %v715_v7 = vmul.f32 %v5193_v0, %v6178_v27  ;;  %v1183_v11 = vadd.f32 %v1175_v46, %v952_v18  ;;  %v6181_v24 = vld [vmem:[#allocation137_spill] sm:$0xff]  ;;  %v6183_v55 = vld [vmem:[#allocation60_spill] sm:$0xff] }
 0x2d2   : >> { %2145 = vst [vmem:[#allocation4] sm:$0xff] %v2105_v39  ;;  %v1644_v10 = vadd.f32 %v1636_v1, %v1413_v3  ;;  %v1638_v34 = vmul.f32 %v5215_v22, %v6179_v51  ;;  %v1869_v56 = vmul.f32 %v5220_v4, %v6180_v62  ;;  %v2100_v12 = vmul.f32 %v5223_v47, %v6181_v24  ;;  %v6184_v46 = vld [vmem:[#allocation53_spill] sm:$0xff]  ;;  %v277_v39 = vld [vmem:[#allocation4 + $0x28] sm:$0xff]  ;;  %v6189_v62 = vld [vmem:[#allocation140_spill] sm:$0xff] }
 0x2d3   : >> { %v953_v40 = vadd.f32 %v945_v57, %v722_v54  ;;  %v492_v23 = vadd.f32 %v484_v63, %v276_v14  ;;  %v946_v26 = vmul.f32 %v5196_v9, %v6182_v13  ;;  %v1414_v37 = vadd.f32 %v1406_v21, %v1183_v11  ;;  %v6186_v54 = vld [vmem:[#allocation141_spill] sm:$0xff]  ;;  %v6187_v63 = vld [vmem:[#allocation43_spill] sm:$0xff] }
 0x2d4   : >> { %v1875_v44 = vadd.f32 %v1867_v59, %v1644_v10  ;;  %v1177_v1 = vmul.f32 %v5203_v25, %v6183_v55  ;;  %v1408_v28 = vmul.f32 %v5206_v50, %v6184_v46  ;;  %v485_v57 = vmul.f32 %v5187_v45, %v6185_v32  ;;  %v6188_v21 = vld [vmem:[#allocation67_spill] sm:$0xff] }
 0x2d5   : >> { %v1184_v3 = vadd.f32 %v1176_v42, %v953_v40  ;;  %v723_v18 = vadd.f32 %v715_v7, %v492_v23  ;;  %v716_v14 = vmul.f32 %v5193_v0, %v6186_v54  ;;  %v1645_v6 = vadd.f32 %v1637_v38, %v1414_v37  ;;  %v6190_v38 = vld [vmem:[#allocation44_spill] sm:$0xff] }
 0x2d6   : >> { %v2106_v36 = vadd.f32 %v2098_v48, %v1875_v44  ;;  %v1639_v59 = vmul.f32 %v5215_v22, %v6187_v63  ;;  %v1870_v27 = vmul.f32 %v5220_v4, %v6188_v21  ;;  %v493_v51 = vadd.f32 %v485_v57, %v277_v39  ;;  %v278_v23 = vld [vmem:[#allocation4 + $0x30] sm:$0xff] }
 0x2d7   : >> { %v1415_v10 = vadd.f32 %v1407_v35, %v1184_v3  ;;  %v954_v11 = vadd.f32 %v946_v26, %v723_v18  ;;  %v947_v42 = vmul.f32 %v5196_v9, %v6154_v52  ;;  %v1876_v7 = vadd.f32 %v1868_v33, %v1645_v6  ;;  %v6191_v26 = vld [vmem:[#allocation59_spill] sm:$0xff] }
 0x2d8   : >> { %2146 = vst [vmem:[#allocation4 + $0x8] sm:$0xff] %v2106_v36  ;;  %v2101_v40 = vmul.f32 %v5223_v47, %v6189_v62  ;;  %v1178_v48 = vmul.f32 %v5203_v25, %v6155_v60  ;;  %v1409_v24 = vmul.f32 %v5206_v50, %v6190_v38  ;;  %v724_v35 = vadd.f32 %v716_v14, %v493_v51  ;;  %v6192_v33 = vld [vmem:[#allocation51_spill] sm:$0xff]  ;;  %v6195_v51 = vld [vmem:[#allocation81_spill] sm:$0xff] }
 0x2d9   : >> { %v1646_v13 = vadd.f32 %v1638_v34, %v1415_v10  ;;  %v1185_v44 = vadd.f32 %v1177_v1, %v954_v11  ;;  %v486_v37 = vmul.f32 %v5187_v45, %v6191_v26  ;;  %v2107_v55 = vadd.f32 %v2099_v58, %v1876_v7  ;;  %v6193_v1 = vld [vmem:[#allocation54_spill] sm:$0xff]  ;;  %v6197_v62 = vld [vmem:[#allocation135_spill] sm:$0xff] }
 0x2da   : >> { %v1640_v52 = vmul.f32 %v5215_v22, %v6157_v61  ;;  %v717_v46 = vmul.f32 %v5193_v0, %v6192_v33  ;;  %v948_v60 = vmul.f32 %v5196_v9, %v4810_v31  ;;  %v955_v18 = vadd.f32 %v947_v42, %v724_v35  ;;  %v6196_v7 = vld [vmem:[#allocation94_spill] sm:$0xff]  ;;  %v6198_v38 = vld [vmem:[#allocation131_spill] sm:$0xff]  ;;  %v6204_v33 = vld [vmem:[#allocation52_spill] sm:$0xff] }
 0x2db   : >> { %v1877_v39 = vadd.f32 %v1869_v56, %v1646_v13  ;;  %v1416_v3 = vadd.f32 %v1408_v28, %v1185_v44  ;;  %v494_v32 = vadd.f32 %v486_v37, %v278_v23  ;;  %2147 = vst [vmem:[#allocation4 + $0x10] sm:$0xff] %v2107_v55  ;;  %v1871_v34 = vmul.f32 %v5220_v4, %v6158_v29  ;;  %v279_v28 = vld [vmem:[#allocation4 + $0x38] sm:$0xff]  ;;  %v6201_v23 = vld [vmem:[#allocation83_spill] sm:$0xff]  ;;  %v6202_v44 = vld [vmem:[#allocation136_spill] sm:$0xff] }
 0x2dc   : >> { %v2102_v58 = vmul.f32 %v5223_v47, %v6193_v1  ;;  %v1179_v61 = vmul.f32 %v5203_v25, %v4830_v19  ;;  %v1410_v57 = vmul.f32 %v5206_v50, %v4842_v2  ;;  %v1186_v31 = vadd.f32 %v1178_v48, %v955_v18  ;;  %v6203_v55 = vld [vmem:[#allocation118_spill] sm:$0xff] }
 0x2dd   : >> { %v2108_v54 = vadd.f32 %v2100_v12, %v1877_v39  ;;  %v1647_v14 = vadd.f32 %v1639_v59, %v1416_v3  ;;  %v725_v56 = vadd.f32 %v717_v46, %v494_v32  ;;  %v1641_v36 = vmul.f32 %v5215_v22, %v4856_v43  ;;  %v6205_v3 = vld [vmem:[#allocation48_spill] sm:$0xff]  ;;  %v6206_v32 = vld [vmem:[#allocation58_spill] sm:$0xff] }
 0x2de   : >> { %v1872_v29 = vmul.f32 %v5220_v4, %v4869_v20  ;;  %v487_v6 = vmul.f32 %v5187_v45, %v4916_v16  ;;  %v718_v19 = vmul.f32 %v5193_v0, %v4943_v15  ;;  %v1417_v2 = vadd.f32 %v1409_v24, %v1186_v31  ;;  %v6194_v0 = vld [vmem:[#allocation133_spill] sm:$0xff] }
 0x2df   : >> { %2148 = vst [vmem:[#allocation4 + $0x18] sm:$0xff] %v2108_v54  ;;  %v1878_v63 = vadd.f32 %v1870_v27, %v1647_v14  ;;  %v956_v12 = vadd.f32 %v948_v60, %v725_v56  ;;  %v2103_v59 = vmul.f32 %v5223_v47, %v4885_v5  ;;  %v949_v43 = vmul.f32 %v5196_v9, %v4959_v17  ;;  %v6208_v14 = vld [vmem:[#allocation63_spill] sm:$0xff]  ;;  %v6209_v56 = vld [vmem:[#allocation62_spill] sm:$0xff] }
 0x2e0   : >> { %v495_v21 = vadd.f32 %v487_v6, %v279_v28  ;;  %v1180_v20 = vmul.f32 %v5203_v25, %v4982_v41  ;;  %v1411_v16 = vmul.f32 %v5206_v50, %v5010_v8  ;;  %v1648_v10 = vadd.f32 %v1640_v52, %v1417_v2  ;;  %v6199_v25 = vld [vmem:[#allocation50_spill] sm:$0xff]  ;;  %v6200_v50 = vld [vmem:[#allocation56_spill] sm:$0xff] }
 0x2e1   : >> { %v2109_v45 = vadd.f32 %v2101_v40, %v1878_v63  ;;  %v1187_v15 = vadd.f32 %v1179_v61, %v956_v12  ;;  %v2113_v27 = vsub.f32 1.0, %v6194_v0  ;;  %v2114_v42 = vsub.f32 1.0, %v6195_v51 }
 0x2e2   : >> { %v726_v11 = vadd.f32 %v718_v19, %v495_v21  ;;  %v2115_v5 = vsub.f32 1.0, %v6196_v7  ;;  %v2116_v48 = vsub.f32 1.0, %v6197_v62  ;;  %v1879_v17 = vadd.f32 %v1871_v34, %v1648_v10 }
 0x2e3   : >> { %2149 = vst [vmem:[#allocation4 + $0x20] sm:$0xff] %v2109_v45  ;;  %v1418_v9 = vadd.f32 %v1410_v57, %v1187_v15  ;;  %v2121_v41 = vmul.f32 %v2113_v27, %v6198_v38  ;;  %v2117_v24 = vsub.f32 1.0, %v6199_v25  ;;  %v2122_v40 = vmul.f32 %v2114_v42, %v6200_v50 }
 0x2e4   : >> { %v957_v8 = vadd.f32 %v949_v43, %v726_v11  ;;  %v2123_v13 = vmul.f32 %v2115_v5, %v6201_v23  ;;  %v2124_v35 = vmul.f32 %v2116_v48, %v6202_v44  ;;  %v2110_v26 = vadd.f32 %v2102_v58, %v1879_v17  ;;  %v6207_v58 = vld [vmem:[#allocation49_spill] sm:$0xff] }
 0x2e5   : >> { %v1649_v37 = vadd.f32 %v1641_v36, %v1418_v9  ;;  %2153 = vst [vmem:[#allocation5] sm:$0xff] %v2121_v41  ;;  %v2125_v52 = vmul.f32 %v2117_v24, %v6203_v55  ;;  %v2118_v46 = vsub.f32 1.0, %v6204_v33  ;;  %v1642_v39 = vmul.f32 %v5215_v22, %v5035_v30  ;;  %2154 = vst [vmem:[#allocation5 + $0x8] sm:$0xff] %v2122_v40 }
 0x2e6   : >> { %v1188_v60 = vadd.f32 %v1180_v20, %v957_v8  ;;  %2155 = vst [vmem:[#allocation5 + $0x10] sm:$0xff] %v2123_v13  ;;  %2156 = vst [vmem:[#allocation5 + $0x18] sm:$0xff] %v2124_v35  ;;  %v2119_v18 = vsub.f32 1.0, %v6205_v3  ;;  %v2120_v34 = vsub.f32 1.0, %v6206_v32  ;;  %v1873_v54 = vmul.f32 %v5220_v4, %v5049_v53 }
 0x2e7   : >> { %2150 = vst [vmem:[#allocation4 + $0x28] sm:$0xff] %v2110_v26  ;;  %v1880_v1 = vadd.f32 %v1872_v29, %v1649_v37  ;;  %2157 = vst [vmem:[#allocation5 + $0x20] sm:$0xff] %v2125_v52  ;;  %v2126_v61 = vmul.f32 %v2118_v46, %v6207_v58  ;;  %v2104_v36 = vmul.f32 %v5223_v47, %v5063_v49 }
 0x2e8   : >> { %v1419_v57 = vadd.f32 %v1411_v16, %v1188_v60  ;;  %v2127_v31 = vmul.f32 %v2119_v18, %v6208_v14  ;;  %v2128_v30 = vmul.f32 %v2120_v34, %v6209_v56 }
 0x2e9   : >> { %v2111_v22 = vadd.f32 %v2103_v59, %v1880_v1  ;;  %2158 = vst [vmem:[#allocation5 + $0x28] sm:$0xff] %v2126_v61 }
 0x2ea   : >> { %v1650_v28 = vadd.f32 %v1642_v39, %v1419_v57  ;;  %2159 = vst [vmem:[#allocation5 + $0x30] sm:$0xff] %v2127_v31  ;;  %2160 = vst [vmem:[#allocation5 + $0x38] sm:$0xff] %v2128_v30 }
 0x2eb   : >> { %2151 = vst [vmem:[#allocation4 + $0x30] sm:$0xff] %v2111_v22 }
 0x2ec   : >> { %v1881_v29 = vadd.f32 %v1873_v54, %v1650_v28 }
 0x2ee   : >> { %v2112_v6 = vadd.f32 %v2104_v36, %v1881_v29 }
 0x2f0   : >> { %2152 = vst [vmem:[#allocation4 + $0x38] sm:$0xff] %v2112_v6 }
 0x2f1 PF: >> { %s225_s12 = sadd.s32 1, %s2786_s12  }
 0x2f2   : >> { %p224_p6 = scmp.ge.s32.totalorder %s225_s12, %s2932_s5 }
 0x2f4   : > { %227 = sbr.rel (!%p224_p6) target bundleno = 114 (0x72), region = 87 }
 0x2fb PF: > { %s2177_s3 = sld [smem:[#allocation12]]  ;;  %v5365_v53 = vld [vmem:[#allocation5] sm:$0xff]  ;;  %v5367_v4 = vld [vmem:[#allocation5 + $0x8] sm:$0xff]  ;;  %s5369_s24 = sld [smem:[#allocation12 + $0x1]]  ;;  %v2171_v20 = vld [vmem:[#allocation2 + $0x10] sm:$0xff] }
 0x2fc   : > { %s5371_s7 = sld [smem:[#allocation12 + $0x2]]  ;;  %v2169_v49 = vld [vmem:[#allocation2] sm:$0xff]  ;;  %v2170_v47 = vld [vmem:[#allocation2 + $0x8] sm:$0xff]  ;;  %v5373_v19 = vld [vmem:[#allocation5 + $0x10] sm:$0xff]  ;;  %s6210_s5 = sld [smem:[#allocation22_spill]] }
 0x2fd   : > { %v5375_v63 = vld [vmem:[#allocation5 + $0x18] sm:$0xff]  ;;  %v5377_v2 = vld [vmem:[#allocation5 + $0x20] sm:$0xff]  ;;  %v5379_v12 = vld [vmem:[#allocation5 + $0x28] sm:$0xff] }
 0x2fe   : > { %v5381_v59 = vld [vmem:[#allocation5 + $0x30] sm:$0xff]  ;;  %v5383_v21 = vld [vmem:[#allocation5 + $0x38] sm:$0xff]  ;;  %v2173_v45 = vld [vmem:[#allocation2 + $0x20] sm:$0xff] }
 0x2ff   : > { %v2172_v16 = vld [vmem:[#allocation2 + $0x18] sm:$0xff]  ;;  %v2174_v11 = vld [vmem:[#allocation2 + $0x28] sm:$0xff]  ;;  %v2175_v51 = vld [vmem:[#allocation2 + $0x30] sm:$0xff] }
 0x300   : > { %v2176_v42 = vld [vmem:[#allocation2 + $0x38] sm:$0xff]  ;;  %v2203_v40 = vld [vmem:[#allocation3] sm:$0xff]  ;;  %v2204_v23 = vld [vmem:[#allocation3 + $0x8] sm:$0xff] }
 0x301   : > { %v2178_v43 = vstv %s2177_s3  ;;  %v2212_v13 = vstv %s5369_s24  ;;  %v2205_v44 = vld [vmem:[#allocation3 + $0x10] sm:$0xff]  ;;  %v2206_v35 = vld [vmem:[#allocation3 + $0x18] sm:$0xff]  ;;  %v2207_v26 = vld [vmem:[#allocation3 + $0x20] sm:$0xff] }
 0x302   : > { %v2179_v10 = vmul.f32 %v2178_v43, %v5365_v53  ;;  %v2180_v15 = vmul.f32 %v2178_v43, %v5367_v4  ;;  %v2181_v0 = vmul.f32 %v2178_v43, %v5373_v19  ;;  %v2182_v27 = vmul.f32 %v2178_v43, %v5375_v63  ;;  %v2208_v60 = vld [vmem:[#allocation3 + $0x28] sm:$0xff]  ;;  %v2209_v39 = vld [vmem:[#allocation3 + $0x30] sm:$0xff]  ;;  %v2210_v3 = vld [vmem:[#allocation3 + $0x38] sm:$0xff]  ;;  %s6211_s12 = sand.u32 1, %s6210_s5  }
 0x303   : > { %v2183_v7 = vmul.f32 %v2178_v43, %v5377_v2  ;;  %v2184_v5 = vmul.f32 %v2178_v43, %v5379_v12  ;;  %v2185_v62 = vmul.f32 %v2178_v43, %v5381_v59  ;;  %v2186_v48 = vmul.f32 %v2178_v43, %v5383_v21  ;;  %v2238_v14 = vld [vmem:[#allocation4] sm:$0xff]  ;;  %v2239_v31 = vld [vmem:[#allocation4 + $0x8] sm:$0xff]  ;;  %v2240_v36 = vld [vmem:[#allocation4 + $0x10] sm:$0xff]  ;;  %s2274_s17 = scalar_lea.sflag [#allocation10], %s6211_s12 }
 0x304   : > { %v2187_v17 = vadd.f32 %v2179_v10, %v2169_v49  ;;  %v2188_v9 = vadd.f32 %v2180_v15, %v2170_v47  ;;  %v2189_v38 = vadd.f32 %v2181_v0, %v2171_v20  ;;  %v2190_v41 = vadd.f32 %v2182_v27, %v2172_v16  ;;  %v2241_v29 = vld [vmem:[#allocation4 + $0x18] sm:$0xff]  ;;  %v2242_v6 = vld [vmem:[#allocation4 + $0x20] sm:$0xff]  ;;  %v2243_v16 = vld [vmem:[#allocation4 + $0x28] sm:$0xff] }
 0x305   : > { %v2191_v25 = vadd.f32 %v2183_v7, %v2173_v45  ;;  %v2192_v24 = vadd.f32 %v2184_v5, %v2174_v11  ;;  %v2193_v8 = vadd.f32 %v2185_v62, %v2175_v51  ;;  %v2194_v50 = vadd.f32 %v2186_v48, %v2176_v42  ;;  %v2244_v45 = vld [vmem:[#allocation4 + $0x30] sm:$0xff]  ;;  %v2245_v10 = vld [vmem:[#allocation4 + $0x38] sm:$0xff] }
 0x306   : > { %2195 = vst [vmem:[%s2949_s11] sm:$0xff] %v2187_v17  ;;  %2196 = vst [vmem:[%s2949_s11 + $0x8] sm:$0xff] %v2188_v9  ;;  %v2247_v37 = vstv %s5371_s7  ;;  %v2213_v55 = vmul.f32 %v2212_v13, %v5365_v53  ;;  %v2214_v52 = vmul.f32 %v2212_v13, %v5367_v4  ;;  %v2215_v33 = vmul.f32 %v2212_v13, %v5373_v19 }
 0x307   : > { %2197 = vst [vmem:[%s2949_s11 + $0x10] sm:$0xff] %v2189_v38  ;;  %2198 = vst [vmem:[%s2949_s11 + $0x18] sm:$0xff] %v2190_v41  ;;  %v2216_v46 = vmul.f32 %v2212_v13, %v5375_v63  ;;  %v2217_v18 = vmul.f32 %v2212_v13, %v5377_v2  ;;  %v2218_v32 = vmul.f32 %v2212_v13, %v5379_v12 }
 0x308   : > { %2199 = vst [vmem:[%s2949_s11 + $0x20] sm:$0xff] %v2191_v25  ;;  %2200 = vst [vmem:[%s2949_s11 + $0x28] sm:$0xff] %v2192_v24  ;;  %v2219_v34 = vmul.f32 %v2212_v13, %v5381_v59  ;;  %v2220_v1 = vmul.f32 %v2212_v13, %v5383_v21  ;;  %v2221_v58 = vadd.f32 %v2213_v55, %v2203_v40 }
 0x309   : > { %2201 = vst [vmem:[%s2949_s11 + $0x30] sm:$0xff] %v2193_v8  ;;  %2202 = vst [vmem:[%s2949_s11 + $0x38] sm:$0xff] %v2194_v50  ;;  %v2222_v61 = vadd.f32 %v2214_v52, %v2204_v23  ;;  %v2223_v57 = vadd.f32 %v2215_v33, %v2205_v44  ;;  %v2224_v54 = vadd.f32 %v2216_v46, %v2206_v35 }
 0x30a   : > { %v2225_v56 = vadd.f32 %v2217_v18, %v2207_v26  ;;  %v2226_v30 = vadd.f32 %v2218_v32, %v2208_v60  ;;  %v2227_v22 = vadd.f32 %v2219_v34, %v2209_v39  ;;  %v2228_v28 = vadd.f32 %v2220_v1, %v2210_v3  ;;  %2422 = vst [vmem:[%s2949_s11 + $0x40] sm:$0xff] %v2221_v58 }
 0x30b   : > { %2423 = vst [vmem:[%s2949_s11 + $0x48] sm:$0xff] %v2222_v61  ;;  %2424 = vst [vmem:[%s2949_s11 + $0x50] sm:$0xff] %v2223_v57  ;;  %v2248_v49 = vmul.f32 %v2247_v37, %v5365_v53  ;;  %v2249_v47 = vmul.f32 %v2247_v37, %v5367_v4  ;;  %v2250_v43 = vmul.f32 %v2247_v37, %v5373_v19 }
 0x30c   : > { %2425 = vst [vmem:[%s2949_s11 + $0x58] sm:$0xff] %v2224_v54  ;;  %v2251_v20 = vmul.f32 %v2247_v37, %v5375_v63  ;;  %2426 = vst [vmem:[%s2949_s11 + $0x60] sm:$0xff] %v2225_v56  ;;  %v2252_v15 = vmul.f32 %v2247_v37, %v5377_v2  ;;  %v2253_v53 = vmul.f32 %v2247_v37, %v5379_v12 }
 0x30d   : > { %2427 = vst [vmem:[%s2949_s11 + $0x68] sm:$0xff] %v2226_v30  ;;  %2428 = vst [vmem:[%s2949_s11 + $0x70] sm:$0xff] %v2227_v22  ;;  %v2254_v4 = vmul.f32 %v2247_v37, %v5381_v59  ;;  %v2255_v19 = vmul.f32 %v2247_v37, %v5383_v21  ;;  %v2256_v63 = vadd.f32 %v2248_v49, %v2238_v14 }
 0x30e   : > { %2429 = vst [vmem:[%s2949_s11 + $0x78] sm:$0xff] %v2228_v28  ;;  %v2257_v0 = vadd.f32 %v2249_v47, %v2239_v31  ;;  %v2258_v27 = vadd.f32 %v2250_v43, %v2240_v36  ;;  %v2259_v11 = vadd.f32 %v2251_v20, %v2241_v29  ;;  %v2260_v51 = vadd.f32 %v2252_v15, %v2242_v6 }
 0x30f   : > { %v2261_v42 = vadd.f32 %v2253_v53, %v2243_v16  ;;  %v2262_v7 = vadd.f32 %v2254_v4, %v2244_v45  ;;  %v2263_v5 = vadd.f32 %v2255_v19, %v2245_v10  ;;  %2431 = vst [vmem:[%s2949_s11 + $0x80] sm:$0xff] %v2256_v63 }
 0x310   : > { %2432 = vst [vmem:[%s2949_s11 + $0x88] sm:$0xff] %v2257_v0  ;;  %2433 = vst [vmem:[%s2949_s11 + $0x90] sm:$0xff] %v2258_v27 }
 0x311   : > { %2434 = vst [vmem:[%s2949_s11 + $0x98] sm:$0xff] %v2259_v11  ;;  %2435 = vst [vmem:[%s2949_s11 + $0xa0] sm:$0xff] %v2260_v51 }
 0x312   : > { %2436 = vst [vmem:[%s2949_s11 + $0xa8] sm:$0xff] %v2261_v42  ;;  %2437 = vst [vmem:[%s2949_s11 + $0xb0] sm:$0xff] %v2262_v7 }
 0x313   : > { %2438 = vst [vmem:[%s2949_s11 + $0xb8] sm:$0xff] %v2263_v5 }
 0x314   : > { %s6212_s30 = sld [smem:[#allocation25_spill]]  ;;  %s6213_s27 = sld [smem:[#allocation28_spill]] }
 0x315   : > { %s2304_s25 = sshll.u32 %s2949_s11, 4  ;;  %s6214_s8 = sld [smem:[#allocation144_spill]]  ;;  %s2305_s25 = int_to_ptr.vmem [resolvable:$true] %s2304_s25 }
 0x316   : > { %s2796_s9 = smov 1024   ;;  %s2797_s6 = smov 2048  }
 0x317   : > { %s2798_s2 = smov 4   ;;  %s2799_s21 = smov 256  }
 0x318   : > { %s2800_s11 = smov 16   ;;  %s2801_s16 = smov [#allocation15]  }
 0x319   : > { %s2802_s15 = smov 0  }
 0x31a   : > { %s2461_s14 = sshll.u32 %s6212_s30, 10  ;;  %p6215_p8 = scmp.ne.s32.totalorder %s6213_s27, 0 }
 0x31b   : > { %s2287_s20 = scalar_lea.hbm %s6214_s8, %s2461_s14 }
 0x31c   : > { %2473 = sst [smem:[#allocation16]] (%p6215_p8), %s2796_s9 }
 0x31d   : > { %2474 = sst [smem:[#allocation16 + $0x1]] (%p6215_p8), %s2797_s6 }
 0x31e   : > { %2475 = sst [smem:[#allocation16 + $0x2]] (%p6215_p8), %s2798_s2 }
 0x31f   : > { %2476 = sst [smem:[#allocation16 + $0x3]] (%p6215_p8), %s2799_s21 }
 0x320   : > { %2477 = sst [smem:[#allocation16 + $0x4]] (%p6215_p8), %s2799_s21 }
 0x321   : > { %2478 = sst [smem:[#allocation16 + $0x5]] (%p6215_p8), %s2800_s11 }
 0x322   : > { %2479 = dma.general (%p6215_p8), %s2305_s25, 3072, %s2287_s20, %s2274_s17, %s2801_s16, [#allocation16], %s2802_s15, 0  }
 0x323 PF: > { %s6216_s1 = sld [smem:[#allocation24_spill]]  ;;  %s6217_s23 = sld [smem:[#allocation21_spill]] }
 0x324   : > { %s6218_s10 = sld [smem:[#allocation29_spill]] }
 0x329   : > { %p2496_p3 = scmp.ge.s32.totalorder %s6216_s1, 2  ;;  %s2332_s22 = sand.u32 1, %s6217_s23  }
 0x32a   : > { %p6219_p4 = scmp.ne.s32.totalorder %s6218_s10, 0  ;;  %s2333_s26 = scalar_lea.sflag [#allocation10], %s2332_s22 }
 0x32c   : > { %p2489_p7 = pnand %p2496_p3, %p6219_p4 }
 0x32e   : > { %2765 = dma.done.wait (!%p2489_p7), %s2333_s26, 3072  }
 0x32f   : > { %2767 = vsyncadd (!%p2489_p7), %s2333_s26, 4294964224  ;;  %s6220_s26 = sld [smem:[#allocation26_spill]]  ;;  %s6221_s1 = sld [smem:[#allocation22_spill]] }
 0x330   : > { %s6222_s24 = sld [smem:[#allocation23_spill]]  ;;  %s6223_s25 = sld [smem:[#allocation27_spill]] }
 0x335   : > { %p26_p9 = scmp.ge.s32.totalorder %s6220_s26, 4  }
 0x337   :  { %28 = sbr.rel (!%p26_p9) target bundleno = 32 (0x20), region = 98 }
 0x33e   :  { %2338 = vsyncpa [#allocation10], 1 }
 0x33f   :  { %2340 = vsyncpa [#allocation10 + $0x1], 1 }
 0x340   :  { %2341 = vsyncpa [#allocation11], 1 }
 0x341   :  { %2343 = vsyncpa [#allocation11 + $0x1], 1 }
 0x342   :  { %2344 = vsyncpa [#allocation13], 1 }

</bundles_post_ra>
